<compile_context>
chip_gen: v7x
topology: tpu7x:2x2x1
jax: 0.10.0
libtpu: 0.0.40
codegen_flags: <defaults>
</compile_context>

<pallas_src>
import functools

import jax
import jax.numpy as jnp
from jax.experimental import pallas as pl
from jax.experimental.pallas import tpu as pltpu


# ---------------------------------------------------------------------------
# In-kernel helpers
# ---------------------------------------------------------------------------

def _pad_hw1(x):
    """Zero-pad a (h, w, c) resident tile by 1 on each spatial side (VMEM only)."""
    h, w, c = x.shape
    zr = jnp.zeros((1, w, c), x.dtype)
    x = jnp.concatenate([zr, x, zr], axis=0)          # leading-dim concat
    zc = jnp.zeros((h + 2, 1, c), x.dtype)
    return jnp.concatenate([zc, x, zc], axis=1)       # sublane concat


def _im2col_conv3x3(x_bf16, wflat_bf16):
    """3x3 same-conv of one bf16 (h, w, cin) tile as ONE im2col MXU matmul.

    Returns (h*w, cout) f32 (accumulation stays f32).
    """
    h, w, cin = x_bf16.shape
    xp = _pad_hw1(x_bf16)
    cols = []
    for dy in range(3):
        for dx in range(3):
            cols.append(xp[dy:dy + h, dx:dx + w, :].reshape(h * w, cin))
    im2col = jnp.concatenate(cols, axis=-1)           # (h*w, 9*cin) bf16
    return jnp.dot(im2col, wflat_bf16, preferred_element_type=jnp.float32)


# ---------------------------------------------------------------------------
# Pallas kernels
# ---------------------------------------------------------------------------

def _reduce_dwt_kernel(x_ref, w_ref, scale_ref, shift_ref, o_ref):
    """Fused 1x1 conv (reduce) + folded BN + ReLU + Haar analysis.

    x_ref: (1, 2k, W/2, 2C) -- 2k input rows; lanes [0:C] = even column pixel,
           lanes [C:2C] = odd column pixel (free reinterpretation of NHWC).
    o_ref: (1, k, W/2, 4*dr) bf16 -- k half-res rows of [LL|LH|HL|HH].
    """
    _, rows2, wh, c2 = x_ref.shape
    k = rows2 // 2
    c = c2 // 2
    dr = w_ref.shape[1]
    m = k * wh

    xb = x_ref[0].astype(jnp.bfloat16).reshape(k, 2, wh, c2)
    a = xb[:, 0, :, 0:c].reshape(m, c)     # even row, even col
    b = xb[:, 0, :, c:c2].reshape(m, c)    # even row, odd col
    d = xb[:, 1, :, 0:c].reshape(m, c)     # odd row,  even col
    e = xb[:, 1, :, c:c2].reshape(m, c)    # odd row,  odd col

    stacked = jnp.concatenate([a, b, d, e], axis=0)            # (4m, C) bf16
    y = jnp.dot(stacked, w_ref[...], preferred_element_type=jnp.float32)
    y = jnp.maximum(y * scale_ref[...] + shift_ref[...], 0.0)  # conv+BN+ReLU

    ya, yb, yd, ye = y[0:m], y[m:2 * m], y[2 * m:3 * m], y[3 * m:4 * m]
    ll = 0.5 * (ya + yb + yd + ye)
    lh = 0.5 * (ya + yb - yd - ye)
    hl = 0.5 * (ya - yb + yd - ye)
    hh = 0.5 * (ya - yb - yd + ye)
    out = jnp.concatenate([ll, lh, hl, hh], axis=-1)           # (m, 4*dr)
    o_ref[0] = out.reshape(k, wh, 4 * dr).astype(o_ref.dtype)


def _filter_idwt_kernel(x_ref, wflat_ref, scale_ref, shift_ref, o_ref):
    """Fused 3x3 conv (filter) + folded BN + ReLU + Haar synthesis (O(N) VPU).

    x_ref: (1, Hh, Wh, 4*dr) bf16 subbands [LL|LH|HL|HH]
    o_ref: (1, Hh, 2, Wh, 2*dr) bf16; its row-major memory equals x_idwt
           in (B, N, dr) order (N = full-res pixel index).
    """
    _, hh, wh, c4 = x_ref.shape
    dr = c4 // 4

    z = _im2col_conv3x3(x_ref[0], wflat_ref[...])              # (hh*wh, c4) f32
    z = jnp.maximum(z * scale_ref[...] + shift_ref[...], 0.0)

    ll = z[:, 0 * dr:1 * dr]
    lh = z[:, 1 * dr:2 * dr]
    hl = z[:, 2 * dr:3 * dr]
    hh_ = z[:, 3 * dr:4 * dr]
    p00 = 0.5 * (ll + lh + hl + hh_)   # full-res pixel (2i,   2j)
    p01 = 0.5 * (ll + lh - hl - hh_)   # full-res pixel (2i,   2j+1)
    p10 = 0.5 * (ll - lh + hl - hh_)   # full-res pixel (2i+1, 2j)
    p11 = 0.5 * (ll - lh - hl + hh_)   # full-res pixel (2i+1, 2j+1)

    top = jnp.concatenate([p00, p01], axis=-1).reshape(hh, wh, 2 * dr)
    bot = jnp.concatenate([p10, p11], axis=-1).reshape(hh, wh, 2 * dr)
    o_ref[0, :, 0, :, :] = top.astype(o_ref.dtype)
    o_ref[0, :, 1, :, :] = bot.astype(o_ref.dtype)


def _cab1_kernel(x_ref, wflat_ref, bias_ref, o_ref):
    """CAB conv1: 3x3 conv (C -> C//3) + bias (exact GELU applied as XLA glue)."""
    _, h, w, cout = o_ref.shape
    x = x_ref[0].astype(jnp.bfloat16)
    z = _im2col_conv3x3(x, wflat_ref[...]) + bias_ref[...]
    o_ref[0] = z.reshape(h, w, cout).astype(o_ref.dtype)


def _cab2_ca_kernel(x_ref, wflat_ref, bias_ref, w1_ref, b1_ref, w2_ref, b2_ref,
                    o_ref):
    """Fused CAB conv2 (3x3, C//3 -> C, bias) + ChannelAttention + NHWC->NCHW store."""
    _, h, w, _ = x_ref.shape
    x = x_ref[0].astype(jnp.bfloat16)
    z = _im2col_conv3x3(x, wflat_ref[...]) + bias_ref[...]      # (h*w, C) f32

    # ChannelAttention on the resident tile: pool -> squeeze -> ReLU -> expand
    # -> sigmoid -> scale.  Tiny contractions done as broadcast + reduce (VPU).
    mpool = jnp.mean(z, axis=0, keepdims=True)                  # (1, C)
    hsq = jnp.maximum(
        jnp.sum(mpool * w1_ref[...], axis=1, keepdims=True) + b1_ref[...], 0.0)  # (cs, 1)
    logits = jnp.sum(hsq * w2_ref[...], axis=0, keepdims=True) + b2_ref[...]     # (1, C)
    z = z * jax.nn.sigmoid(logits)

    # torch's CAB output is NCHW and later raw-reinterpreted as (B, N, C);
    # relayout here so the store is lane-dense (C, H*W) and no XLA transpose
    # round trip is needed.
    o_ref[0] = jnp.transpose(z, (1, 0)).astype(o_ref.dtype)     # (C, h*w)


def _proj_kernel(ya_ref, yb_ref, wa_ref, wb_ref, b_ref, o_ref):
    """Fused concat + Linear: out = ya @ Wa + yb @ Wb + b (no concat in HBM)."""
    acc = jnp.dot(ya_ref[...], wa_ref[...], preferred_element_type=jnp.float32)
    acc = acc + jnp.dot(yb_ref[...], wb_ref[...],
                        preferred_element_type=jnp.float32)
    o_ref[...] = (acc + b_ref[...]).astype(o_ref.dtype)


# ---------------------------------------------------------------------------
# Pallas wrappers
# ---------------------------------------------------------------------------

def _pick_strip(hh, max_out_rows=8):
    """Largest divisor of Hh (output rows per step) with <= 16 input rows."""
    k = max(1, min(hh, max_out_rows))
    while hh % k:
        k -= 1
    return k


def reduce_dwt(x_nhwc, w_bf16, scale, shift):
    b, h, wd, c = x_nhwc.shape
    dr = w_bf16.shape[1]
    hh, wh = h // 2, wd // 2
    k = _pick_strip(hh)
    xr = x_nhwc.reshape(b, h, wh, 2 * c)      # free reinterpretation (col phase on lanes)
    return pl.pallas_call(
        _reduce_dwt_kernel,
        out_shape=jax.ShapeDtypeStruct((b, hh, wh, 4 * dr), jnp.bfloat16),
        grid=(b, hh // k),
        in_specs=[
            pl.BlockSpec((1, 2 * k, wh, 2 * c), lambda i, j: (i, j, 0, 0)),
            pl.BlockSpec((c, dr), lambda i, j: (0, 0)),
            pl.BlockSpec((1, dr), lambda i, j: (0, 0)),
            pl.BlockSpec((1, dr), lambda i, j: (0, 0)),
        ],
        out_specs=pl.BlockSpec((1, k, wh, 4 * dr), lambda i, j: (i, j, 0, 0)),
        compiler_params=pltpu.CompilerParams(
            dimension_semantics=("parallel", "parallel")),
    )(xr, w_bf16, scale.reshape(1, dr), shift.reshape(1, dr))


def filter_idwt(x_dwt, wflat_bf16, scale, shift):
    b, hh, wh, c4 = x_dwt.shape
    dr = c4 // 4
    return pl.pallas_call(
        _filter_idwt_kernel,
        out_shape=jax.ShapeDtypeStruct((b, hh, 2, wh, 2 * dr), jnp.bfloat16),
        grid=(b,),
        in_specs=[
            pl.BlockSpec((1, hh, wh, c4), lambda i: (i, 0, 0, 0)),
            pl.BlockSpec((9 * c4, c4), lambda i: (0, 0)),
            pl.BlockSpec((1, c4), lambda i: (0, 0)),
            pl.BlockSpec((1, c4), lambda i: (0, 0)),
        ],
        out_specs=pl.BlockSpec((1, hh, 2, wh, 2 * dr),
                               lambda i: (i, 0, 0, 0, 0)),
        compiler_params=pltpu.CompilerParams(dimension_semantics=("parallel",)),
    )(x_dwt, wflat_bf16, scale.reshape(1, c4), shift.reshape(1, c4))


def cab1_conv(x_nhwc, wflat_bf16, bias, cout):
    b, h, w, cin = x_nhwc.shape
    return pl.pallas_call(
        _cab1_kernel,
        out_shape=jax.ShapeDtypeStruct((b, h, w, cout), jnp.bfloat16),
        grid=(b,),
        in_specs=[
            pl.BlockSpec((1, h, w, cin), lambda i: (i, 0, 0, 0)),
            pl.BlockSpec((9 * cin, cout), lambda i: (0, 0)),
            pl.BlockSpec((1, cout), lambda i: (0, 0)),
        ],
        out_specs=pl.BlockSpec((1, h, w, cout), lambda i: (i, 0, 0, 0)),
        compiler_params=pltpu.CompilerParams(dimension_semantics=("parallel",)),
    )(x_nhwc, wflat_bf16, bias.reshape(1, cout))


def cab2_channel_attn(x_nhwc, wflat_bf16, bias, w1, b1, w2, b2, cout):
    b, h, w, cin = x_nhwc.shape
    cs = w1.shape[0]
    n = h * w
    return pl.pallas_call(
        _cab2_ca_kernel,
        out_shape=jax.ShapeDtypeStruct((b, cout, n), jnp.bfloat16),
        grid=(b,),
        in_specs=[
            pl.BlockSpec((1, h, w, cin), lambda i: (i, 0, 0, 0)),
            pl.BlockSpec((9 * cin, cout), lambda i: (0, 0)),
            pl.BlockSpec((1, cout), lambda i: (0, 0)),
            pl.BlockSpec((cs, cout), lambda i: (0, 0)),
            pl.BlockSpec((cs, 1), lambda i: (0, 0)),
            pl.BlockSpec((cs, cout), lambda i: (0, 0)),
            pl.BlockSpec((1, cout), lambda i: (0, 0)),
        ],
        out_specs=pl.BlockSpec((1, cout, n), lambda i: (i, 0, 0)),
        compiler_params=pltpu.CompilerParams(dimension_semantics=("parallel",)),
    )(x_nhwc, wflat_bf16, bias.reshape(1, cout),
      w1, b1.reshape(cs, 1), w2, b2.reshape(1, cout))


def _pick_row_tile(m, target=256):
    """Largest multiple-of-8 divisor of m (<= target); 0 => pad in the wrapper."""
    best = 0
    t = 8
    while t <= min(m, target):
        if m % t == 0:
            best = t
        t += 8
    return best if best else min(target, ((m + 7) // 8) * 8)


def proj_fused(ya, yb, wa, wb, bias):
    m, c = ya.shape
    dr = yb.shape[1]
    cout = wa.shape[1]
    tm = _pick_row_tile(m)
    pad = (-m) % tm
    if pad:  # hardened: never fall back to a single oversized tile
        ya = jnp.pad(ya, ((0, pad), (0, 0)))
        yb = jnp.pad(yb, ((0, pad), (0, 0)))
    mp = m + pad
    out = pl.pallas_call(
        _proj_kernel,
        out_shape=jax.ShapeDtypeStruct((mp, cout), jnp.float32),
        grid=(mp // tm,),
        in_specs=[
            pl.BlockSpec((tm, c), lambda i: (i, 0)),
            pl.BlockSpec((tm, dr), lambda i: (i, 0)),
            pl.BlockSpec((c, cout), lambda i: (0, 0)),
            pl.BlockSpec((dr, cout), lambda i: (0, 0)),
            pl.BlockSpec((1, cout), lambda i: (0, 0)),
        ],
        out_specs=pl.BlockSpec((tm, cout), lambda i: (i, 0)),
        compiler_params=pltpu.CompilerParams(dimension_semantics=("parallel",)),
    )(ya, yb, wa, wb, bias.reshape(1, cout))
    return out[:m] if pad else out


# ---------------------------------------------------------------------------
# Parameters (deterministic synthetic init)
# ---------------------------------------------------------------------------

def init_params(key, dim):
    dr, dc, cs = dim // 4, dim // 3, max(dim // 30, 1)
    keys = iter(jax.random.split(key, 16))

    def n(shape, s=0.1):
        return s * jax.random.normal(next(keys), shape, jnp.float32)

    return {
        # reduce: Conv2d(dim, dim//4, 1) + BN + ReLU
        "reduce_w": n((dim, dr)), "reduce_b": n((dr,)),
        "reduce_bn_gamma": jnp.ones((dr,), jnp.float32),
        "reduce_bn_beta": jnp.zeros((dr,), jnp.float32),
        "reduce_bn_mean": jnp.zeros((dr,), jnp.float32),
        "reduce_bn_var": jnp.ones((dr,), jnp.float32),
        # filter: Conv2d(dim, dim, 3, pad=1) + BN + ReLU  (weights in HWIO)
        "filter_w": n((3, 3, dim, dim)), "filter_b": n((dim,)),
        "filter_bn_gamma": jnp.ones((dim,), jnp.float32),
        "filter_bn_beta": jnp.zeros((dim,), jnp.float32),
        "filter_bn_mean": jnp.zeros((dim,), jnp.float32),
        "filter_bn_var": jnp.ones((dim,), jnp.float32),
        # proj: Linear(dim + dim//4, dim)  (stored as (in, out))
        "proj_w": n((dim + dr, dim)), "proj_b": n((dim,)),
        # CAB convs (HWIO)
        "cab1_w": n((3, 3, dim, dc)), "cab1_b": n((dc,)),
        "cab2_w": n((3, 3, dc, dim)), "cab2_b": n((dim,)),
        # ChannelAttention(dim, squeeze=30): w1 (cs, C) rows, w2 (cs, C) rows
        "ca_w1": n((cs, dim)), "ca_b1": n((cs,)),
        "ca_w2": n((cs, dim)), "ca_b2": n((dim,)),
    }


# ---------------------------------------------------------------------------
# WaveAttention forward (the FDASSL waveatt branch)
# ---------------------------------------------------------------------------

def wave_attention(params, x, H, W):
    B, N, C = x.shape
    assert H % 2 == 0 and W % 2 == 0 and N == H * W
    eps = 1e-5
    dr = C // 4
    dc = C // 3
    bf16 = jnp.bfloat16

    # Fold eval-mode BatchNorm (+ conv bias) into per-channel scale/shift.
    scale_r = params["reduce_bn_gamma"] / jnp.sqrt(params["reduce_bn_var"] + eps)
    shift_r = (params["reduce_b"] - params["reduce_bn_mean"]) * scale_r \
        + params["reduce_bn_beta"]
    scale_f = params["filter_bn_gamma"] / jnp.sqrt(params["filter_bn_var"] + eps)
    shift_f = (params["filter_b"] - params["filter_bn_mean"]) * scale_f \
        + params["filter_bn_beta"]

    # Pre-cast MXU weights to bf16 once (im2col is built directly in bf16).
    reduce_w = params["reduce_w"].astype(bf16)
    filter_wflat = params["filter_w"].reshape(9 * C, C).astype(bf16)
    cab1_wflat = params["cab1_w"].reshape(9 * C, dc).astype(bf16)
    cab2_wflat = params["cab2_w"].reshape(9 * dc, C).astype(bf16)
    wa = params["proj_w"][:C, :].astype(bf16)
    wb = params["proj_w"][C:, :].astype(bf16)

    # torch: x.view(B,H,W,C).permute(0,3,1,2) -> NCHW ; we keep NHWC internally.
    x_img = x.reshape(B, H, W, C)

    # --- reduce (1x1 conv + BN + ReLU) fused with Haar DWT (O(N) combine) ---
    x_dwt = reduce_dwt(x_img, reduce_w, scale_r, shift_r)   # (B,H/2,W/2,C) bf16

    # --- filter (3x3 conv + BN + ReLU) fused with Haar IDWT (O(N) combine) ---
    x_idwt = filter_idwt(x_dwt, filter_wflat, scale_f, shift_f)  # (B,Hh,2,Wh,2dr) bf16

    # --- CAB on original x ---
    y = cab1_conv(x_img, cab1_wflat, params["cab1_b"], dc)       # (B,H,W,dc) bf16
    # TODO(synk): fuse exact-erf GELU into the cab1 epilogue once erf lowering
    #             inside Mosaic is confirmed (kept as exact XLA glue for now).
    y = jax.nn.gelu(y.astype(jnp.float32), approximate=False)
    y_nchw = cab2_channel_attn(y, cab2_wflat, params["cab2_b"],
                               params["ca_w1"], params["ca_b1"],
                               params["ca_w2"], params["ca_b2"], C)  # (B,C,N) bf16

    # torch: CAB output is NCHW; x.reshape(B,N,C) is a raw memory
    # reinterpretation -- our (B, C, N) output makes this a free reshape.
    ya = y_nchw.reshape(B * N, C)
    # x_idwt's (B,Hh,2,Wh,2dr) memory is already (B, N, dr) row-major.
    yb = x_idwt.reshape(B * N, dr)

    # --- fused concat + proj ---
    out = proj_fused(ya, yb, wa, wb, params["proj_b"])           # (B*N, C) f32

    # torch: x.view(B, C, H, W) -- raw memory reinterpretation.
    return out.reshape(B, C, H, W)


# ---------------------------------------------------------------------------

if __name__ == "__main__":
    B, H, W, C = 2, 16, 16, 32
    N = H * W

    key = jax.random.PRNGKey(0)
    kx, kp = jax.random.split(key)
    x = jax.random.normal(kx, (B, N, C), jnp.float32)
    params = init_params(kp, C)

    fwd = jax.jit(functools.partial(wave_attention, H=H, W=W))
    out = fwd(params, x)
    out = jax.block_until_ready(out)

    assert out.shape == (B, C, H, W), out.shape
    assert bool(jnp.all(jnp.isfinite(out)))
    print("KERNEL_OK")
</pallas_src>

<mosaic_0001>
module attributes {stable_mosaic.version = 11 : i64} {
  func.func @_cab2_ca_kernel(%arg0: i32, %arg1: memref<1x16x16x10xf32, #tpu.memory_space<vmem>>, %arg2: memref<90x32xbf16, #tpu.memory_space<vmem>>, %arg3: memref<1x32xf32, #tpu.memory_space<vmem>>, %arg4: memref<1x32xf32, #tpu.memory_space<vmem>>, %arg5: memref<1x1xf32, #tpu.memory_space<vmem>>, %arg6: memref<1x32xf32, #tpu.memory_space<vmem>>, %arg7: memref<1x32xf32, #tpu.memory_space<vmem>>, %arg8: memref<1x32x256xbf16, #tpu.memory_space<vmem>>) attributes {dimension_semantics = [#tpu.dimension_semantics<parallel>], iteration_bounds = array<i64: 2>, scalar_prefetch = 0 : i64, scratch_operands = 0 : i64, tpu.core_type = #tpu.core_type<tc>, window_params = [{transform_indices = @transform_0, window_bounds = array<i64: 1, 16, 16, 10>}, {pipeline_mode = #tpu.pipeline_mode<synchronous>, transform_indices = @transform_1, window_bounds = array<i64: 90, 32>}, {pipeline_mode = #tpu.pipeline_mode<synchronous>, transform_indices = @transform_2, window_bounds = array<i64: 1, 32>}, {pipeline_mode = #tpu.pipeline_mode<synchronous>, transform_indices = @transform_3, window_bounds = array<i64: 1, 32>}, {pipeline_mode = #tpu.pipeline_mode<synchronous>, transform_indices = @transform_4, window_bounds = array<i64: 1, 1>}, {pipeline_mode = #tpu.pipeline_mode<synchronous>, transform_indices = @transform_5, window_bounds = array<i64: 1, 32>}, {pipeline_mode = #tpu.pipeline_mode<synchronous>, transform_indices = @transform_6, window_bounds = array<i64: 1, 32>}, {transform_indices = @transform_7, window_bounds = array<i64: 1, 32, 256>}]} {
    %c0 = arith.constant 0 : index
    %c0_0 = arith.constant 0 : index
    %c0_1 = arith.constant 0 : index
    %c0_2 = arith.constant 0 : index
    %0 = vector.load %arg1[%c0, %c0_0, %c0_1, %c0_2] : memref<1x16x16x10xf32, #tpu.memory_space<vmem>>, vector<1x16x16x10xf32>
    %1 = vector.shape_cast %0 : vector<1x16x16x10xf32> to vector<16x16x10xf32>
    %2 = arith.truncf %1 : vector<16x16x10xf32> to vector<16x16x10xbf16>
    %c0_3 = arith.constant 0 : index
    %c0_4 = arith.constant 0 : index
    %3 = vector.load %arg2[%c0_3, %c0_4] : memref<90x32xbf16, #tpu.memory_space<vmem>>, vector<90x32xbf16>
    %cst = arith.constant 0.000000e+00 : bf16
    %4 = vector.broadcast %cst : bf16 to vector<1x16x10xbf16>
    %5 = tpu.concatenate %4, %2, %4 in 0 : vector<1x16x10xbf16>, vector<16x16x10xbf16>, vector<1x16x10xbf16> -> vector<18x16x10xbf16>
    %cst_5 = arith.constant 0.000000e+00 : bf16
    %6 = vector.broadcast %cst_5 : bf16 to vector<18x1x10xbf16>
    %7 = tpu.concatenate %6, %5, %6 in 1 : vector<18x1x10xbf16>, vector<18x16x10xbf16>, vector<18x1x10xbf16> -> vector<18x18x10xbf16>
    %8 = vector.extract_strided_slice %7 {offsets = [0, 0, 0], sizes = [16, 16, 10], strides = [1, 1, 1]} : vector<18x18x10xbf16> to vector<16x16x10xbf16>
    %9 = vector.shape_cast %8 : vector<16x16x10xbf16> to vector<256x10xbf16>
    %10 = vector.extract_strided_slice %7 {offsets = [0, 1, 0], sizes = [16, 16, 10], strides = [1, 1, 1]} : vector<18x18x10xbf16> to vector<16x16x10xbf16>
    %11 = vector.shape_cast %10 : vector<16x16x10xbf16> to vector<256x10xbf16>
    %12 = vector.extract_strided_slice %7 {offsets = [0, 2, 0], sizes = [16, 16, 10], strides = [1, 1, 1]} : vector<18x18x10xbf16> to vector<16x16x10xbf16>
    %13 = vector.shape_cast %12 : vector<16x16x10xbf16> to vector<256x10xbf16>
    %14 = vector.extract_strided_slice %7 {offsets = [1, 0, 0], sizes = [16, 16, 10], strides = [1, 1, 1]} : vector<18x18x10xbf16> to vector<16x16x10xbf16>
    %15 = vector.shape_cast %14 : vector<16x16x10xbf16> to vector<256x10xbf16>
    %16 = vector.extract_strided_slice %7 {offsets = [1, 1, 0], sizes = [16, 16, 10], strides = [1, 1, 1]} : vector<18x18x10xbf16> to vector<16x16x10xbf16>
    %17 = vector.shape_cast %16 : vector<16x16x10xbf16> to vector<256x10xbf16>
    %18 = vector.extract_strided_slice %7 {offsets = [1, 2, 0], sizes = [16, 16, 10], strides = [1, 1, 1]} : vector<18x18x10xbf16> to vector<16x16x10xbf16>
    %19 = vector.shape_cast %18 : vector<16x16x10xbf16> to vector<256x10xbf16>
    %20 = vector.extract_strided_slice %7 {offsets = [2, 0, 0], sizes = [16, 16, 10], strides = [1, 1, 1]} : vector<18x18x10xbf16> to vector<16x16x10xbf16>
    %21 = vector.shape_cast %20 : vector<16x16x10xbf16> to vector<256x10xbf16>
    %22 = vector.extract_strided_slice %7 {offsets = [2, 1, 0], sizes = [16, 16, 10], strides = [1, 1, 1]} : vector<18x18x10xbf16> to vector<16x16x10xbf16>
    %23 = vector.shape_cast %22 : vector<16x16x10xbf16> to vector<256x10xbf16>
    %24 = vector.extract_strided_slice %7 {offsets = [2, 2, 0], sizes = [16, 16, 10], strides = [1, 1, 1]} : vector<18x18x10xbf16> to vector<16x16x10xbf16>
    %25 = vector.shape_cast %24 : vector<16x16x10xbf16> to vector<256x10xbf16>
    %26 = tpu.concatenate %9, %11, %13, %15, %17, %19, %21, %23, %25 in 1 : vector<256x10xbf16>, vector<256x10xbf16>, vector<256x10xbf16>, vector<256x10xbf16>, vector<256x10xbf16>, vector<256x10xbf16>, vector<256x10xbf16>, vector<256x10xbf16>, vector<256x10xbf16> -> vector<256x90xbf16>
    %cst_6 = arith.constant dense<0.000000e+00> : vector<256x32xf32>
    %27 = tpu.matmul %26, %3, %cst_6 {dimension_numbers = #tpu.dot_dimension_numbers<[1], [0], [0], [1], [0, 0, 1, 1], [], []>} : vector<256x90xbf16>, vector<90x32xbf16>, vector<256x32xf32> -> vector<256x32xf32>
    %c0_7 = arith.constant 0 : index
    %c0_8 = arith.constant 0 : index
    %28 = vector.load %arg3[%c0_7, %c0_8] : memref<1x32xf32, #tpu.memory_space<vmem>>, vector<1x32xf32>
    %29 = vector.broadcast %28 : vector<1x32xf32> to vector<256x32xf32>
    %30 = arith.addf %27, %29 : vector<256x32xf32>
    %cst_9 = arith.constant dense<0.000000e+00> : vector<32xf32>
    %31 = vector.multi_reduction <add>, %30, %cst_9 [0] : vector<256x32xf32> to vector<32xf32>
    %32 = vector.shape_cast %31 : vector<32xf32> to vector<1x32xf32>
    %cst_10 = arith.constant 2.560000e+02 : f32
    %33 = vector.broadcast %cst_10 : f32 to vector<1x32xf32>
    %34 = arith.divf %32, %33 : vector<1x32xf32>
    %c0_11 = arith.constant 0 : index
    %c0_12 = arith.constant 0 : index
    %35 = vector.load %arg4[%c0_11, %c0_12] : memref<1x32xf32, #tpu.memory_space<vmem>>, vector<1x32xf32>
    %36 = arith.mulf %34, %35 : vector<1x32xf32>
    %cst_13 = arith.constant dense<0.000000e+00> : vector<1xf32>
    %37 = vector.multi_reduction <add>, %36, %cst_13 [1] : vector<1x32xf32> to vector<1xf32>
    %38 = vector.shape_cast %37 : vector<1xf32> to vector<1x1xf32>
    %c0_14 = arith.constant 0 : index
    %c0_15 = arith.constant 0 : index
    %39 = vector.load %arg5[%c0_14, %c0_15] : memref<1x1xf32, #tpu.memory_space<vmem>>, vector<1x1xf32>
    %40 = arith.addf %38, %39 : vector<1x1xf32>
    %cst_16 = arith.constant 0.000000e+00 : f32
    %41 = vector.broadcast %cst_16 : f32 to vector<1x1xf32>
    %42 = arith.maximumf %40, %41 : vector<1x1xf32>
    %c0_17 = arith.constant 0 : index
    %c0_18 = arith.constant 0 : index
    %43 = vector.load %arg6[%c0_17, %c0_18] : memref<1x32xf32, #tpu.memory_space<vmem>>, vector<1x32xf32>
    %44 = vector.broadcast %42 : vector<1x1xf32> to vector<1x32xf32>
    %45 = arith.mulf %44, %43 : vector<1x32xf32>
    %cst_19 = arith.constant dense<0.000000e+00> : vector<32xf32>
    %46 = vector.multi_reduction <add>, %45, %cst_19 [0] : vector<1x32xf32> to vector<32xf32>
    %47 = vector.shape_cast %46 : vector<32xf32> to vector<1x32xf32>
    %c0_20 = arith.constant 0 : index
    %c0_21 = arith.constant 0 : index
    %48 = vector.load %arg7[%c0_20, %c0_21] : memref<1x32xf32, #tpu.memory_space<vmem>>, vector<1x32xf32>
    %49 = arith.addf %47, %48 : vector<1x32xf32>
    %50 = arith.negf %49 : vector<1x32xf32>
    %51 = math.exp %50 : vector<1x32xf32>
    %cst_22 = arith.constant 1.000000e+00 : f32
    %52 = vector.broadcast %cst_22 : f32 to vector<1x32xf32>
    %53 = arith.addf %52, %51 : vector<1x32xf32>
    %54 = arith.divf %52, %53 : vector<1x32xf32>
    %55 = vector.broadcast %54 : vector<1x32xf32> to vector<256x32xf32>
    %56 = arith.mulf %30, %55 : vector<256x32xf32>
    %57 = tpu.transpose %56, [1, 0] : vector<256x32xf32> -> vector<32x256xf32>
    %58 = arith.truncf %57 : vector<32x256xf32> to vector<32x256xbf16>
    %c0_23 = arith.constant 0 : index
    %c0_24 = arith.constant 0 : index
    %c0_25 = arith.constant 0 : index
    %59 = vector.load %arg8[%c0_23, %c0_24, %c0_25] : memref<1x32x256xbf16, #tpu.memory_space<vmem>>, vector<1x32x256xbf16>
    %60 = vector.shape_cast %59 : vector<1x32x256xbf16> to vector<32x256xbf16>
    %61 = vector.shape_cast %58 : vector<32x256xbf16> to vector<1x32x256xbf16>
    tpu.vector_store %arg8[%c0_23, %c0_24, %c0_25], %61 {strides = array<i32>} : memref<1x32x256xbf16, #tpu.memory_space<vmem>>, vector<1x32x256xbf16>,
    return
  }
  func.func @transform_0(%arg0: i32) -> (i32, i32, i32, i32) {
    %c0_i32 = arith.constant 0 : i32
    %c0_i32_0 = arith.constant 0 : i32
    %c0_i32_1 = arith.constant 0 : i32
    %c0_i32_2 = arith.constant 0 : i32
    return %arg0, %c0_i32, %c0_i32_0, %c0_i32_1 : i32, i32, i32, i32
  }
  func.func @transform_1(%arg0: i32) -> (i32, i32) {
    %c0_i32 = arith.constant 0 : i32
    %c0_i32_0 = arith.constant 0 : i32
    %c0_i32_1 = arith.constant 0 : i32
    return %c0_i32, %c0_i32_0 : i32, i32
  }
  func.func @transform_2(%arg0: i32) -> (i32, i32) {
    %c0_i32 = arith.constant 0 : i32
    %c0_i32_0 = arith.constant 0 : i32
    %c0_i32_1 = arith.constant 0 : i32
    return %c0_i32, %c0_i32_0 : i32, i32
  }
  func.func @transform_3(%arg0: i32) -> (i32, i32) {
    %c0_i32 = arith.constant 0 : i32
    %c0_i32_0 = arith.constant 0 : i32
    %c0_i32_1 = arith.constant 0 : i32
    return %c0_i32, %c0_i32_0 : i32, i32
  }
  func.func @transform_4(%arg0: i32) -> (i32, i32) {
    %c0_i32 = arith.constant 0 : i32
    %c0_i32_0 = arith.constant 0 : i32
    %c0_i32_1 = arith.constant 0 : i32
    return %c0_i32, %c0_i32_0 : i32, i32
  }
  func.func @transform_5(%arg0: i32) -> (i32, i32) {
    %c0_i32 = arith.constant 0 : i32
    %c0_i32_0 = arith.constant 0 : i32
    %c0_i32_1 = arith.constant 0 : i32
    return %c0_i32, %c0_i32_0 : i32, i32
  }
  func.func @transform_6(%arg0: i32) -> (i32, i32) {
    %c0_i32 = arith.constant 0 : i32
    %c0_i32_0 = arith.constant 0 : i32
    %c0_i32_1 = arith.constant 0 : i32
    return %c0_i32, %c0_i32_0 : i32, i32
  }
  func.func @transform_7(%arg0: i32) -> (i32, i32, i32) {
    %c0_i32 = arith.constant 0 : i32
    %c0_i32_0 = arith.constant 0 : i32
    %c0_i32_1 = arith.constant 0 : i32
    return %arg0, %c0_i32, %c0_i32_0 : i32, i32, i32
  }
}

module attributes {stable_mosaic.version = 11 : i64} {
  func.func @_cab1_kernel(%arg0: i32, %arg1: memref<1x16x16x32xf32, #tpu.memory_space<vmem>>, %arg2: memref<288x10xbf16, #tpu.memory_space<vmem>>, %arg3: memref<1x10xf32, #tpu.memory_space<vmem>>, %arg4: memref<1x16x16x10xbf16, #tpu.memory_space<vmem>>) attributes {dimension_semantics = [#tpu.dimension_semantics<parallel>], iteration_bounds = array<i64: 2>, scalar_prefetch = 0 : i64, scratch_operands = 0 : i64, tpu.core_type = #tpu.core_type<tc>, window_params = [{transform_indices = @transform_0, window_bounds = array<i64: 1, 16, 16, 32>}, {pipeline_mode = #tpu.pipeline_mode<synchronous>, transform_indices = @transform_1, window_bounds = array<i64: 288, 10>}, {pipeline_mode = #tpu.pipeline_mode<synchronous>, transform_indices = @transform_2, window_bounds = array<i64: 1, 10>}, {transform_indices = @transform_3, window_bounds = array<i64: 1, 16, 16, 10>}]} {
    %c0 = arith.constant 0 : index
    %c0_0 = arith.constant 0 : index
    %c0_1 = arith.constant 0 : index
    %c0_2 = arith.constant 0 : index
    %0 = vector.load %arg1[%c0, %c0_0, %c0_1, %c0_2] : memref<1x16x16x32xf32, #tpu.memory_space<vmem>>, vector<1x16x16x32xf32>
    %1 = vector.shape_cast %0 : vector<1x16x16x32xf32> to vector<16x16x32xf32>
    %2 = arith.truncf %1 : vector<16x16x32xf32> to vector<16x16x32xbf16>
    %c0_3 = arith.constant 0 : index
    %c0_4 = arith.constant 0 : index
    %3 = vector.load %arg2[%c0_3, %c0_4] : memref<288x10xbf16, #tpu.memory_space<vmem>>, vector<288x10xbf16>
    %cst = arith.constant 0.000000e+00 : bf16
    %4 = vector.broadcast %cst : bf16 to vector<1x16x32xbf16>
    %5 = tpu.concatenate %4, %2, %4 in 0 : vector<1x16x32xbf16>, vector<16x16x32xbf16>, vector<1x16x32xbf16> -> vector<18x16x32xbf16>
    %cst_5 = arith.constant 0.000000e+00 : bf16
    %6 = vector.broadcast %cst_5 : bf16 to vector<18x1x32xbf16>
    %7 = tpu.concatenate %6, %5, %6 in 1 : vector<18x1x32xbf16>, vector<18x16x32xbf16>, vector<18x1x32xbf16> -> vector<18x18x32xbf16>
    %8 = vector.extract_strided_slice %7 {offsets = [0, 0, 0], sizes = [16, 16, 32], strides = [1, 1, 1]} : vector<18x18x32xbf16> to vector<16x16x32xbf16>
    %9 = vector.shape_cast %8 : vector<16x16x32xbf16> to vector<256x32xbf16>
    %10 = vector.extract_strided_slice %7 {offsets = [0, 1, 0], sizes = [16, 16, 32], strides = [1, 1, 1]} : vector<18x18x32xbf16> to vector<16x16x32xbf16>
    %11 = vector.shape_cast %10 : vector<16x16x32xbf16> to vector<256x32xbf16>
    %12 = vector.extract_strided_slice %7 {offsets = [0, 2, 0], sizes = [16, 16, 32], strides = [1, 1, 1]} : vector<18x18x32xbf16> to vector<16x16x32xbf16>
    %13 = vector.shape_cast %12 : vector<16x16x32xbf16> to vector<256x32xbf16>
    %14 = vector.extract_strided_slice %7 {offsets = [1, 0, 0], sizes = [16, 16, 32], strides = [1, 1, 1]} : vector<18x18x32xbf16> to vector<16x16x32xbf16>
    %15 = vector.shape_cast %14 : vector<16x16x32xbf16> to vector<256x32xbf16>
    %16 = vector.extract_strided_slice %7 {offsets = [1, 1, 0], sizes = [16, 16, 32], strides = [1, 1, 1]} : vector<18x18x32xbf16> to vector<16x16x32xbf16>
    %17 = vector.shape_cast %16 : vector<16x16x32xbf16> to vector<256x32xbf16>
    %18 = vector.extract_strided_slice %7 {offsets = [1, 2, 0], sizes = [16, 16, 32], strides = [1, 1, 1]} : vector<18x18x32xbf16> to vector<16x16x32xbf16>
    %19 = vector.shape_cast %18 : vector<16x16x32xbf16> to vector<256x32xbf16>
    %20 = vector.extract_strided_slice %7 {offsets = [2, 0, 0], sizes = [16, 16, 32], strides = [1, 1, 1]} : vector<18x18x32xbf16> to vector<16x16x32xbf16>
    %21 = vector.shape_cast %20 : vector<16x16x32xbf16> to vector<256x32xbf16>
    %22 = vector.extract_strided_slice %7 {offsets = [2, 1, 0], sizes = [16, 16, 32], strides = [1, 1, 1]} : vector<18x18x32xbf16> to vector<16x16x32xbf16>
    %23 = vector.shape_cast %22 : vector<16x16x32xbf16> to vector<256x32xbf16>
    %24 = vector.extract_strided_slice %7 {offsets = [2, 2, 0], sizes = [16, 16, 32], strides = [1, 1, 1]} : vector<18x18x32xbf16> to vector<16x16x32xbf16>
    %25 = vector.shape_cast %24 : vector<16x16x32xbf16> to vector<256x32xbf16>
    %26 = tpu.concatenate %9, %11, %13, %15, %17, %19, %21, %23, %25 in 1 : vector<256x32xbf16>, vector<256x32xbf16>, vector<256x32xbf16>, vector<256x32xbf16>, vector<256x32xbf16>, vector<256x32xbf16>, vector<256x32xbf16>, vector<256x32xbf16>, vector<256x32xbf16> -> vector<256x288xbf16>
    %cst_6 = arith.constant dense<0.000000e+00> : vector<256x10xf32>
    %27 = tpu.matmul %26, %3, %cst_6 {dimension_numbers = #tpu.dot_dimension_numbers<[1], [0], [0], [1], [0, 0, 1, 1], [], []>} : vector<256x288xbf16>, vector<288x10xbf16>, vector<256x10xf32> -> vector<256x10xf32>
    %c0_7 = arith.constant 0 : index
    %c0_8 = arith.constant 0 : index
    %28 = vector.load %arg3[%c0_7, %c0_8] : memref<1x10xf32, #tpu.memory_space<vmem>>, vector<1x10xf32>
    %29 = vector.broadcast %28 : vector<1x10xf32> to vector<256x10xf32>
    %30 = arith.addf %27, %29 : vector<256x10xf32>
    %31 = vector.shape_cast %30 : vector<256x10xf32> to vector<16x16x10xf32>
    %32 = arith.truncf %31 : vector<16x16x10xf32> to vector<16x16x10xbf16>
    %c0_9 = arith.constant 0 : index
    %c0_10 = arith.constant 0 : index
    %c0_11 = arith.constant 0 : index
    %c0_12 = arith.constant 0 : index
    %33 = vector.load %arg4[%c0_9, %c0_10, %c0_11, %c0_12] : memref<1x16x16x10xbf16, #tpu.memory_space<vmem>>, vector<1x16x16x10xbf16>
    %34 = vector.shape_cast %33 : vector<1x16x16x10xbf16> to vector<16x16x10xbf16>
    %35 = vector.shape_cast %32 : vector<16x16x10xbf16> to vector<1x16x16x10xbf16>
    tpu.vector_store %arg4[%c0_9, %c0_10, %c0_11, %c0_12], %35 {strides = array<i32>} : memref<1x16x16x10xbf16, #tpu.memory_space<vmem>>, vector<1x16x16x10xbf16>,
    return
  }
  func.func @transform_0(%arg0: i32) -> (i32, i32, i32, i32) {
    %c0_i32 = arith.constant 0 : i32
    %c0_i32_0 = arith.constant 0 : i32
    %c0_i32_1 = arith.constant 0 : i32
    %c0_i32_2 = arith.constant 0 : i32
    return %arg0, %c0_i32, %c0_i32_0, %c0_i32_1 : i32, i32, i32, i32
  }
  func.func @transform_1(%arg0: i32) -> (i32, i32) {
    %c0_i32 = arith.constant 0 : i32
    %c0_i32_0 = arith.constant 0 : i32
    %c0_i32_1 = arith.constant 0 : i32
    return %c0_i32, %c0_i32_0 : i32, i32
  }
  func.func @transform_2(%arg0: i32) -> (i32, i32) {
    %c0_i32 = arith.constant 0 : i32
    %c0_i32_0 = arith.constant 0 : i32
    %c0_i32_1 = arith.constant 0 : i32
    return %c0_i32, %c0_i32_0 : i32, i32
  }
  func.func @transform_3(%arg0: i32) -> (i32, i32, i32, i32) {
    %c0_i32 = arith.constant 0 : i32
    %c0_i32_0 = arith.constant 0 : i32
    %c0_i32_1 = arith.constant 0 : i32
    %c0_i32_2 = arith.constant 0 : i32
    return %arg0, %c0_i32, %c0_i32_0, %c0_i32_1 : i32, i32, i32, i32
  }
}

module attributes {stable_mosaic.version = 11 : i64} {
  func.func @_reduce_dwt_kernel(%arg0: i32, %arg1: i32, %arg2: memref<1x16x8x64xf32, #tpu.memory_space<vmem>>, %arg3: memref<32x8xbf16, #tpu.memory_space<vmem>>, %arg4: memref<1x8xf32, #tpu.memory_space<vmem>>, %arg5: memref<1x8xf32, #tpu.memory_space<vmem>>, %arg6: memref<1x8x8x32xbf16, #tpu.memory_space<vmem>>) attributes {dimension_semantics = [#tpu.dimension_semantics<parallel>, #tpu.dimension_semantics<parallel>], iteration_bounds = array<i64: 2, 1>, scalar_prefetch = 0 : i64, scratch_operands = 0 : i64, tpu.core_type = #tpu.core_type<tc>, window_params = [{transform_indices = @transform_0, window_bounds = array<i64: 1, 16, 8, 64>}, {pipeline_mode = #tpu.pipeline_mode<synchronous>, transform_indices = @transform_1, window_bounds = array<i64: 32, 8>}, {pipeline_mode = #tpu.pipeline_mode<synchronous>, transform_indices = @transform_2, window_bounds = array<i64: 1, 8>}, {pipeline_mode = #tpu.pipeline_mode<synchronous>, transform_indices = @transform_3, window_bounds = array<i64: 1, 8>}, {transform_indices = @transform_4, window_bounds = array<i64: 1, 8, 8, 32>}]} {
    %c0 = arith.constant 0 : index
    %c0_0 = arith.constant 0 : index
    %c0_1 = arith.constant 0 : index
    %c0_2 = arith.constant 0 : index
    %0 = vector.load %arg2[%c0, %c0_0, %c0_1, %c0_2] : memref<1x16x8x64xf32, #tpu.memory_space<vmem>>, vector<1x16x8x64xf32>
    %1 = vector.shape_cast %0 : vector<1x16x8x64xf32> to vector<16x8x64xf32>
    %2 = arith.truncf %1 : vector<16x8x64xf32> to vector<16x8x64xbf16>
    %3 = vector.shape_cast %2 : vector<16x8x64xbf16> to vector<8x2x8x64xbf16>
    %4 = vector.extract_strided_slice %3 {offsets = [0, 0, 0, 0], sizes = [8, 1, 8, 32], strides = [1, 1, 1, 1]} : vector<8x2x8x64xbf16> to vector<8x1x8x32xbf16>
    %5 = vector.shape_cast %4 : vector<8x1x8x32xbf16> to vector<8x8x32xbf16>
    %6 = vector.shape_cast %5 : vector<8x8x32xbf16> to vector<64x32xbf16>
    %7 = vector.extract_strided_slice %3 {offsets = [0, 0, 0, 32], sizes = [8, 1, 8, 32], strides = [1, 1, 1, 1]} : vector<8x2x8x64xbf16> to vector<8x1x8x32xbf16>
    %8 = vector.shape_cast %7 : vector<8x1x8x32xbf16> to vector<8x8x32xbf16>
    %9 = vector.shape_cast %8 : vector<8x8x32xbf16> to vector<64x32xbf16>
    %10 = vector.extract_strided_slice %3 {offsets = [0, 1, 0, 0], sizes = [8, 1, 8, 32], strides = [1, 1, 1, 1]} : vector<8x2x8x64xbf16> to vector<8x1x8x32xbf16>
    %11 = vector.shape_cast %10 : vector<8x1x8x32xbf16> to vector<8x8x32xbf16>
    %12 = vector.shape_cast %11 : vector<8x8x32xbf16> to vector<64x32xbf16>
    %13 = vector.extract_strided_slice %3 {offsets = [0, 1, 0, 32], sizes = [8, 1, 8, 32], strides = [1, 1, 1, 1]} : vector<8x2x8x64xbf16> to vector<8x1x8x32xbf16>
    %14 = vector.shape_cast %13 : vector<8x1x8x32xbf16> to vector<8x8x32xbf16>
    %15 = vector.shape_cast %14 : vector<8x8x32xbf16> to vector<64x32xbf16>
    %16 = tpu.concatenate %6, %9, %12, %15 in 0 : vector<64x32xbf16>, vector<64x32xbf16>, vector<64x32xbf16>, vector<64x32xbf16> -> vector<256x32xbf16>
    %c0_3 = arith.constant 0 : index
    %c0_4 = arith.constant 0 : index
    %17 = vector.load %arg3[%c0_3, %c0_4] : memref<32x8xbf16, #tpu.memory_space<vmem>>, vector<32x8xbf16>
    %cst = arith.constant dense<0.000000e+00> : vector<256x8xf32>
    %18 = tpu.matmul %16, %17, %cst {dimension_numbers = #tpu.dot_dimension_numbers<[1], [0], [0], [1], [0, 0, 1, 1], [], []>} : vector<256x32xbf16>, vector<32x8xbf16>, vector<256x8xf32> -> vector<256x8xf32>
    %c0_5 = arith.constant 0 : index
    %c0_6 = arith.constant 0 : index
    %19 = vector.load %arg4[%c0_5, %c0_6] : memref<1x8xf32, #tpu.memory_space<vmem>>, vector<1x8xf32>
    %20 = vector.broadcast %19 : vector<1x8xf32> to vector<256x8xf32>
    %21 = arith.mulf %18, %20 : vector<256x8xf32>
    %c0_7 = arith.constant 0 : index
    %c0_8 = arith.constant 0 : index
    %22 = vector.load %arg5[%c0_7, %c0_8] : memref<1x8xf32, #tpu.memory_space<vmem>>, vector<1x8xf32>
    %23 = vector.broadcast %22 : vector<1x8xf32> to vector<256x8xf32>
    %24 = arith.addf %21, %23 : vector<256x8xf32>
    %cst_9 = arith.constant 0.000000e+00 : f32
    %25 = vector.broadcast %cst_9 : f32 to vector<256x8xf32>
    %26 = arith.maximumf %24, %25 : vector<256x8xf32>
    %27 = vector.extract_strided_slice %26 {offsets = [0, 0], sizes = [64, 8], strides = [1, 1]} : vector<256x8xf32> to vector<64x8xf32>
    %28 = vector.extract_strided_slice %26 {offsets = [64, 0], sizes = [64, 8], strides = [1, 1]} : vector<256x8xf32> to vector<64x8xf32>
    %29 = vector.extract_strided_slice %26 {offsets = [128, 0], sizes = [64, 8], strides = [1, 1]} : vector<256x8xf32> to vector<64x8xf32>
    %30 = vector.extract_strided_slice %26 {offsets = [192, 0], sizes = [64, 8], strides = [1, 1]} : vector<256x8xf32> to vector<64x8xf32>
    %31 = arith.addf %27, %28 : vector<64x8xf32>
    %32 = arith.addf %31, %29 : vector<64x8xf32>
    %33 = arith.addf %32, %30 : vector<64x8xf32>
    %cst_10 = arith.constant 5.000000e-01 : f32
    %34 = vector.broadcast %cst_10 : f32 to vector<64x8xf32>
    %35 = arith.mulf %34, %33 : vector<64x8xf32>
    %36 = arith.addf %27, %28 : vector<64x8xf32>
    %37 = arith.subf %36, %29 : vector<64x8xf32>
    %38 = arith.subf %37, %30 : vector<64x8xf32>
    %cst_11 = arith.constant 5.000000e-01 : f32
    %39 = vector.broadcast %cst_11 : f32 to vector<64x8xf32>
    %40 = arith.mulf %39, %38 : vector<64x8xf32>
    %41 = arith.subf %27, %28 : vector<64x8xf32>
    %42 = arith.addf %41, %29 : vector<64x8xf32>
    %43 = arith.subf %42, %30 : vector<64x8xf32>
    %cst_12 = arith.constant 5.000000e-01 : f32
    %44 = vector.broadcast %cst_12 : f32 to vector<64x8xf32>
    %45 = arith.mulf %44, %43 : vector<64x8xf32>
    %46 = arith.subf %27, %28 : vector<64x8xf32>
    %47 = arith.subf %46, %29 : vector<64x8xf32>
    %48 = arith.addf %47, %30 : vector<64x8xf32>
    %cst_13 = arith.constant 5.000000e-01 : f32
    %49 = vector.broadcast %cst_13 : f32 to vector<64x8xf32>
    %50 = arith.mulf %49, %48 : vector<64x8xf32>
    %51 = tpu.concatenate %35, %40, %45, %50 in 1 : vector<64x8xf32>, vector<64x8xf32>, vector<64x8xf32>, vector<64x8xf32> -> vector<64x32xf32>
    %52 = vector.shape_cast %51 : vector<64x32xf32> to vector<8x8x32xf32>
    %53 = arith.truncf %52 : vector<8x8x32xf32> to vector<8x8x32xbf16>
    %c0_14 = arith.constant 0 : index
    %c0_15 = arith.constant 0 : index
    %c0_16 = arith.constant 0 : index
    %c0_17 = arith.constant 0 : index
    %54 = vector.load %arg6[%c0_14, %c0_15, %c0_16, %c0_17] : memref<1x8x8x32xbf16, #tpu.memory_space<vmem>>, vector<1x8x8x32xbf16>
    %55 = vector.shape_cast %54 : vector<1x8x8x32xbf16> to vector<8x8x32xbf16>
    %56 = vector.shape_cast %53 : vector<8x8x32xbf16> to vector<1x8x8x32xbf16>
    tpu.vector_store %arg6[%c0_14, %c0_15, %c0_16, %c0_17], %56 {strides = array<i32>} : memref<1x8x8x32xbf16, #tpu.memory_space<vmem>>, vector<1x8x8x32xbf16>,
    return
  }
  func.func @transform_0(%arg0: i32, %arg1: i32) -> (i32, i32, i32, i32) {
    %c0_i32 = arith.constant 0 : i32
    %c0_i32_0 = arith.constant 0 : i32
    %c0_i32_1 = arith.constant 0 : i32
    return %arg0, %arg1, %c0_i32, %c0_i32_0 : i32, i32, i32, i32
  }
  func.func @transform_1(%arg0: i32, %arg1: i32) -> (i32, i32) {
    %c0_i32 = arith.constant 0 : i32
    %c0_i32_0 = arith.constant 0 : i32
    %c0_i32_1 = arith.constant 0 : i32
    return %c0_i32, %c0_i32_0 : i32, i32
  }
  func.func @transform_2(%arg0: i32, %arg1: i32) -> (i32, i32) {
    %c0_i32 = arith.constant 0 : i32
    %c0_i32_0 = arith.constant 0 : i32
    %c0_i32_1 = arith.constant 0 : i32
    return %c0_i32, %c0_i32_0 : i32, i32
  }
  func.func @transform_3(%arg0: i32, %arg1: i32) -> (i32, i32) {
    %c0_i32 = arith.constant 0 : i32
    %c0_i32_0 = arith.constant 0 : i32
    %c0_i32_1 = arith.constant 0 : i32
    return %c0_i32, %c0_i32_0 : i32, i32
  }
  func.func @transform_4(%arg0: i32, %arg1: i32) -> (i32, i32, i32, i32) {
    %c0_i32 = arith.constant 0 : i32
    %c0_i32_0 = arith.constant 0 : i32
    %c0_i32_1 = arith.constant 0 : i32
    return %arg0, %arg1, %c0_i32, %c0_i32_0 : i32, i32, i32, i32
  }
}

module attributes {stable_mosaic.version = 11 : i64} {
  func.func @_filter_idwt_kernel(%arg0: i32, %arg1: memref<1x8x8x32xbf16, #tpu.memory_space<vmem>>, %arg2: memref<288x32xbf16, #tpu.memory_space<vmem>>, %arg3: memref<1x32xf32, #tpu.memory_space<vmem>>, %arg4: memref<1x32xf32, #tpu.memory_space<vmem>>, %arg5: memref<1x8x2x8x16xbf16, #tpu.memory_space<vmem>>) attributes {dimension_semantics = [#tpu.dimension_semantics<parallel>], iteration_bounds = array<i64: 2>, scalar_prefetch = 0 : i64, scratch_operands = 0 : i64, tpu.core_type = #tpu.core_type<tc>, window_params = [{transform_indices = @transform_0, window_bounds = array<i64: 1, 8, 8, 32>}, {pipeline_mode = #tpu.pipeline_mode<synchronous>, transform_indices = @transform_1, window_bounds = array<i64: 288, 32>}, {pipeline_mode = #tpu.pipeline_mode<synchronous>, transform_indices = @transform_2, window_bounds = array<i64: 1, 32>}, {pipeline_mode = #tpu.pipeline_mode<synchronous>, transform_indices = @transform_3, window_bounds = array<i64: 1, 32>}, {transform_indices = @transform_4, window_bounds = array<i64: 1, 8, 2, 8, 16>}]} {
    %c0 = arith.constant 0 : index
    %c0_0 = arith.constant 0 : index
    %c0_1 = arith.constant 0 : index
    %c0_2 = arith.constant 0 : index
    %0 = vector.load %arg1[%c0, %c0_0, %c0_1, %c0_2] : memref<1x8x8x32xbf16, #tpu.memory_space<vmem>>, vector<1x8x8x32xbf16>
    %1 = vector.shape_cast %0 : vector<1x8x8x32xbf16> to vector<8x8x32xbf16>
    %c0_3 = arith.constant 0 : index
    %c0_4 = arith.constant 0 : index
    %2 = vector.load %arg2[%c0_3, %c0_4] : memref<288x32xbf16, #tpu.memory_space<vmem>>, vector<288x32xbf16>
    %cst = arith.constant 0.000000e+00 : bf16
    %3 = vector.broadcast %cst : bf16 to vector<1x8x32xbf16>
    %4 = tpu.concatenate %3, %1, %3 in 0 : vector<1x8x32xbf16>, vector<8x8x32xbf16>, vector<1x8x32xbf16> -> vector<10x8x32xbf16>
    %cst_5 = arith.constant 0.000000e+00 : bf16
    %5 = vector.broadcast %cst_5 : bf16 to vector<10x1x32xbf16>
    %6 = tpu.concatenate %5, %4, %5 in 1 : vector<10x1x32xbf16>, vector<10x8x32xbf16>, vector<10x1x32xbf16> -> vector<10x10x32xbf16>
    %7 = vector.extract_strided_slice %6 {offsets = [0, 0, 0], sizes = [8, 8, 32], strides = [1, 1, 1]} : vector<10x10x32xbf16> to vector<8x8x32xbf16>
    %8 = vector.shape_cast %7 : vector<8x8x32xbf16> to vector<64x32xbf16>
    %9 = vector.extract_strided_slice %6 {offsets = [0, 1, 0], sizes = [8, 8, 32], strides = [1, 1, 1]} : vector<10x10x32xbf16> to vector<8x8x32xbf16>
    %10 = vector.shape_cast %9 : vector<8x8x32xbf16> to vector<64x32xbf16>
    %11 = vector.extract_strided_slice %6 {offsets = [0, 2, 0], sizes = [8, 8, 32], strides = [1, 1, 1]} : vector<10x10x32xbf16> to vector<8x8x32xbf16>
    %12 = vector.shape_cast %11 : vector<8x8x32xbf16> to vector<64x32xbf16>
    %13 = vector.extract_strided_slice %6 {offsets = [1, 0, 0], sizes = [8, 8, 32], strides = [1, 1, 1]} : vector<10x10x32xbf16> to vector<8x8x32xbf16>
    %14 = vector.shape_cast %13 : vector<8x8x32xbf16> to vector<64x32xbf16>
    %15 = vector.extract_strided_slice %6 {offsets = [1, 1, 0], sizes = [8, 8, 32], strides = [1, 1, 1]} : vector<10x10x32xbf16> to vector<8x8x32xbf16>
    %16 = vector.shape_cast %15 : vector<8x8x32xbf16> to vector<64x32xbf16>
    %17 = vector.extract_strided_slice %6 {offsets = [1, 2, 0], sizes = [8, 8, 32], strides = [1, 1, 1]} : vector<10x10x32xbf16> to vector<8x8x32xbf16>
    %18 = vector.shape_cast %17 : vector<8x8x32xbf16> to vector<64x32xbf16>
    %19 = vector.extract_strided_slice %6 {offsets = [2, 0, 0], sizes = [8, 8, 32], strides = [1, 1, 1]} : vector<10x10x32xbf16> to vector<8x8x32xbf16>
    %20 = vector.shape_cast %19 : vector<8x8x32xbf16> to vector<64x32xbf16>
    %21 = vector.extract_strided_slice %6 {offsets = [2, 1, 0], sizes = [8, 8, 32], strides = [1, 1, 1]} : vector<10x10x32xbf16> to vector<8x8x32xbf16>
    %22 = vector.shape_cast %21 : vector<8x8x32xbf16> to vector<64x32xbf16>
    %23 = vector.extract_strided_slice %6 {offsets = [2, 2, 0], sizes = [8, 8, 32], strides = [1, 1, 1]} : vector<10x10x32xbf16> to vector<8x8x32xbf16>
    %24 = vector.shape_cast %23 : vector<8x8x32xbf16> to vector<64x32xbf16>
    %25 = tpu.concatenate %8, %10, %12, %14, %16, %18, %20, %22, %24 in 1 : vector<64x32xbf16>, vector<64x32xbf16>, vector<64x32xbf16>, vector<64x32xbf16>, vector<64x32xbf16>, vector<64x32xbf16>, vector<64x32xbf16>, vector<64x32xbf16>, vector<64x32xbf16> -> vector<64x288xbf16>
    %cst_6 = arith.constant dense<0.000000e+00> : vector<64x32xf32>
    %26 = tpu.matmul %25, %2, %cst_6 {dimension_numbers = #tpu.dot_dimension_numbers<[1], [0], [0], [1], [0, 0, 1, 1], [], []>} : vector<64x288xbf16>, vector<288x32xbf16>, vector<64x32xf32> -> vector<64x32xf32>
    %c0_7 = arith.constant 0 : index
    %c0_8 = arith.constant 0 : index
    %27 = vector.load %arg3[%c0_7, %c0_8] : memref<1x32xf32, #tpu.memory_space<vmem>>, vector<1x32xf32>
    %28 = vector.broadcast %27 : vector<1x32xf32> to vector<64x32xf32>
    %29 = arith.mulf %26, %28 : vector<64x32xf32>
    %c0_9 = arith.constant 0 : index
    %c0_10 = arith.constant 0 : index
    %30 = vector.load %arg4[%c0_9, %c0_10] : memref<1x32xf32, #tpu.memory_space<vmem>>, vector<1x32xf32>
    %31 = vector.broadcast %30 : vector<1x32xf32> to vector<64x32xf32>
    %32 = arith.addf %29, %31 : vector<64x32xf32>
    %cst_11 = arith.constant 0.000000e+00 : f32
    %33 = vector.broadcast %cst_11 : f32 to vector<64x32xf32>
    %34 = arith.maximumf %32, %33 : vector<64x32xf32>
    %35 = vector.extract_strided_slice %34 {offsets = [0, 0], sizes = [64, 8], strides = [1, 1]} : vector<64x32xf32> to vector<64x8xf32>
    %36 = vector.extract_strided_slice %34 {offsets = [0, 8], sizes = [64, 8], strides = [1, 1]} : vector<64x32xf32> to vector<64x8xf32>
    %37 = vector.extract_strided_slice %34 {offsets = [0, 16], sizes = [64, 8], strides = [1, 1]} : vector<64x32xf32> to vector<64x8xf32>
    %38 = vector.extract_strided_slice %34 {offsets = [0, 24], sizes = [64, 8], strides = [1, 1]} : vector<64x32xf32> to vector<64x8xf32>
    %39 = arith.addf %35, %36 : vector<64x8xf32>
    %40 = arith.addf %39, %37 : vector<64x8xf32>
    %41 = arith.addf %40, %38 : vector<64x8xf32>
    %cst_12 = arith.constant 5.000000e-01 : f32
    %42 = vector.broadcast %cst_12 : f32 to vector<64x8xf32>
    %43 = arith.mulf %42, %41 : vector<64x8xf32>
    %44 = arith.addf %35, %36 : vector<64x8xf32>
    %45 = arith.subf %44, %37 : vector<64x8xf32>
    %46 = arith.subf %45, %38 : vector<64x8xf32>
    %cst_13 = arith.constant 5.000000e-01 : f32
    %47 = vector.broadcast %cst_13 : f32 to vector<64x8xf32>
    %48 = arith.mulf %47, %46 : vector<64x8xf32>
    %49 = arith.subf %35, %36 : vector<64x8xf32>
    %50 = arith.addf %49, %37 : vector<64x8xf32>
    %51 = arith.subf %50, %38 : vector<64x8xf32>
    %cst_14 = arith.constant 5.000000e-01 : f32
    %52 = vector.broadcast %cst_14 : f32 to vector<64x8xf32>
    %53 = arith.mulf %52, %51 : vector<64x8xf32>
    %54 = arith.subf %35, %36 : vector<64x8xf32>
    %55 = arith.subf %54, %37 : vector<64x8xf32>
    %56 = arith.addf %55, %38 : vector<64x8xf32>
    %cst_15 = arith.constant 5.000000e-01 : f32
    %57 = vector.broadcast %cst_15 : f32 to vector<64x8xf32>
    %58 = arith.mulf %57, %56 : vector<64x8xf32>
    %59 = tpu.concatenate %43, %48 in 1 : vector<64x8xf32>, vector<64x8xf32> -> vector<64x16xf32>
    %60 = vector.shape_cast %59 : vector<64x16xf32> to vector<8x8x16xf32>
    %61 = tpu.concatenate %53, %58 in 1 : vector<64x8xf32>, vector<64x8xf32> -> vector<64x16xf32>
    %62 = vector.shape_cast %61 : vector<64x16xf32> to vector<8x8x16xf32>
    %63 = arith.truncf %60 : vector<8x8x16xf32> to vector<8x8x16xbf16>
    %c0_16 = arith.constant 0 : index
    %c0_17 = arith.constant 0 : index
    %c0_18 = arith.constant 0 : index
    %c0_19 = arith.constant 0 : index
    %c0_20 = arith.constant 0 : index
    %64 = vector.load %arg5[%c0_16, %c0_17, %c0_18, %c0_19, %c0_20] : memref<1x8x2x8x16xbf16, #tpu.memory_space<vmem>>, vector<1x8x1x8x16xbf16>
    %65 = vector.shape_cast %64 : vector<1x8x1x8x16xbf16> to vector<8x8x16xbf16>
    %66 = vector.shape_cast %63 : vector<8x8x16xbf16> to vector<1x8x1x8x16xbf16>
    tpu.vector_store %arg5[%c0_16, %c0_17, %c0_18, %c0_19, %c0_20], %66 {strides = array<i32>} : memref<1x8x2x8x16xbf16, #tpu.memory_space<vmem>>, vector<1x8x1x8x16xbf16>,
    %67 = arith.truncf %62 : vector<8x8x16xf32> to vector<8x8x16xbf16>
    %c0_21 = arith.constant 0 : index
    %c0_22 = arith.constant 0 : index
    %c1 = arith.constant 1 : index
    %c0_23 = arith.constant 0 : index
    %c0_24 = arith.constant 0 : index
    %68 = vector.load %arg5[%c0_21, %c0_22, %c1, %c0_23, %c0_24] : memref<1x8x2x8x16xbf16, #tpu.memory_space<vmem>>, vector<1x8x1x8x16xbf16>
    %69 = vector.shape_cast %68 : vector<1x8x1x8x16xbf16> to vector<8x8x16xbf16>
    %70 = vector.shape_cast %67 : vector<8x8x16xbf16> to vector<1x8x1x8x16xbf16>
    tpu.vector_store %arg5[%c0_21, %c0_22, %c1, %c0_23, %c0_24], %70 {strides = array<i32>} : memref<1x8x2x8x16xbf16, #tpu.memory_space<vmem>>, vector<1x8x1x8x16xbf16>,
    return
  }
  func.func @transform_0(%arg0: i32) -> (i32, i32, i32, i32) {
    %c0_i32 = arith.constant 0 : i32
    %c0_i32_0 = arith.constant 0 : i32
    %c0_i32_1 = arith.constant 0 : i32
    %c0_i32_2 = arith.constant 0 : i32
    return %arg0, %c0_i32, %c0_i32_0, %c0_i32_1 : i32, i32, i32, i32
  }
  func.func @transform_1(%arg0: i32) -> (i32, i32) {
    %c0_i32 = arith.constant 0 : i32
    %c0_i32_0 = arith.constant 0 : i32
    %c0_i32_1 = arith.constant 0 : i32
    return %c0_i32, %c0_i32_0 : i32, i32
  }
  func.func @transform_2(%arg0: i32) -> (i32, i32) {
    %c0_i32 = arith.constant 0 : i32
    %c0_i32_0 = arith.constant 0 : i32
    %c0_i32_1 = arith.constant 0 : i32
    return %c0_i32, %c0_i32_0 : i32, i32
  }
  func.func @transform_3(%arg0: i32) -> (i32, i32) {
    %c0_i32 = arith.constant 0 : i32
    %c0_i32_0 = arith.constant 0 : i32
    %c0_i32_1 = arith.constant 0 : i32
    return %c0_i32, %c0_i32_0 : i32, i32
  }
  func.func @transform_4(%arg0: i32) -> (i32, i32, i32, i32, i32) {
    %c0_i32 = arith.constant 0 : i32
    %c0_i32_0 = arith.constant 0 : i32
    %c0_i32_1 = arith.constant 0 : i32
    %c0_i32_2 = arith.constant 0 : i32
    %c0_i32_3 = arith.constant 0 : i32
    return %arg0, %c0_i32, %c0_i32_0, %c0_i32_1, %c0_i32_2 : i32, i32, i32, i32, i32
  }
}

module attributes {stable_mosaic.version = 11 : i64} {
  func.func @_proj_kernel(%arg0: i32, %arg1: memref<256x32xbf16, #tpu.memory_space<vmem>>, %arg2: memref<256x8xbf16, #tpu.memory_space<vmem>>, %arg3: memref<32x32xbf16, #tpu.memory_space<vmem>>, %arg4: memref<8x32xbf16, #tpu.memory_space<vmem>>, %arg5: memref<1x32xf32, #tpu.memory_space<vmem>>, %arg6: memref<256x32xf32, #tpu.memory_space<vmem>>) attributes {dimension_semantics = [#tpu.dimension_semantics<parallel>], iteration_bounds = array<i64: 2>, scalar_prefetch = 0 : i64, scratch_operands = 0 : i64, tpu.core_type = #tpu.core_type<tc>, window_params = [{transform_indices = @transform_0, window_bounds = array<i64: 256, 32>}, {transform_indices = @transform_1, window_bounds = array<i64: 256, 8>}, {pipeline_mode = #tpu.pipeline_mode<synchronous>, transform_indices = @transform_2, window_bounds = array<i64: 32, 32>}, {pipeline_mode = #tpu.pipeline_mode<synchronous>, transform_indices = @transform_3, window_bounds = array<i64: 8, 32>}, {pipeline_mode = #tpu.pipeline_mode<synchronous>, transform_indices = @transform_4, window_bounds = array<i64: 1, 32>}, {transform_indices = @transform_5, window_bounds = array<i64: 256, 32>}]} {
    %c0 = arith.constant 0 : index
    %c0_0 = arith.constant 0 : index
    %0 = vector.load %arg1[%c0, %c0_0] : memref<256x32xbf16, #tpu.memory_space<vmem>>, vector<256x32xbf16>
    %c0_1 = arith.constant 0 : index
    %c0_2 = arith.constant 0 : index
    %1 = vector.load %arg3[%c0_1, %c0_2] : memref<32x32xbf16, #tpu.memory_space<vmem>>, vector<32x32xbf16>
    %cst = arith.constant dense<0.000000e+00> : vector<256x32xf32>
    %2 = tpu.matmul %0, %1, %cst {dimension_numbers = #tpu.dot_dimension_numbers<[1], [0], [0], [1], [0, 0, 1, 1], [], []>} : vector<256x32xbf16>, vector<32x32xbf16>, vector<256x32xf32> -> vector<256x32xf32>
    %c0_3 = arith.constant 0 : index
    %c0_4 = arith.constant 0 : index
    %3 = vector.load %arg2[%c0_3, %c0_4] : memref<256x8xbf16, #tpu.memory_space<vmem>>, vector<256x8xbf16>
    %c0_5 = arith.constant 0 : index
    %c0_6 = arith.constant 0 : index
    %4 = vector.load %arg4[%c0_5, %c0_6] : memref<8x32xbf16, #tpu.memory_space<vmem>>, vector<8x32xbf16>
    %cst_7 = arith.constant dense<0.000000e+00> : vector<256x32xf32>
    %5 = tpu.matmul %3, %4, %cst_7 {dimension_numbers = #tpu.dot_dimension_numbers<[1], [0], [0], [1], [0, 0, 1, 1], [], []>} : vector<256x8xbf16>, vector<8x32xbf16>, vector<256x32xf32> -> vector<256x32xf32>
    %6 = arith.addf %2, %5 : vector<256x32xf32>
    %c0_8 = arith.constant 0 : index
    %c0_9 = arith.constant 0 : index
    %7 = vector.load %arg5[%c0_8, %c0_9] : memref<1x32xf32, #tpu.memory_space<vmem>>, vector<1x32xf32>
    %8 = vector.broadcast %7 : vector<1x32xf32> to vector<256x32xf32>
    %9 = arith.addf %6, %8 : vector<256x32xf32>
    %c0_10 = arith.constant 0 : index
    %c0_11 = arith.constant 0 : index
    %10 = vector.load %arg6[%c0_10, %c0_11] : memref<256x32xf32, #tpu.memory_space<vmem>>, vector<256x32xf32>
    tpu.vector_store %arg6[%c0_10, %c0_11], %9 {strides = array<i32>} : memref<256x32xf32, #tpu.memory_space<vmem>>, vector<256x32xf32>,
    return
  }
  func.func @transform_0(%arg0: i32) -> (i32, i32) {
    %c0_i32 = arith.constant 0 : i32
    %c0_i32_0 = arith.constant 0 : i32
    return %arg0, %c0_i32 : i32, i32
  }
  func.func @transform_1(%arg0: i32) -> (i32, i32) {
    %c0_i32 = arith.constant 0 : i32
    %c0_i32_0 = arith.constant 0 : i32
    return %arg0, %c0_i32 : i32, i32
  }
  func.func @transform_2(%arg0: i32) -> (i32, i32) {
    %c0_i32 = arith.constant 0 : i32
    %c0_i32_0 = arith.constant 0 : i32
    %c0_i32_1 = arith.constant 0 : i32
    return %c0_i32, %c0_i32_0 : i32, i32
  }
  func.func @transform_3(%arg0: i32) -> (i32, i32) {
    %c0_i32 = arith.constant 0 : i32
    %c0_i32_0 = arith.constant 0 : i32
    %c0_i32_1 = arith.constant 0 : i32
    return %c0_i32, %c0_i32_0 : i32, i32
  }
  func.func @transform_4(%arg0: i32) -> (i32, i32) {
    %c0_i32 = arith.constant 0 : i32
    %c0_i32_0 = arith.constant 0 : i32
    %c0_i32_1 = arith.constant 0 : i32
    return %c0_i32, %c0_i32_0 : i32, i32
  }
  func.func @transform_5(%arg0: i32) -> (i32, i32) {
    %c0_i32 = arith.constant 0 : i32
    %c0_i32_0 = arith.constant 0 : i32
    return %arg0, %c0_i32 : i32, i32
  }
}

</mosaic_0001>

<bundles_post_ra>
// kernel: wave_attention.7
= control target key start
LH: loop header
LB: loop body
LE: loop exit
PB: predicated region body
PF: predicated region fallthrough
CT: control target
= control target key end

     0   :  { %s2234_s12 = smov 0   ;;  %s3129_s0 = inlined_call_operand.vmem [shape: f32[2,16,16,32], index: 0, kind: input, shape index: {}]   ;;  %s3130_s1 = inlined_call_operand.vmem [shape: bf16[288,10], index: 1, kind: input, shape index: {}]   ;;  %s3131_s2 = inlined_call_operand.vmem [shape: f32[1,10], index: 2, kind: input, shape index: {}]   ;;  %s3132_s3 = inlined_call_operand.vmem [shape: bf16[2,16,16,10], index: 3, kind: output, shape index: {}]  }
   0x1 LB: > { %s1873_s13 = sadd.s32 4294967295, %s2208_s12   ;;  %p1877_p0 = scmp.ge.s32.totalorder %s2208_s12, 1  ;;  %s2208_s12 = sphi %s2234_s12, %s13_s12  }
   0x2   : > { %p137_p1 = scmp.lt.s32.totalorder %s2208_s12, 3 }
   0x4   : > { %p138_p2 = pnand %p1877_p0, %p137_p1 }
   0x6   : > { %141 = sbr.rel (%p138_p2) target bundleno = 553 (0x229), region = 32 }
   0xd   : > { %vm409_vm0 = vcmask 1040384   ;;  %vm410_vm1 = vsmask.f32 256  ;;  %v2210_v0 = vmov 0   ;;  %vm671_vm3 = vcmask 1046528   ;;  %p161_p3 = scmp.lt.s32.totalorder %s1873_s13, 1 }
   0xe   : > { %v259_v1 = vrot.slane %v2210_v0, 7  ;;  %vm2242_vm2 = vmand %vm409_vm0, %vm410_vm1  ;;  %v2184_v3 = vld [vmem:[%s3130_s1 + $0x40] sm:$0xff]   ;;  %v2186_v7 = vld [vmem:[%s3130_s1 + $0x48] sm:$0xff]   ;;  %vm446_vm4 = vsmask.f32 7424  ;;  %s2211_s26 = smov 64  }
   0xf   : > { %v2185_v4 = vld [vmem:[%s3130_s1] sm:$0xff]   ;;  %s3142_s13 = smov (!%p161_p3, %s1873_s13), 1  ;;  %1985 = vmatprep.subr.bf16.mxu0 %v2184_v3  ;;  %2151 = vmatprep.subr.bf16.mxu1 %v2184_v3  ;;  %v2187_v15 = vld [vmem:[%s3130_s1 + $0x8] sm:$0xff]   ;;  %s2212_s27 = smov 32   ;;  %v2188_v54 = vld [vmem:[%s3130_s1 + $0x50] sm:$0xff]   ;;  %vm929_vm5 = vcmask 261120  }
  0x10   : > { %v2254_v5 = vsel %vm2242_vm2, 0, %v259_v1  ;;  %v429_v6 = vsel %vm2242_vm2, %v259_v1, 0  ;;  %1986 = vmatpush3.bf16.msra.mxu0 %v2185_v4  ;;  %2159 = vmatpush3.bf16.msra.mxu1 %v2185_v4  ;;  %s1951_s20 = sshll.u32 %s3142_s13, 8  ;;  %v2189_v61 = vld [vmem:[%s3130_s1 + $0x10] sm:$0xff]   ;;  %s2213_s11 = smov 96   ;;  %vm962_vm6 = vcmask 523264  }
  0x11   : > { %v672_v8 = vrot.slane %v2254_v5, 1  ;;  %v673_v9 = vrot.slane %v429_v6, 1  ;;  %v448_v10 = vshrl.u32 %v2254_v5, 16  ;;  %v450_v11 = vshll.u32 %v2254_v5, 16  ;;  %1987 = vmatprep.subr.bf16.mxu0 %v2186_v7  ;;  %2152 = vmatprep.subr.bf16.mxu1 %v2186_v7  ;;  %s2273_s23 = scalar_lea.vmem %s3129_s0, %s1951_s20  ;;  %s1952_s7 = sshll.u32 %s3142_s13, 7 }
  0x12   : > { %v455_v12 = vshll.u32 %v429_v6, 16  ;;  %v198_v18 = vld [vmem:[%s2273_s23 + $0xd0] sm:$0xff]  ;;  %v199_v19 = vld [vmem:[%s2273_s23 + $0xd8] sm:$0xff]  ;;  %v172_v24 = vld [vmem:[%s2273_s23] sm:$0xff]  ;;  %vm995_vm7 = vcmask 785408   ;;  %s3002_s10 = scalar_lea.vmem %s3132_s3, %s1952_s7  ;;  %vm1785_vm8 = vcmask 76800  }
  0x13   : > { %v2268_v13 = vsel %vm671_vm3, %v672_v8, %v673_v9  ;;  %v452_v14 = vrot.slane %v450_v11, 1  ;;  %v174_v20 = vld [vmem:[%s2273_s23 + $0x10] sm:$0xff]  ;;  %v217_v22 = vpack.c.bf16 %v199_v19, %v198_v18  ;;  %v175_v23 = vld [vmem:[%s2273_s23 + $0x18] sm:$0xff]  ;;  %v173_v25 = vld [vmem:[%s2273_s23 + $0x8] sm:$0xff] }
  0x14   : > { %3137 = vst [vmem:[#allocation2_spill] sm:$0xff] %v2268_v13  ;;  %v2179_v16 = vpack.i.bf16 %v2254_v5, %v2268_v13  ;;  %v457_v17 = vrot.slane %v455_v12, 1  ;;  %1988 = vmatpush3.bf16.msra.mxu0 %v2187_v15  ;;  %2160 = vmatpush3.bf16.msra.mxu1 %v2187_v15  ;;  %v205_v26 = vpack.c.bf16 %v175_v23, %v174_v20  ;;  %v196_v28 = vld [vmem:[%s2273_s23 + $0xc0] sm:$0xff]  ;;  %v197_v29 = vld [vmem:[%s2273_s23 + $0xc8] sm:$0xff]  ;;  %v194_v30 = vld [vmem:[%s2273_s23 + $0xb0] sm:$0xff] }
  0x15   : > { %v453_v21 = vor.u32 %v452_v14, %v448_v10  ;;  %v204_v27 = vpack.c.bf16 %v173_v25, %v172_v24  ;;  %v355_v32 = vshrl.u32 %v217_v22, 16  ;;  %v358_v33 = vshll.u32 %v217_v22, 16  ;;  %v195_v35 = vld [vmem:[%s2273_s23 + $0xb8] sm:$0xff]  ;;  %v176_v59 = vld [vmem:[%s2273_s23 + $0x20] sm:$0xff]  ;;  %v177_v60 = vld [vmem:[%s2273_s23 + $0x28] sm:$0xff]  ;;  %1989 = vmatprep.subr.bf16.mxu0 %v2188_v54  ;;  %2153 = vmatprep.subr.bf16.mxu1 %v2188_v54 }
  0x16   : > { %2180 = vrot.lane.b32.xlu1 %v2179_v16, %s2211_s26  ;;  %v216_v34 = vpack.c.bf16 %v197_v29, %v196_v28  ;;  %v271_v36 = vshrl.u32 %v205_v26, 16  ;;  %v274_v37 = vshll.u32 %v205_v26, 16  ;;  %v215_v43 = vpack.c.bf16 %v195_v35, %v194_v30  ;;  %v200_v12 = vld [vmem:[%s2273_s23 + $0xe0] sm:$0xff]  ;;  %v201_v14 = vld [vmem:[%s2273_s23 + $0xe8] sm:$0xff]  ;;  %v2190_v15 = vld [vmem:[%s3130_s1 + $0x58] sm:$0xff]  }
  0x17   : > { %v2291_v31 = vsel %vm446_vm4, %v453_v21, %v457_v17  ;;  %v264_v38 = vshrl.u32 %v204_v27, 16  ;;  %v267_v39 = vshll.u32 %v204_v27, 16  ;;  %v357_v40 = vrot.slane %v355_v32, 7  ;;  %v2191_v20 = vld [vmem:[%s3130_s1 + $0x18] sm:$0xff]   ;;  %v2192_v25 = vld [vmem:[%s3130_s1 + $0x60] sm:$0xff]  }
  0x18   : > { %737 = vrot.lane.b32.xlu0 %v2291_v31, %s2212_s27  ;;  %v348_v41 = vshrl.u32 %v216_v34, 16  ;;  %v351_v42 = vshll.u32 %v216_v34, 16  ;;  %v273_v44 = vrot.slane %v271_v36, 7  ;;  %v341_v48 = vshrl.u32 %v215_v43, 16  ;;  %1990 = vmatpush3.bf16.msra.mxu0 %v2189_v61  ;;  %v2193_v30 = vld [vmem:[%s3130_s1 + $0x20] sm:$0xff]  }
  0x19   : > { %v266_v45 = vrot.slane %v264_v38, 7  ;;  %v360_v46 = vor.u32 %v358_v33, %v357_v40  ;;  %v344_v49 = vshll.u32 %v215_v43, 16  ;;  %2161 = vmatpush3.bf16.msra.mxu1 %v2189_v61  ;;  %v2364_v23 = vsel %vm2242_vm2, %v357_v40, 0  ;;  %1991 = vmatprep.subr.bf16.mxu0 %v2190_v15 }
  0x1a   : > { %v350_v47 = vrot.slane %v348_v41, 7  ;;  %v276_v50 = vor.u32 %v274_v37, %v273_v44  ;;  %v2302_v53 = vsel %vm2242_vm2, %v273_v44, 0  ;;  %v343_v1 = vrot.slane %v341_v48, 7  ;;  %2154 = vmatprep.subr.bf16.mxu1 %v2190_v15 }
  0x1b   : > { %v269_v51 = vor.u32 %v267_v39, %v266_v45  ;;  %v2298_v52 = vsel %vm2242_vm2, %v266_v45, 0  ;;  %v2309_v55 = vsel %vm2242_vm2, 0, %v360_v46  ;;  %v479_v11 = vshll.u32 %v2302_v53, 16  ;;  %v2194_v46 = vld [vmem:[%s3130_s1 + $0x68] sm:$0xff]  }
  0x1c   : > { %v676_v56 = vrot.slane %v2298_v52, 1  ;;  %v353_v57 = vor.u32 %v351_v42, %v350_v47  ;;  %v2314_v58 = vsel %vm2242_vm2, %v350_v47, 0  ;;  %889 = vrot.lane.b32.xlu0 %v2309_v55, %s2211_s26  ;;  %v2325_v62 = vsel %vm2242_vm2, 0, %v276_v50  ;;  %1992 = vmatpush3.bf16.msra.mxu0 %v2191_v20 }
  0x1d   : > { %v2329_v63 = vsel %vm2242_vm2, 0, %v269_v51  ;;  %v712_v0 = vrot.slane %v2314_v58, 1  ;;  %865 = vrot.lane.b32.xlu1 %v2325_v62, %s2211_s26  ;;  %v472_v6 = vshrl.u32 %v2325_v62, 16  ;;  %v474_v7 = vshll.u32 %v2325_v62, 16  ;;  %1993 = vmatprep.subr.bf16.mxu0 %v2192_v25 }
  0x1e   : > { %v675_v3 = vrot.slane %v2329_v63, 1  ;;  %v2337_v4 = vsel %vm2242_vm2, 0, %v353_v57  ;;  %v346_v9 = vor.u32 %v344_v49, %v343_v1  ;;  %v441_v10 = vsel %vm2242_vm2, %v343_v1, 0  ;;  %2162 = vmatpush3.bf16.msra.mxu1 %v2191_v20  ;;  %v178_v1 = vld [vmem:[%s2273_s23 + $0x30] sm:$0xff]  ;;  %v2199_v20 = vld [vmem:[%s3130_s1 + $0x38] sm:$0xff]  }
  0x1f   : > { %v711_v8 = vrot.slane %v2337_v4, 1  ;;  %v709_v17 = vrot.slane %v441_v10, 1  ;;  %v476_v18 = vrot.slane %v474_v7, 1  ;;  %v599_v19 = vshll.u32 %v441_v10, 16  ;;  %2155 = vmatprep.subr.bf16.mxu1 %v2192_v25 }
  0x20   : > { %v2351_v16 = vsel %vm671_vm3, %v675_v3, %v676_v56  ;;  %v2360_v21 = vsel %vm2242_vm2, 0, %v346_v9  ;;  %v481_v22 = vrot.slane %v479_v11, 1  ;;  %v206_v24 = vpack.c.bf16 %v177_v60, %v176_v59  ;;  %1994 = vmatpush3.bf16.msra.mxu0 %v2193_v30  ;;  %v2195_v56 = vld [vmem:[%s3130_s1 + $0x28] sm:$0xff]   ;;  %v2196_v59 = vld [vmem:[%s3130_s1 + $0x70] sm:$0xff]   ;;  %v179_v11 = vld [vmem:[%s2273_s23 + $0x38] sm:$0xff] }
  0x21   : > { %833 = vrot.lane.b32.xlu0 %v2351_v16, %s2212_s27  ;;  %801 = vrot.lane.b32.xlu1 %v2329_v63, %s2213_s11  ;;  %v2372_v26 = vsel %vm671_vm3, %v711_v8, %v712_v0  ;;  %v477_v27 = vor.u32 %v476_v18, %v472_v6  ;;  %v592_v28 = vshrl.u32 %v2360_v21, 16  ;;  %v594_v29 = vshll.u32 %v2360_v21, 16  ;;  %v2197_v9 = vld [vmem:[%s3130_s1 + $0x30] sm:$0xff]  }
  0x22   : > { %v708_v32 = vrot.slane %v2360_v21, 1  ;;  %v616_v33 = vshrl.u32 %v2309_v55, 16  ;;  %v618_v34 = vshll.u32 %v2309_v55, 16  ;;  %v623_v35 = vshll.u32 %v2364_v23, 16  ;;  %1995 = vmatprep.subr.bf16.mxu0 %v2194_v46  ;;  %2163 = vmatpush3.bf16.msra.mxu1 %v2193_v30 }
  0x23   : > { %v596_v36 = vrot.slane %v594_v29, 1  ;;  %v218_v37 = vpack.c.bf16 %v201_v14, %v200_v12  ;;  %v2386_v38 = vsel %vm446_vm4, %v477_v27, %v481_v22  ;;  %v601_v39 = vrot.slane %v599_v19, 1  ;;  %2156 = vmatprep.subr.bf16.mxu1 %v2194_v46  ;;  %v2198_v12 = vld [vmem:[%s3130_s1 + $0x78] sm:$0xff]   ;;  %v202_v46 = vld [vmem:[%s2273_s23 + $0xf0] sm:$0xff] }
  0x24   : > { %v620_v40 = vrot.slane %v618_v34, 1  ;;  %v625_v41 = vrot.slane %v623_v35, 1  ;;  %v460_v43 = vshrl.u32 %v2329_v63, 16  ;;  %v462_v44 = vshll.u32 %v2329_v63, 16  ;;  %1996 = vmatpush3.bf16.msra.mxu0 %v2195_v56 }
  0x25   : > { %857 = vrot.lane.b32.xlu0 %v2372_v26, %s2212_s27  ;;  %825 = vrot.lane.b32.xlu1 %v2337_v4, %s2213_s11  ;;  %v597_v42 = vor.u32 %v596_v36, %v592_v28  ;;  %v278_v45 = vshrl.u32 %v206_v24, 16  ;;  %v2396_v47 = vsel %vm671_vm3, %v708_v32, %v709_v17  ;;  %v467_v49 = vshll.u32 %v2298_v52, 16 }
  0x26   : > { %v621_v48 = vor.u32 %v620_v40, %v616_v33  ;;  %v281_v50 = vshll.u32 %v206_v24, 16  ;;  %v464_v51 = vrot.slane %v462_v44, 1  ;;  %v678_v57 = vrot.slane %v2325_v62, 1  ;;  %1997 = vmatprep.subr.bf16.mxu0 %v2196_v59  ;;  %2164 = vmatpush3.bf16.msra.mxu1 %v2195_v56 }
  0x27   : > { %v280_v54 = vrot.slane %v278_v45, 7  ;;  %v2411_v52 = vsel %vm446_vm4, %v597_v42, %v601_v39  ;;  %v679_v61 = vrot.slane %v2302_v53, 1  ;;  %v469_v6 = vrot.slane %v467_v49, 1  ;;  %2157 = vmatprep.subr.bf16.mxu1 %v2196_v59 }
  0x28   : > { %v2414_v60 = vsel %vm446_vm4, %v621_v48, %v625_v41  ;;  %v465_v3 = vor.u32 %v464_v51, %v460_v43  ;;  %v362_v8 = vshrl.u32 %v218_v37, 16  ;;  %v365_v53 = vshll.u32 %v218_v37, 16  ;;  %1998 = vmatpush3.bf16.msra.mxu0 %v2197_v9  ;;  %v203_v48 = vld [vmem:[%s2273_s23 + $0xf8] sm:$0xff] }
  0x29   : > { %897 = vrot.lane.b32.xlu0 %v2386_v38, %s2213_s11  ;;  %793 = vrot.lane.b32.xlu1 %v2396_v47, %s2211_s26  ;;  %v283_v0 = vor.u32 %v281_v50, %v280_v54  ;;  %v2420_v7 = vsel %vm2242_vm2, %v280_v54, 0  ;;  %v2439_v15 = vsel %vm671_vm3, %v678_v57, %v679_v61  ;;  %v606_v25 = vshll.u32 %v2337_v4, 16 }
  0x2a   : > { %v491_v18 = vshll.u32 %v2420_v7, 16  ;;  %v364_v19 = vrot.slane %v362_v8, 7  ;;  %v2447_v22 = vsel %vm446_vm4, %v465_v3, %v469_v6  ;;  %v207_v27 = vpack.c.bf16 %v179_v11, %v178_v1  ;;  %1999 = vmatprep.subr.bf16.mxu0 %v2198_v12  ;;  %2165 = vmatpush3.bf16.msra.mxu1 %v2197_v9 }
  0x2b   : > { %v2427_v10 = vsel %vm2242_vm2, 0, %v283_v0  ;;  %2158 = vmatprep.subr.bf16.mxu1 %v2198_v12  ;;  %v611_v32 = vshll.u32 %v2314_v58, 16  ;;  %v604_v33 = vshrl.u32 %v2337_v4, 16  ;;  %v608_v34 = vrot.slane %v606_v25, 1  ;;  %v180_v12 = vld [vmem:[%s2273_s23 + $0x40] sm:$0xff] }
  0x2c   : > { %v486_v14 = vshll.u32 %v2427_v10, 16  ;;  %v484_v17 = vshrl.u32 %v2427_v10, 16  ;;  %v367_v28 = vor.u32 %v365_v53, %v364_v19  ;;  %v493_v30 = vrot.slane %v491_v18, 1  ;;  %2000 = vmatpush3.bf16.msra.mxu0 %v2199_v20 }
  0x2d   : > { %921 = vrot.lane.b32.xlu0 %v2414_v60, %s2213_s11  ;;  %761 = vrot.lane.b32.xlu1 %v2411_v52, %s2212_s27  ;;  %v285_v36 = vshrl.u32 %v207_v27, 16  ;;  %v714_v37 = vrot.slane %v2309_v55, 1  ;;  %v715_v39 = vrot.slane %v2364_v23, 1  ;;  %v613_v40 = vrot.slane %v611_v32, 1 }
  0x2e   : > { %v488_v24 = vrot.slane %v486_v14, 1  ;;  %v2458_v35 = vsel %vm2242_vm2, 0, %v367_v28  ;;  %2166 = vmatpush3.bf16.msra.mxu1 %v2199_v20  ;;  %v609_v42 = vor.u32 %v608_v34, %v604_v33  ;;  %v444_v43 = vsel %vm2242_vm2, %v364_v19, 0  ;;  %v181_v14 = vld [vmem:[%s2273_s23 + $0x48] sm:$0xff] }
  0x2f   : > { %v630_v41 = vshll.u32 %v2458_v35, 16  ;;  %v287_v44 = vrot.slane %v285_v36, 7  ;;  %v288_v45 = vshll.u32 %v207_v27, 16  ;;  %v628_v23 = vshrl.u32 %v2458_v35, 16 }
  0x30   : > { %v489_v29 = vor.u32 %v488_v24, %v484_v17  ;;  %v635_v50 = vshll.u32 %v444_v43, 16  ;;  %v2483_v51 = vsel %vm446_vm4, %v609_v42, %v613_v40  ;;  %v219_v56 = vpack.c.bf16 %v203_v48, %v202_v46 }
  0x31   : > { %835 = vrot.lane.b32.xlu0 %v2439_v15, %s2212_s27  ;;  %739 = vrot.lane.b32.xlu1 %v2447_v22, %s2212_s27  ;;  %v632_v49 = vrot.slane %v630_v41, 1  ;;  %v290_v54 = vor.u32 %v288_v45, %v287_v44  ;;  %v681_v3 = vrot.slane %v2427_v10, 1  ;;  %v682_v6 = vrot.slane %v2420_v7, 1 }
  0x32   : > { %v2466_v58 = vsel %vm446_vm4, %v489_v29, %v493_v30  ;;  %v637_v59 = vrot.slane %v635_v50, 1  ;;  %v369_v0 = vshrl.u32 %v219_v56, 16  ;;  %v433_v9 = vsel %vm2242_vm2, %v287_v44, 0 }
  0x33   : > { %v633_v57 = vor.u32 %v632_v49, %v628_v23  ;;  %v2491_v61 = vsel %vm2242_vm2, 0, %v290_v54  ;;  %v372_v11 = vshll.u32 %v219_v56, 16  ;;  %v2512_v17 = vsel %vm671_vm3, %v681_v3, %v682_v6  ;;  %v182_v23 = vld [vmem:[%s2273_s23 + $0x50] sm:$0xff]  ;;  %v183_v49 = vld [vmem:[%s2273_s23 + $0x58] sm:$0xff] }
  0x34   : > { %v498_v8 = vshll.u32 %v2491_v61, 16  ;;  %v371_v53 = vrot.slane %v369_v0, 7  ;;  %v496_v7 = vshrl.u32 %v2491_v61, 16  ;;  %v503_v19 = vshll.u32 %v433_v9, 16 }
  0x35   : > { %867 = vrot.lane.b32.xlu0 %v2427_v10, %s2211_s26  ;;  %771 = vrot.lane.b32.xlu1 %v2351_v16, %s2211_s26  ;;  %v2479_v16 = vsel %vm671_vm3, %v714_v37, %v715_v39  ;;  %v2498_v1 = vsel %vm446_vm4, %v633_v57, %v637_v59  ;;  %v208_v24 = vpack.c.bf16 %v181_v14, %v180_v12  ;;  %v717_v32 = vrot.slane %v2458_v35, 1 }
  0x36   : > { %v500_v18 = vrot.slane %v498_v8, 1  ;;  %v374_v20 = vor.u32 %v372_v11, %v371_v53  ;;  %v505_v27 = vrot.slane %v503_v19, 1  ;;  %v718_v33 = vrot.slane %v444_v43, 1  ;;  %v185_v19 = vld [vmem:[%s2273_s23 + $0x68] sm:$0xff] }
  0x37   : > { %v292_v29 = vshrl.u32 %v208_v24, 16  ;;  %v445_v36 = vsel %vm2242_vm2, %v371_v53, 0  ;;  %v295_v39 = vshll.u32 %v208_v24, 16  ;;  %v684_v54 = vrot.slane %v2491_v61, 1 }
  0x38   : > { %v501_v25 = vor.u32 %v500_v18, %v496_v7  ;;  %v2521_v28 = vsel %vm2242_vm2, 0, %v374_v20  ;;  %v2539_v40 = vsel %vm671_vm3, %v717_v32, %v718_v33  ;;  %v728_v43 = vshll.u32 %v445_v36, 16  ;;  %v184_v18 = vld [vmem:[%s2273_s23 + $0x60] sm:$0xff] }
  0x39   : > { %899 = vrot.lane.b32.xlu0 %v2466_v58, %s2213_s11  ;;  %803 = vrot.lane.b32.xlu1 %v2325_v62, %s2213_s11  ;;  %v723_v34 = vshll.u32 %v2521_v28, 16  ;;  %v294_v37 = vrot.slane %v292_v29, 7  ;;  %v721_v41 = vshrl.u32 %v2521_v28, 16  ;;  %v685_v56 = vrot.slane %v433_v9, 1  ;;  %v2588_v32 = vld [vmem:[%s3130_s1 + $0x80] sm:$0xff]  }
  0x3a   : > { %v2528_v30 = vsel %vm446_vm4, %v501_v25, %v505_v27  ;;  %v730_v46 = vrot.slane %v728_v43, 1  ;;  %v209_v0 = vpack.c.bf16 %v183_v49, %v182_v23  ;;  %v734_v24 = vrot.slane %v2521_v28, 1  ;;  %2115 = vmatprep.subr.bf16.mxu1 %v2588_v32 }
  0x3b   : > { %v725_v42 = vrot.slane %v723_v34, 1  ;;  %v297_v44 = vor.u32 %v295_v39, %v294_v37  ;;  %v434_v59 = vsel %vm2242_vm2, %v294_v37, 0  ;;  %v2568_v3 = vsel %vm671_vm3, %v684_v54, %v685_v56 }
  0x3c   : > { %v515_v9 = vshll.u32 %v434_v59, 16  ;;  %v299_v53 = vshrl.u32 %v209_v0, 16  ;;  %v302_v7 = vshll.u32 %v209_v0, 16  ;;  %v735_v25 = vrot.slane %v445_v36, 1 }
  0x3d   : > { %859 = vrot.lane.b32.xlu0 %v2479_v16, %s2212_s27  ;;  %763 = vrot.lane.b32.xlu1 %v2483_v51, %s2212_s27  ;;  %v726_v45 = vor.u32 %v725_v42, %v721_v41  ;;  %v2548_v48 = vsel %vm2242_vm2, 0, %v297_v44  ;;  %v210_v29 = vpack.c.bf16 %v185_v19, %v184_v18  ;;  %v688_v39 = vrot.slane %v434_v59, 1  ;;  %v188_v18 = vld [vmem:[%s2273_s23 + $0x80] sm:$0xff]  ;;  %v189_v19 = vld [vmem:[%s2273_s23 + $0x88] sm:$0xff] }
  0x3e   : > { %v510_v57 = vshll.u32 %v2548_v48, 16  ;;  %v508_v6 = vshrl.u32 %v2548_v48, 16  ;;  %v517_v12 = vrot.slane %v515_v9, 1  ;;  %v301_v14 = vrot.slane %v299_v53, 7 }
  0x3f   : > { %v2557_v50 = vsel %vm446_vm4, %v726_v45, %v730_v46  ;;  %v2595_v33 = vsel %vm671_vm3, %v734_v24, %v735_v25  ;;  %v306_v36 = vshrl.u32 %v210_v29, 16  ;;  %v687_v37 = vrot.slane %v2548_v48, 1  ;;  %v186_v45 = vld [vmem:[%s2273_s23 + $0x70] sm:$0xff]  ;;  %v187_v46 = vld [vmem:[%s2273_s23 + $0x78] sm:$0xff] }
  0x40   : > { %v512_v8 = vrot.slane %v510_v57, 1  ;;  %v304_v27 = vor.u32 %v302_v7, %v301_v14  ;;  %3138 = vst [vmem:[#allocation3_spill] sm:$0xff] %v2595_v33  ;;  %v435_v42 = vsel %vm2242_vm2, %v301_v14, 0  ;;  %v309_v44 = vshll.u32 %v210_v29, 16 }
  0x41   : > { %891 = vrot.lane.b32.xlu0 %v2458_v35, %s2211_s26  ;;  %795 = vrot.lane.b32.xlu1 %v2372_v26, %s2211_s26  ;;  %v308_v43 = vrot.slane %v306_v36, 7  ;;  %v2617_v23 = vsel %vm671_vm3, %v687_v37, %v688_v39  ;;  %v527_v56 = vshll.u32 %v435_v42, 16  ;;  %v211_v59 = vpack.c.bf16 %v187_v46, %v186_v45 }
  0x42   : > { %v513_v11 = vor.u32 %v512_v8, %v508_v6  ;;  %v2600_v34 = vsel %vm2242_vm2, 0, %v304_v27  ;;  %v691_v53 = vrot.slane %v435_v42, 1  ;;  %v212_v37 = vpack.c.bf16 %v189_v19, %v188_v18 }
  0x43   : > { %v522_v41 = vshll.u32 %v2600_v34, 16  ;;  %v520_v49 = vshrl.u32 %v2600_v34, 16  ;;  %v311_v57 = vor.u32 %v309_v44, %v308_v43  ;;  %v529_v6 = vrot.slane %v527_v56, 1 }
  0x44   : > { %v2582_v20 = vsel %vm446_vm4, %v513_v11, %v517_v12  ;;  %v313_v8 = vshrl.u32 %v211_v59, 16  ;;  %v690_v9 = vrot.slane %v2600_v34, 1  ;;  %v436_v12 = vsel %vm2242_vm2, %v308_v43, 0 }
  0x45   : > { %923 = vrot.lane.b32.xlu0 %v2498_v1, %s2213_s11  ;;  %827 = vrot.lane.b32.xlu1 %v2309_v55, %s2213_s11  ;;  %v524_v54 = vrot.slane %v522_v41, 1  ;;  %v316_v7 = vshll.u32 %v211_v59, 16  ;;  %v539_v29 = vshll.u32 %v436_v12, 16  ;;  %v320_v43 = vshrl.u32 %v212_v37, 16 }
  0x46   : > { %v315_v14 = vrot.slane %v313_v8, 7  ;;  %v2646_v24 = vsel %vm671_vm3, %v690_v9, %v691_v53  ;;  %v694_v46 = vrot.slane %v436_v12, 1 }
  0x47   : > { %v525_v0 = vor.u32 %v524_v54, %v520_v49  ;;  %v541_v41 = vrot.slane %v539_v29, 1  ;;  %v322_v56 = vrot.slane %v320_v43, 7 }
  0x48   : > { %v318_v36 = vor.u32 %v316_v7, %v315_v14  ;;  %v437_v54 = vsel %vm2242_vm2, %v315_v14, 0 }
  0x49   : > { %837 = vrot.lane.b32.xlu0 %v2512_v17, %s2212_s27  ;;  %741 = vrot.lane.b32.xlu1 %v2386_v38, %s2212_s27  ;;  %v551_v12 = vshll.u32 %v437_v54, 16  ;;  %v697_v43 = vrot.slane %v437_v54, 1 }
  0x4a   : > { %v2655_v42 = vsel %vm2242_vm2, 0, %v318_v36 }
  0x4b   : > { %v546_v49 = vshll.u32 %v2655_v42, 16  ;;  %v544_v53 = vshrl.u32 %v2655_v42, 16 }
  0x4d   : > { %869 = vrot.lane.b32.xlu0 %v2491_v61, %s2211_s26  ;;  %773 = vrot.lane.b32.xlu1 %v2439_v15, %s2211_s26 }
  0x51   : > { %901 = vrot.lane.b32.xlu0 %v2528_v30, %s2213_s11  ;;  %805 = vrot.lane.b32.xlu1 %v2427_v10, %s2213_s11 }
  0x55   : > { %861 = vrot.lane.b32.xlu0 %v2539_v40, %s2212_s27  ;;  %765 = vrot.lane.b32.xlu1 %v2414_v60, %s2212_s27 }
  0x59   : > { %893 = vrot.lane.b32.xlu0 %v2521_v28, %s2211_s26  ;;  %797 = vrot.lane.b32.xlu1 %v2479_v16, %s2211_s26 }
  0x5d   : > { %925 = vrot.lane.b32.xlu0 %v2557_v50, %s2213_s11  ;;  %829 = vrot.lane.b32.xlu1 %v2458_v35, %s2213_s11 }
  0x61   : > { %839 = vrot.lane.b32.xlu0 %v2568_v3, %s2212_s27  ;;  %743 = vrot.lane.b32.xlu1 %v2466_v58, %s2212_s27 }
  0x65   : > { %871 = vrot.lane.b32.xlu0 %v2548_v48, %s2211_s26  ;;  %775 = vrot.lane.b32.xlu1 %v2512_v17, %s2211_s26 }
  0x69   : > { %903 = vrot.lane.b32.xlu0 %v2582_v20, %s2213_s11  ;;  %807 = vrot.lane.b32.xlu1 %v2491_v61, %s2213_s11 }
  0x6d   : > { %863 = vrot.lane.b32.xlu0 %v2595_v33, %s2212_s27  ;;  %767 = vrot.lane.b32.xlu1 %v2498_v1, %s2212_s27 }
  0x71   : > { %799 = vrot.lane.b32.xlu0 %v2539_v40, %s2211_s26  ;;  %927 = vrot.lane.b32.xlu1 %v2291_v31, %s2213_s11  ;;  %v2626_v31 = vsel %vm2242_vm2, 0, %v311_v57  ;;  %v323_v57 = vshll.u32 %v212_v37, 16 }
  0x72   : > { %v534_v11 = vshll.u32 %v2626_v31, 16  ;;  %v532_v25 = vshrl.u32 %v2626_v31, 16  ;;  %v693_v45 = vrot.slane %v2626_v31, 1 }
  0x73   : > { %v325_v14 = vor.u32 %v323_v57, %v322_v56 }
  0x74   : > { %v536_v27 = vrot.slane %v534_v11, 1  ;;  %v2677_v9 = vsel %vm671_vm3, %v693_v45, %v694_v46  ;;  %v548_v11 = vrot.slane %v546_v49, 1  ;;  %v192_v46 = vld [vmem:[%s2273_s23 + $0xa0] sm:$0xff]  ;;  %v193_v49 = vld [vmem:[%s2273_s23 + $0xa8] sm:$0xff] }
  0x75   : > { %831 = vrot.lane.b32.xlu0 %v2521_v28, %s2213_s11  ;;  %841 = vrot.lane.b32.xlu1 %v2617_v23, %s2212_s27  ;;  %v2633_v28 = vsel %vm446_vm4, %v525_v0, %v529_v6  ;;  %v190_v0 = vld [vmem:[%s2273_s23 + $0x90] sm:$0xff]  ;;  %v191_v6 = vld [vmem:[%s2273_s23 + $0x98] sm:$0xff]  ;;  %v2686_v29 = vsel %vm2242_vm2, 0, %v325_v14 }
  0x76   : > { %v537_v39 = vor.u32 %v536_v27, %v532_v25  ;;  %v213_v7 = vpack.c.bf16 %v191_v6, %v190_v0  ;;  %v549_v19 = vor.u32 %v548_v11, %v544_v53  ;;  %v553_v25 = vrot.slane %v551_v12, 1 }
  0x77   : > { %v558_v45 = vshll.u32 %v2686_v29, 16  ;;  %v438_v0 = vsel %vm2242_vm2, %v322_v56, 0  ;;  %v214_v11 = vpack.c.bf16 %v193_v49, %v192_v46  ;;  %v556_v14 = vshrl.u32 %v2686_v29, 16 }
  0x78   : > { %v2662_v44 = vsel %vm446_vm4, %v537_v39, %v541_v41  ;;  %v327_v36 = vshrl.u32 %v213_v7, 16  ;;  %v2693_v39 = vsel %vm446_vm4, %v549_v19, %v553_v25  ;;  %v696_v41 = vrot.slane %v2655_v42, 1 }
  0x79   : > { %745 = vrot.lane.b32.xlu0 %v2528_v30, %s2212_s27  ;;  %873 = vrot.lane.b32.xlu1 %v2600_v34, %s2211_s26  ;;  %v330_v53 = vshll.u32 %v213_v7, 16  ;;  %v560_v19 = vrot.slane %v558_v45, 1  ;;  %v563_v25 = vshll.u32 %v438_v0, 16  ;;  %v334_v49 = vshrl.u32 %v214_v11, 16 }
  0x7a   : > { %v329_v6 = vrot.slane %v327_v36, 7  ;;  %v2706_v54 = vsel %vm671_vm3, %v696_v41, %v697_v43 }
  0x7b   : > { %v561_v45 = vor.u32 %v560_v19, %v556_v14  ;;  %v565_v46 = vrot.slane %v563_v25, 1  ;;  %v699_v25 = vrot.slane %v2686_v29, 1 }
  0x7c   : > { %v332_v13 = vor.u32 %v330_v53, %v329_v6  ;;  %v439_v14 = vsel %vm2242_vm2, %v329_v6, 0 }
  0x7d   : > { %777 = vrot.lane.b32.xlu0 %v2568_v3, %s2211_s26  ;;  %905 = vrot.lane.b32.xlu1 %v2633_v28, %s2213_s11  ;;  %v575_v6 = vshll.u32 %v439_v14, 16 }
  0x7e   : > { %v2725_v53 = vsel %vm2242_vm2, 0, %v332_v13  ;;  %v2736_v13 = vsel %vm446_vm4, %v561_v45, %v565_v46  ;;  %v2201_v45 = vld [vmem:[%s3130_s1 + $0x88] sm:$0xff]  }
  0x81   : > { %809 = vrot.lane.b32.xlu0 %v2548_v48, %s2213_s11  ;;  %843 = vrot.lane.b32.xlu1 %v2646_v24, %s2212_s27 }
  0x85   : > { %747 = vrot.lane.b32.xlu0 %v2582_v20, %s2212_s27  ;;  %875 = vrot.lane.b32.xlu1 %v2626_v31, %s2211_s26 }
  0x88   : > { %v2674_v8 = vpop.permute.xlu1 %2180 }
  0x89   : > { %779 = vrot.lane.b32.xlu0 %v2617_v23, %s2211_s26  ;;  %907 = vrot.lane.b32.xlu1 %v2662_v44, %s2213_s11  ;;  %v2182_v56 = vunpack.i.l.bf16 %v2674_v8 }
  0x8a   : > { %v738_v59 = vpop.permute.xlu0 %737 }
  0x8b   : > { %v931_v33 = vsel %vm929_vm5, %v2254_v5, %v738_v59 }
  0x8c   : > { %v964_v59 = vsel %vm962_vm6, %v931_v33, %v2182_v56  ;;  %v570_v56 = vshll.u32 %v2725_v53, 16 }
  0x8d   : > { %811 = vrot.lane.b32.xlu0 %v2600_v34, %s2213_s11  ;;  %845 = vrot.lane.b32.xlu1 %v2677_v9, %s2212_s27 }
  0x8e   : > { %v890_v18 = vpop.permute.xlu0 %889 }
  0x8f   : > { %v866_v27 = vpop.permute.xlu1 %865 }
  0x91   : > { %749 = vrot.lane.b32.xlu0 %v2633_v28, %s2212_s27  ;;  %877 = vrot.lane.b32.xlu1 %v2655_v42, %s2211_s26 }
  0x93   : > { %v834_v37 = vpop.permute.xlu0 %833  ;;  %v802_v57 = vpop.permute.xlu1 %801 }
  0x94   : > { %v1046_v7 = vsel %vm929_vm5, %v2447_v22, %v834_v37 }
  0x95   : > { %781 = vrot.lane.b32.xlu0 %v2646_v24, %s2211_s26  ;;  %909 = vrot.lane.b32.xlu1 %v2693_v39, %s2213_s11  ;;  %v1093_v43 = vsel %vm962_vm6, %v1046_v7, %v866_v27  ;;  %v997_v27 = vsel %vm995_vm7, %v964_v59, %v802_v57 }
  0x97   : > { %v858_v12 = vpop.permute.xlu0 %857  ;;  %v826_v36 = vpop.permute.xlu1 %825 }
  0x98   : > { %v1082_v22 = vsel %vm929_vm5, %v2483_v51, %v858_v12  ;;  %v700_v12 = vrot.slane %v438_v0, 1 }
  0x99   : > { %813 = vrot.lane.b32.xlu0 %v2626_v31, %s2213_s11  ;;  %847 = vrot.lane.b32.xlu1 %v2706_v54, %s2212_s27  ;;  %v1117_v33 = vsel %vm962_vm6, %v1082_v22, %v890_v18  ;;  %v568_v22 = vshrl.u32 %v2725_v53, 16 }
  0x9b   : > { %v898_v41 = vpop.permute.xlu0 %897  ;;  %v794_v37 = vpop.permute.xlu1 %793 }
  0x9c   : > { %v1125_v5 = vsel %vm995_vm7, %v1093_v43, %v898_v41  ;;  %v336_v41 = vrot.slane %v334_v49, 7  ;;  %v337_v43 = vshll.u32 %v214_v11, 16  ;;  %v2753_v49 = vsel %vm671_vm3, %v699_v25, %v700_v12 }
  0x9d   : > { %751 = vrot.lane.b32.xlu0 %v2662_v44, %s2212_s27  ;;  %1367 = vmatprep.mubr.bf16.mxu0 %v1125_v5  ;;  %v572_v5 = vrot.slane %v570_v56, 1  ;;  %v703_v56 = vrot.slane %v439_v14, 1 }
  0x9e   : > { %879 = vrot.lane.b32.xlu1 %v2686_v29, %s2211_s26  ;;  %1368 = vmatmul.mubr.bf16.vlgmr.msra.gmra.mrb[0].mxu0 %v997_v27  ;;  %v339_v27 = vor.u32 %v337_v43, %v336_v41 }
  0x9f   : > { %v922_v19 = vpop.permute.xlu0 %921  ;;  %v762_v7 = vpop.permute.xlu1 %761 }
  0xa0   : > { %v1161_v57 = vsel %vm995_vm7, %v1117_v33, %v922_v19  ;;  %v955_v0 = vsel %vm929_vm5, %v2360_v21, %v762_v7  ;;  %v577_v19 = vrot.slane %v575_v6, 1  ;;  %v2763_v33 = vsel %vm2242_vm2, 0, %v339_v27 }
  0xa1   : > { %783 = vrot.lane.b32.xlu0 %v2677_v9, %s2211_s26  ;;  %1463 = vmatprep.mubr.bf16.mxu1 %v1161_v57  ;;  %v988_v18 = vsel %vm962_vm6, %v955_v0, %v794_v37  ;;  %v573_v37 = vor.u32 %v572_v5, %v568_v22  ;;  %v702_v0 = vrot.slane %v2725_v53, 1  ;;  %v580_v22 = vshrl.u32 %v2763_v33, 16 }
  0xa2   : > { %911 = vrot.lane.b32.xlu1 %v2736_v13, %s2213_s11  ;;  %v1033_v46 = vsel %vm995_vm7, %v988_v18, %v826_v36 }
  0xa3   : > { %v836_v11 = vpop.permute.xlu0 %835  ;;  %1464 = vmatmul.mubr.bf16.vlgmr.msra.gmra.mrb[0].mxu1 %v1033_v46  ;;  %v740_v59 = vpop.permute.xlu1 %739  ;;  %v2775_v43 = vsel %vm446_vm4, %v573_v37, %v577_v19 }
  0xa4   : > { %2116 = vmatpush3.bf16.msra.mxu1 %v2588_v32  ;;  %v933_v25 = vsel %vm929_vm5, %v2329_v63, %v740_v59  ;;  %v1049_v32 = vsel %vm929_vm5, %v2386_v38, %v836_v11  ;;  %v582_v63 = vshll.u32 %v2763_v33, 16  ;;  %v440_v38 = vsel %vm2242_vm2, %v336_v41, 0 }
  0xa5   : > { %815 = vrot.lane.b32.xlu0 %v2655_v42, %s2213_s11  ;;  %2117 = vmatprep.subr.bf16.mxu1 %v2201_v45  ;;  %v2789_v11 = vsel %vm671_vm3, %v702_v0, %v703_v56  ;;  %v587_v59 = vshll.u32 %v440_v38, 16 }
  0xa6   : > { %849 = vrot.lane.b32.xlu1 %v2753_v49, %s2212_s27  ;;  %v584_v5 = vrot.slane %v582_v63, 1 }
  0xa7   : > { %v868_v36 = vpop.permute.xlu0 %867  ;;  %v772_v12 = vpop.permute.xlu1 %771 }
  0xa8   : > { %2118 = vmatpush3.bf16.msra.mxu1 %v2201_v45  ;;  %v1095_v7 = vsel %vm962_vm6, %v1049_v32, %v868_v36  ;;  %v966_v18 = vsel %vm962_vm6, %v933_v25, %v772_v12  ;;  %v585_v27 = vor.u32 %v584_v5, %v580_v22  ;;  %v589_v36 = vrot.slane %v587_v59, 1 }
  0xa9   : > { %753 = vrot.lane.b32.xlu0 %v2693_v39, %s2212_s27 }
  0xaa   : > { %881 = vrot.lane.b32.xlu1 %v2725_v53, %s2211_s26  ;;  %v2806_v56 = vsel %vm446_vm4, %v585_v27, %v589_v36 }
  0xab   : > { %v900_v57 = vpop.permute.xlu0 %899  ;;  %v804_v6 = vpop.permute.xlu1 %803 }
  0xac   : > { %v1128_v45 = vsel %vm995_vm7, %v1095_v7, %v900_v57  ;;  %v1000_v14 = vsel %vm995_vm7, %v966_v18, %v804_v6  ;;  %v705_v7 = vrot.slane %v2763_v33, 1  ;;  %v706_v57 = vrot.slane %v440_v38, 1 }
  0xad   : > { %785 = vrot.lane.b32.xlu0 %v2706_v54, %s2211_s26  ;;  %1375 = vmatprep.mubr.bf16.mxu0 %v1128_v45 }
  0xae   : > { %913 = vrot.lane.b32.xlu1 %v2775_v43, %s2213_s11  ;;  %1376 = vmatmul.mubr.bf16.gmra.mrb[4].mxu0 %v1000_v14  ;;  %v2817_v45 = vsel %vm671_vm3, %v705_v7, %v706_v57 }
  0xaf   : > { %v860_v46 = vpop.permute.xlu0 %859  ;;  %v764_v2 = vpop.permute.xlu1 %763 }
  0xb0   : > { %v957_v19 = vsel %vm929_vm5, %v2337_v4, %v764_v2  ;;  %v1085_v12 = vsel %vm929_vm5, %v2414_v60, %v860_v46 }
  0xb1   : > { %817 = vrot.lane.b32.xlu0 %v2686_v29, %s2213_s11 }
  0xb2   : > { %851 = vrot.lane.b32.xlu1 %v2789_v11, %s2212_s27 }
  0xb3   : > { %v892_v41 = vpop.permute.xlu0 %891  ;;  %v796_v37 = vpop.permute.xlu1 %795 }
  0xb4   : > { %v1119_v25 = vsel %vm962_vm6, %v1085_v12, %v892_v41  ;;  %v990_v0 = vsel %vm962_vm6, %v957_v19, %v796_v37 }
  0xb5   : > { %755 = vrot.lane.b32.xlu0 %v2736_v13, %s2212_s27 }
  0xb6   : > { %883 = vrot.lane.b32.xlu1 %v2763_v33, %s2211_s26 }
  0xb7   : > { %v924_v32 = vpop.permute.xlu0 %923  ;;  %v828_v63 = vpop.permute.xlu1 %827 }
  0xb8   : > { %v1164_v18 = vsel %vm995_vm7, %v1119_v25, %v924_v32  ;;  %v1036_v60 = vsel %vm995_vm7, %v990_v0, %v828_v63 }
  0xb9   : > { %787 = vrot.lane.b32.xlu0 %v2753_v49, %s2211_s26  ;;  %1471 = vmatprep.mubr.bf16.mxu1 %v1164_v18 }
  0xba   : > { %915 = vrot.lane.b32.xlu1 %v2806_v56, %s2213_s11  ;;  %1472 = vmatmul.mubr.bf16.gmra.mrb[4].mxu1 %v1036_v60 }
  0xbb   : > { %v838_v6 = vpop.permute.xlu0 %837  ;;  %v742_v38 = vpop.permute.xlu1 %741 }
  0xbc   : > { %v935_v22 = vsel %vm929_vm5, %v2325_v62, %v742_v38  ;;  %v1052_v5 = vsel %vm929_vm5, %v2466_v58, %v838_v6 }
  0xbd   : > { %819 = vrot.lane.b32.xlu0 %v2725_v53, %s2213_s11 }
  0xbe   : > { %853 = vrot.lane.b32.xlu1 %v2817_v45, %s2212_s27 }
  0xbf   : > { %v870_v14 = vpop.permute.xlu0 %869  ;;  %v774_v46 = vpop.permute.xlu1 %773 }
  0xc0   : > { %v1097_v59 = vsel %vm962_vm6, %v1052_v5, %v870_v14  ;;  %v968_v41 = vsel %vm962_vm6, %v935_v22, %v774_v46 }
  0xc1   : > { %757 = vrot.lane.b32.xlu0 %v2775_v43, %s2212_s27 }
  0xc2   : > { %885 = vrot.lane.b32.xlu1 %v2360_v21, %s2211_s26 }
  0xc3   : > { %v902_v2 = vpop.permute.xlu0 %901  ;;  %v806_v27 = vpop.permute.xlu1 %805 }
  0xc4   : > { %v1131_v36 = vsel %vm995_vm7, %v1097_v59, %v902_v2  ;;  %v1003_v62 = vsel %vm995_vm7, %v968_v41, %v806_v27  ;;  %v2183_v27 = vunpack.i.h.bf16 %v2674_v8 }
  0xc5   : > { %789 = vrot.lane.b32.xlu0 %v2789_v11, %s2211_s26  ;;  %1383 = vmatprep.mubr.bf16.mxu0 %v1131_v36 }
  0xc6   : > { %917 = vrot.lane.b32.xlu1 %v2411_v52, %s2213_s11  ;;  %1384 = vmatmul.mubr.bf16.gmra.mrb[8].mxu0 %v1003_v62 }
  0xc7   : > { %v862_v58 = vpop.permute.xlu0 %861  ;;  %v766_v37 = vpop.permute.xlu1 %765 }
  0xc8   : > { %v959_v25 = vsel %vm929_vm5, %v2309_v55, %v766_v37  ;;  %v1088_v32 = vsel %vm929_vm5, %v2498_v1, %v862_v58 }
  0xc9   : > { %821 = vrot.lane.b32.xlu0 %v2763_v33, %s2213_s11 }
  0xca   : > { %855 = vrot.lane.b32.xlu1 %v2396_v47, %s2212_s27 }
  0xcb   : > { %v894_v19 = vpop.permute.xlu0 %893  ;;  %v798_v12 = vpop.permute.xlu1 %797 }
  0xcc   : > { %v1121_v7 = vsel %vm962_vm6, %v1088_v32, %v894_v19  ;;  %v992_v0 = vsel %vm962_vm6, %v959_v25, %v798_v12 }
  0xcd   : > { %759 = vrot.lane.b32.xlu0 %v2806_v56, %s2212_s27 }
  0xce   : > { %887 = vrot.lane.b32.xlu1 %v2337_v4, %s2211_s26 }
  0xcf   : > { %v926_v57 = vpop.permute.xlu0 %925  ;;  %v830_v63 = vpop.permute.xlu1 %829 }
  0xd0   : > { %v1167_v18 = vsel %vm995_vm7, %v1121_v7, %v926_v57  ;;  %v1039_v55 = vsel %vm995_vm7, %v992_v0, %v830_v63 }
  0xd1   : > { %791 = vrot.lane.b32.xlu0 %v2817_v45, %s2211_s26  ;;  %1479 = vmatprep.mubr.bf16.mxu1 %v1167_v18 }
  0xd2   : > { %919 = vrot.lane.b32.xlu1 %v2483_v51, %s2213_s11  ;;  %1480 = vmatmul.mubr.bf16.gmra.mrb[8].mxu1 %v1039_v55 }
  0xd3   : > { %v840_v1 = vpop.permute.xlu0 %839  ;;  %v744_v4 = vpop.permute.xlu1 %743 }
  0xd4   : > { %v937_v38 = vsel %vm929_vm5, %v2427_v10, %v744_v4  ;;  %v1055_v14 = vsel %vm929_vm5, %v2528_v30, %v840_v1 }
  0xd5   : > { %823 = vrot.lane.b32.xlu0 %v2360_v21, %s2213_s11 }
  0xd7   : > { %v872_v60 = vpop.permute.xlu0 %871  ;;  %v776_v6 = vpop.permute.xlu1 %775 }
  0xd8   : > { %v1099_v46 = vsel %vm962_vm6, %v1055_v14, %v872_v60  ;;  %v970_v5 = vsel %vm962_vm6, %v937_v38, %v776_v6 }
  0xdb   : > { %v904_v22 = vpop.permute.xlu0 %903  ;;  %v808_v51 = vpop.permute.xlu1 %807 }
  0xdc   : > { %v1134_v59 = vsel %vm995_vm7, %v1099_v46, %v904_v22  ;;  %v1006_v2 = vsel %vm995_vm7, %v970_v5, %v808_v51 }
  0xdd   : > { %1391 = vmatprep.mubr.bf16.mxu0 %v1134_v59 }
  0xde   : > { %1392 = vmatmul.mubr.bf16.gmra.mrb[12].mxu0 %v1006_v2 }
  0xdf   : > { %v864_v21 = vpop.permute.xlu0 %863  ;;  %v768_v41 = vpop.permute.xlu1 %767 }
  0xe0   : > { %v1091_v10 = vsel %vm929_vm5, %v2557_v50, %v864_v21  ;;  %v961_v36 = vsel %vm929_vm5, %v2458_v35, %v768_v41 }
  0xe1   : > { %v1123_v58 = vsel %vm962_vm6, %v1091_v10, %v2183_v27 }
  0xe3   : > { %v800_v30 = vpop.permute.xlu0 %799  ;;  %v928_v62 = vpop.permute.xlu1 %927 }
  0xe4   : > { %v1170_v37 = vsel %vm995_vm7, %v1123_v58, %v928_v62  ;;  %v994_v19 = vsel %vm962_vm6, %v961_v36, %v800_v30 }
  0xe5   : > { %1487 = vmatprep.mubr.bf16.mxu1 %v1170_v37 }
  0xe7   : > { %v832_v12 = vpop.permute.xlu0 %831  ;;  %v842_v25 = vpop.permute.xlu1 %841 }
  0xe8   : > { %v1042_v32 = vsel %vm995_vm7, %v994_v19, %v832_v12  ;;  %v1058_v35 = vsel %vm929_vm5, %v2582_v20, %v842_v25 }
  0xe9   : > { %1488 = vmatmul.mubr.bf16.gmra.mrb[12].mxu1 %v1042_v32 }
  0xea   : > { %2119 = vmatprep.mubr.msk.bf16.mxu1 %vm929_vm5, %v2439_v15 }
  0xeb   : > { %v746_v50 = vpop.permute.xlu0 %745  ;;  %v874_v8 = vpop.permute.xlu1 %873 }
  0xec   : > { %v1101_v57 = vsel %vm962_vm6, %v1058_v35, %v874_v8  ;;  %v939_v18 = vsel %vm929_vm5, %v2491_v61, %v746_v50  ;;  %v3139_v35 = vld [vmem:[#allocation3_spill] sm:$0xff] }
  0xef   : > { %v778_v7 = vpop.permute.xlu0 %777  ;;  %v906_v0 = vpop.permute.xlu1 %905 }
  0xf0   : > { %v1137_v63 = vsel %vm995_vm7, %v1101_v57, %v906_v0  ;;  %v972_v15 = vsel %vm962_vm6, %v939_v18, %v778_v7 }
  0xf1   : > { %2120 = vmatmul.mubr.msk.bf16.vlgmr.msra.gmra.mrb[16].mxu1 %vm929_vm5, %v2512_v17  ;;  %1399 = vmatprep.mubr.bf16.mxu0 %v1137_v63 }
  0xf2   : > { %2123 = vmatprep.mubr.msk.bf16.mxu1 %vm929_vm5, %v2568_v3 }
  0xf3   : > { %v810_v55 = vpop.permute.xlu0 %809  ;;  %v844_v20 = vpop.permute.xlu1 %843 }
  0xf4   : > { %v1009_v1 = vsel %vm995_vm7, %v972_v15, %v810_v55  ;;  %v1061_v6 = vsel %vm929_vm5, %v2633_v28, %v844_v20 }
  0xf5   : > { %1400 = vmatmul.mubr.bf16.gmra.mrb[16].mxu0 %v1009_v1 }
  0xf7   : > { %v748_v4 = vpop.permute.xlu0 %747  ;;  %v876_v60 = vpop.permute.xlu1 %875 }
  0xf8   : > { %v1103_v17 = vsel %vm962_vm6, %v1061_v6, %v876_v60  ;;  %v941_v14 = vsel %vm929_vm5, %v2548_v48, %v748_v4 }
  0xf9   : > { %2124 = vmatmul.mubr.msk.bf16.gmra.mrb[20].mxu1 %vm929_vm5, %v2617_v23 }
  0xfa   : > { %2127 = vmatprep.mubr.msk.bf16.mxu1 %vm929_vm5, %v2646_v24 }
  0xfb   : > { %v780_v61 = vpop.permute.xlu0 %779  ;;  %v908_v3 = vpop.permute.xlu1 %907 }
  0xfc   : > { %v1140_v38 = vsel %vm995_vm7, %v1103_v17, %v908_v3  ;;  %v974_v46 = vsel %vm962_vm6, %v941_v14, %v780_v61 }
  0xfd   : > { %1407 = vmatprep.mubr.bf16.mxu0 %v1140_v38 }
  0xff   : > { %v812_v22 = vpop.permute.xlu0 %811  ;;  %v846_v28 = vpop.permute.xlu1 %845 }
 0x100   : > { %v1012_v5 = vsel %vm995_vm7, %v974_v46, %v812_v22  ;;  %v1064_v51 = vsel %vm929_vm5, %v2662_v44, %v846_v28 }
 0x101   : > { %1408 = vmatmul.mubr.bf16.gmra.mrb[20].mxu0 %v1012_v5  ;;  %2128 = vmatmul.mubr.msk.bf16.gmra.mrb[24].mxu1 %vm929_vm5, %v2677_v9 }
 0x102   : > { %2131 = vmatprep.mubr.msk.bf16.mxu1 %vm929_vm5, %v2706_v54 }
 0x103   : > { %v750_v23 = vpop.permute.xlu0 %749  ;;  %v878_v24 = vpop.permute.xlu1 %877 }
 0x104   : > { %v1105_v59 = vsel %vm962_vm6, %v1064_v51, %v878_v24  ;;  %v943_v9 = vsel %vm929_vm5, %v2600_v34, %v750_v23 }
 0x107   : > { %v782_v48 = vpop.permute.xlu0 %781  ;;  %v910_v2 = vpop.permute.xlu1 %909 }
 0x108   : > { %v1143_v21 = vsel %vm995_vm7, %v1105_v59, %v910_v2  ;;  %v976_v54 = vsel %vm962_vm6, %v943_v9, %v782_v48 }
 0x109   : > { %2132 = vmatmul.mubr.msk.bf16.gmra.mrb[28].mxu1 %vm929_vm5, %v2753_v49  ;;  %1415 = vmatprep.mubr.bf16.mxu0 %v1143_v21 }
 0x10a   : > { %2135 = vmatprep.mubr.msk.bf16.mxu1 %vm929_vm5, %v2789_v11 }
 0x10b   : > { %v814_v41 = vpop.permute.xlu0 %813  ;;  %v848_v44 = vpop.permute.xlu1 %847 }
 0x10c   : > { %v1015_v10 = vsel %vm995_vm7, %v976_v54, %v814_v41  ;;  %v1067_v36 = vsel %vm929_vm5, %v2693_v39, %v848_v44 }
 0x10d   : > { %1416 = vmatmul.mubr.bf16.gmra.mrb[24].mxu0 %v1015_v10 }
 0x10f   : > { %v752_v27 = vpop.permute.xlu0 %751 }
 0x110   : > { %v880_v30 = vpop.permute.xlu1 %879  ;;  %v945_v58 = vsel %vm929_vm5, %v2626_v31, %v752_v27 }
 0x111   : > { %2136 = vmatmul.mubr.msk.bf16.gmra.mrb[32].mxu1 %vm929_vm5, %v2817_v45  ;;  %v1107_v49 = vsel %vm962_vm6, %v1067_v36, %v880_v30 }
 0x112   : > { %2139 = vmatprep.mubr.msk.bf16.mxu1 %vm929_vm5, %v2396_v47 }
 0x113   : > { %v784_v34 = vpop.permute.xlu0 %783 }
 0x114   : > { %v912_v11 = vpop.permute.xlu1 %911  ;;  %v978_v37 = vsel %vm962_vm6, %v945_v58, %v784_v34 }
 0x115   : > { %v1146_v62 = vsel %vm995_vm7, %v1107_v49, %v912_v11 }
 0x116   : > { %1423 = vmatprep.mubr.bf16.mxu0 %v1146_v62 }
 0x117   : > { %v816_v19 = vpop.permute.xlu0 %815 }
 0x118   : > { %v850_v39 = vpop.permute.xlu1 %849  ;;  %v1018_v12 = vsel %vm995_vm7, %v978_v37, %v816_v19 }
 0x119   : > { %1424 = vmatmul.mubr.bf16.gmra.mrb[28].mxu0 %v1018_v12  ;;  %2140 = vmatmul.mubr.msk.bf16.gmra.mrb[36].mxu1 %vm929_vm5, %v2372_v26  ;;  %v1070_v25 = vsel %vm929_vm5, %v2736_v13, %v850_v39 }
 0x11a   : > { %2143 = vmatprep.mubr.msk.bf16.mxu1 %vm929_vm5, %v2479_v16 }
 0x11b   : > { %v754_v47 = vpop.permute.xlu0 %753 }
 0x11c   : > { %v882_v45 = vpop.permute.xlu1 %881  ;;  %v947_v26 = vsel %vm929_vm5, %v2655_v42, %v754_v47 }
 0x11d   : > { %v1109_v32 = vsel %vm962_vm6, %v1070_v25, %v882_v45 }
 0x11f   : > { %v786_v31 = vpop.permute.xlu0 %785 }
 0x120   : > { %v914_v50 = vpop.permute.xlu1 %913  ;;  %v980_v16 = vsel %vm962_vm6, %v947_v26, %v786_v31 }
 0x121   : > { %v1149_v8 = vsel %vm995_vm7, %v1109_v32, %v914_v50  ;;  %2144 = vmatmul.mubr.msk.bf16.gmra.mrb[40].mxu1 %vm929_vm5, %v2539_v40  ;;  %v3140_v40 = vld [vmem:[#allocation2_spill] sm:$0xff] }
 0x122   : > { %1431 = vmatprep.mubr.bf16.mxu0 %v1149_v8  ;;  %2147 = vmatprep.mubr.msk.bf16.mxu1 %vm929_vm5, %v3139_v35 }
 0x123   : > { %v818_v7 = vpop.permute.xlu0 %817 }
 0x124   : > { %v852_v13 = vpop.permute.xlu1 %851  ;;  %v1021_v57 = vsel %vm995_vm7, %v980_v16, %v818_v7 }
 0x125   : > { %1432 = vmatmul.mubr.bf16.gmra.mrb[32].mxu0 %v1021_v57  ;;  %v1073_v18 = vsel %vm929_vm5, %v2775_v43, %v852_v13 }
 0x127   : > { %v756_v0 = vpop.permute.xlu0 %755 }
 0x128   : > { %v884_v63 = vpop.permute.xlu1 %883  ;;  %v949_v1 = vsel %vm929_vm5, %v2686_v29, %v756_v0 }
 0x129   : > { %2148 = vmatmul.mubr.msk.bf16.gmra.mrb[44].mxu1 %vm929_vm5, %v3140_v40  ;;  %v1111_v15 = vsel %vm962_vm6, %v1073_v18, %v884_v63 }
 0x12b   : > { %v788_v42 = vpop.permute.xlu0 %787 }
 0x12c   : > { %v916_v55 = vpop.permute.xlu1 %915  ;;  %v982_v4 = vsel %vm962_vm6, %v949_v1, %v788_v42 }
 0x12d   : > { %v1152_v20 = vsel %vm995_vm7, %v1111_v15, %v916_v55 }
 0x12e   : > { %1439 = vmatprep.mubr.bf16.mxu0 %v1152_v20 }
 0x12f   : > { %v820_v60 = vpop.permute.xlu0 %819 }
 0x130   : > { %v854_v6 = vpop.permute.xlu1 %853  ;;  %v1024_v61 = vsel %vm995_vm7, %v982_v4, %v820_v60 }
 0x131   : > { %1440 = vmatmul.mubr.bf16.gmra.mrb[36].mxu0 %v1024_v61  ;;  %v1076_v3 = vsel %vm929_vm5, %v2806_v56, %v854_v6 }
 0x133   : > { %v758_v43 = vpop.permute.xlu0 %757 }
 0x134   : > { %v886_v17 = vpop.permute.xlu1 %885  ;;  %v951_v29 = vsel %vm929_vm5, %v2725_v53, %v758_v43 }
 0x135   : > { %v1113_v14 = vsel %vm962_vm6, %v1076_v3, %v886_v17 }
 0x137   : > { %v790_v38 = vpop.permute.xlu0 %789 }
 0x138   : > { %v918_v46 = vpop.permute.xlu1 %917  ;;  %v984_v28 = vsel %vm962_vm6, %v951_v29, %v790_v38  ;;  %v2993_v29 = vld [vmem:[%s3131_s2] ss:$0 sm:$0xff] }
 0x139   : > { %v1155_v22 = vsel %vm995_vm7, %v1113_v14, %v918_v46 }
 0x13a   : > { %1447 = vmatprep.mubr.bf16.mxu0 %v1155_v22 }
 0x13b   : > { %v822_v5 = vpop.permute.xlu0 %821 }
 0x13c   : > { %v856_v23 = vpop.permute.xlu1 %855  ;;  %v1027_v24 = vsel %vm995_vm7, %v984_v28, %v822_v5 }
 0x13d   : > { %1448 = vmatmul.mubr.bf16.gmra.mrb[40].mxu0 %v1027_v24  ;;  %v1079_v56 = vsel %vm929_vm5, %v2411_v52, %v856_v23 }
 0x13f   : > { %v760_v51 = vpop.permute.xlu0 %759 }
 0x140   : > { %v888_v48 = vpop.permute.xlu1 %887  ;;  %v953_v53 = vsel %vm929_vm5, %v2763_v33, %v760_v51 }
 0x141   : > { %v1115_v2 = vsel %vm962_vm6, %v1079_v56, %v888_v48 }
 0x143   : > { %v792_v59 = vpop.permute.xlu0 %791 }
 0x144   : > { %v920_v21 = vpop.permute.xlu1 %919  ;;  %v986_v54 = vsel %vm962_vm6, %v953_v53, %v792_v59 }
 0x145   : > { %v1158_v9 = vsel %vm995_vm7, %v1115_v2, %v920_v21 }
 0x146   : > { %1455 = vmatprep.mubr.bf16.mxu0 %v1158_v9 }
 0x147   : > { %v824_v41 = vpop.permute.xlu0 %823 }
 0x148   : > { %v1030_v44 = vsel %vm995_vm7, %v986_v54, %v824_v41 }
 0x149   : > { %1456 = vmatmul.mubr.bf16.gmra.mrb[44].mxu0 %v1030_v44 }
 0x171   : > { %v2001_v10 = vpop.f32.mrb[0].mxu0 }
 0x172   : > { %v2002_v27 = vpop.f32.mrb[1].mxu0 }
 0x173   : > { %v2003_v30 = vadd.f32 %v2002_v27, %v2001_v10  ;;  %v2004_v52 = vpop.f32.mrb[2].mxu0 }
 0x174   : > { %v2005_v36 = vpop.f32.mrb[3].mxu0 }
 0x175   : > { %v2006_v34 = vadd.f32 %v2005_v36, %v2004_v52  ;;  %v1370_v23 = vadd.f32 %v2003_v30, %v2993_v29 }
 0x176   : > { %v2073_v49 = vpop.f32.mrb[0].mxu1 }
 0x177   : > { %v2074_v11 = vpop.f32.mrb[1].mxu1  ;;  %v1373_v2 = vadd.f32 %v2006_v34, %v2993_v29 }
 0x178   : > { %v2974_v62 = vadd.f32 %v2074_v11, %v2073_v49  ;;  %v2076_v58 = vpop.f32.mrb[2].mxu1 }
 0x179   : > { %v2077_v37 = vpop.f32.mrb[3].mxu1 }
 0x17a   : > { %v2976_v33 = vadd.f32 %v2077_v37, %v2076_v58 }
 0x181   : > { %v2007_v19 = vpop.f32.mrb[4].mxu0 }
 0x182   : > { %v2008_v39 = vpop.f32.mrb[5].mxu0 }
 0x183   : > { %v2009_v12 = vadd.f32 %v2008_v39, %v2007_v19  ;;  %v2010_v47 = vpop.f32.mrb[6].mxu0 }
 0x184   : > { %v2011_v45 = vpop.f32.mrb[7].mxu0 }
 0x185   : > { %v2012_v25 = vadd.f32 %v2011_v45, %v2010_v47  ;;  %v1378_v28 = vadd.f32 %v2009_v12, %v2993_v29 }
 0x187   : > { %v1381_v48 = vadd.f32 %v2012_v25, %v2993_v29 }
 0x18d   : > { %v2079_v31 = vpop.f32.mrb[4].mxu1 }
 0x18e   : > { %v2080_v32 = vpop.f32.mrb[5].mxu1 }
 0x18f   : > { %v2978_v50 = vadd.f32 %v2080_v32, %v2079_v31  ;;  %v2082_v8 = vpop.f32.mrb[6].mxu1 }
 0x190   : > { %v2083_v26 = vpop.f32.mrb[7].mxu1 }
 0x191   : > { %v2980_v35 = vadd.f32 %v2083_v26, %v2082_v8 }
 0x199   : > { %v2013_v16 = vpop.f32.mrb[8].mxu0 }
 0x19a   : > { %v2014_v7 = vpop.f32.mrb[9].mxu0 }
 0x19b   : > { %v2015_v13 = vadd.f32 %v2014_v7, %v2013_v16  ;;  %v2016_v57 = vpop.f32.mrb[10].mxu0 }
 0x19c   : > { %v2017_v0 = vpop.f32.mrb[11].mxu0 }
 0x19d   : > { %v2018_v63 = vadd.f32 %v2017_v0, %v2016_v57  ;;  %v1386_v37 = vadd.f32 %v2015_v13, %v2993_v29 }
 0x19f   : > { %v1389_v25 = vadd.f32 %v2018_v63, %v2993_v29 }
 0x1a5   : > { %v2085_v18 = vpop.f32.mrb[8].mxu1 }
 0x1a6   : > { %v2086_v40 = vpop.f32.mrb[9].mxu1 }
 0x1a7   : > { %v2982_v42 = vadd.f32 %v2086_v40, %v2085_v18  ;;  %v2088_v15 = vpop.f32.mrb[10].mxu1 }
 0x1a8   : > { %v2089_v55 = vpop.f32.mrb[11].mxu1 }
 0x1a9   : > { %v2984_v20 = vadd.f32 %v2089_v55, %v2088_v15 }
 0x1b1   : > { %v2019_v1 = vpop.f32.mrb[12].mxu0 }
 0x1b2   : > { %v2020_v4 = vpop.f32.mrb[13].mxu0 }
 0x1b3   : > { %v2021_v60 = vadd.f32 %v2020_v4, %v2019_v1  ;;  %v2022_v6 = vpop.f32.mrb[14].mxu0 }
 0x1b4   : > { %v2023_v61 = vpop.f32.mrb[15].mxu0 }
 0x1b5   : > { %v2024_v43 = vadd.f32 %v2023_v61, %v2022_v6  ;;  %v1394_v34 = vadd.f32 %v2021_v60, %v2993_v29 }
 0x1b7   : > { %v1397_v12 = vadd.f32 %v2024_v43, %v2993_v29 }
 0x1bc   : > { %v2091_v17 = vpop.f32.mrb[12].mxu1 }
 0x1bd   : > { %v2092_v3 = vpop.f32.mrb[13].mxu1 }
 0x1be   : > { %v2986_v38 = vadd.f32 %v2092_v3, %v2091_v17  ;;  %v2094_v14 = vpop.f32.mrb[14].mxu1 }
 0x1bf   : > { %v2095_v46 = vpop.f32.mrb[15].mxu1 }
 0x1c0   : > { %v2988_v22 = vadd.f32 %v2095_v46, %v2094_v14 }
 0x1c4   : > { %v2121_v5 = vpop.f32.mrb[16].mxu1 }
 0x1c5   : > { %v1539_v24 = vadd.f32 %v2121_v5, %v1378_v28  ;;  %v1530_v51 = vpop.f32.mrb[17].mxu1 }
 0x1c6   : > { %v1531_v56 = vadd.f32 %v1530_v51, %v1370_v23  ;;  %v2122_v59 = vpop.f32.mrb[18].mxu1 }
 0x1c7   : > { %v1955_v21 = vpack.c.bf16 %v1539_v24, %v1539_v24  ;;  %v1542_v9 = vadd.f32 %v2122_v59, %v1381_v48  ;;  %v1533_v53 = vpop.f32.mrb[19].mxu1 }
 0x1c8   : > { %v1953_v54 = vpack.c.bf16 %v1531_v56, %v1531_v56  ;;  %v1534_v41 = vadd.f32 %v1533_v53, %v1373_v2  ;;  %v2025_v44 = vpop.f32.mrb[16].mxu0 }
 0x1c9   : > { %1788 = vst.msk [vmem:[%s3002_s10 + $0x8] sm:$0xf] %vm1785_vm8, %v1955_v21  ;;  %v1956_v10 = vpack.c.bf16 %v1542_v9, %v1542_v9  ;;  %v2026_v27 = vpop.f32.mrb[17].mxu0 }
 0x1ca   : > { %1786 = vst.msk [vmem:[%s3002_s10] sm:$0xf] %vm1785_vm8, %v1953_v54  ;;  %v1954_v30 = vpack.c.bf16 %v1534_v41, %v1534_v41  ;;  %v2027_v52 = vadd.f32 %v2026_v27, %v2025_v44  ;;  %v2028_v36 = vpop.f32.mrb[18].mxu0 }
 0x1cb   : > { %1789 = vst.msk [vmem:[%s3002_s10 + $0xc] sm:$0xf] %vm1785_vm8, %v1956_v10  ;;  %v2029_v49 = vpop.f32.mrb[19].mxu0 }
 0x1cc   : > { %1787 = vst.msk [vmem:[%s3002_s10 + $0x4] sm:$0xf] %vm1785_vm8, %v1954_v30  ;;  %v2030_v11 = vadd.f32 %v2029_v49, %v2028_v36  ;;  %v2125_v58 = vpop.f32.mrb[20].mxu1  ;;  %v1402_v63 = vadd.f32 %v2027_v52, %v2993_v29 }
 0x1cd   : > { %v1555_v19 = vadd.f32 %v2125_v58, %v1394_v34  ;;  %v1546_v39 = vpop.f32.mrb[21].mxu1 }
 0x1ce   : > { %v1547_v47 = vadd.f32 %v1546_v39, %v1386_v37  ;;  %v2126_v45 = vpop.f32.mrb[22].mxu1  ;;  %v1405_v60 = vadd.f32 %v2030_v11, %v2993_v29 }
 0x1cf   : > { %v1959_v31 = vpack.c.bf16 %v1555_v19, %v1555_v19  ;;  %v1558_v32 = vadd.f32 %v2126_v45, %v1397_v12  ;;  %v1549_v8 = vpop.f32.mrb[23].mxu1 }
 0x1d0   : > { %v1957_v26 = vpack.c.bf16 %v1547_v47, %v1547_v47  ;;  %v1550_v16 = vadd.f32 %v1549_v8, %v1389_v25 }
 0x1d1   : > { %1792 = vst.msk [vmem:[%s3002_s10 + $0x18] sm:$0xf] %vm1785_vm8, %v1959_v31  ;;  %v1960_v7 = vpack.c.bf16 %v1558_v32, %v1558_v32 }
 0x1d2   : > { %1790 = vst.msk [vmem:[%s3002_s10 + $0x10] sm:$0xf] %vm1785_vm8, %v1957_v26  ;;  %v1958_v13 = vpack.c.bf16 %v1550_v16, %v1550_v16 }
 0x1d3   : > { %1793 = vst.msk [vmem:[%s3002_s10 + $0x1c] sm:$0xf] %vm1785_vm8, %v1960_v7 }
 0x1d4   : > { %1791 = vst.msk [vmem:[%s3002_s10 + $0x14] sm:$0xf] %vm1785_vm8, %v1958_v13  ;;  %v2031_v57 = vpop.f32.mrb[20].mxu0  ;;  %v2129_v0 = vpop.f32.mrb[24].mxu1 }
 0x1d5   : > { %v2032_v18 = vpop.f32.mrb[21].mxu0  ;;  %v1562_v40 = vpop.f32.mrb[25].mxu1 }
 0x1d6   : > { %v2033_v15 = vadd.f32 %v2032_v18, %v2031_v57  ;;  %v1563_v55 = vadd.f32 %v1562_v40, %v1402_v63  ;;  %v2034_v1 = vpop.f32.mrb[22].mxu0  ;;  %v2130_v4 = vpop.f32.mrb[26].mxu1  ;;  %v1474_v57 = vadd.f32 %v2978_v50, %v2993_v29  ;;  %v1466_v40 = vadd.f32 %v2974_v62, %v2993_v29 }
 0x1d7   : > { %v2035_v6 = vpop.f32.mrb[23].mxu0  ;;  %v1565_v61 = vpop.f32.mrb[27].mxu1  ;;  %v1469_v50 = vadd.f32 %v2976_v33, %v2993_v29 }
 0x1d8   : > { %v1410_v43 = vadd.f32 %v2033_v15, %v2993_v29  ;;  %v1961_v17 = vpack.c.bf16 %v1563_v55, %v1563_v55  ;;  %v2036_v3 = vadd.f32 %v2035_v6, %v2034_v1  ;;  %v1566_v14 = vadd.f32 %v1565_v61, %v1405_v60 }
 0x1d9   : > { %v1477_v1 = vadd.f32 %v2980_v35, %v2993_v29 }
 0x1da   : > { %v1571_v46 = vadd.f32 %v2129_v0, %v1410_v43  ;;  %1794 = vst.msk [vmem:[%s3002_s10 + $0x20] sm:$0xf] %vm1785_vm8, %v1961_v17  ;;  %v1413_v28 = vadd.f32 %v2036_v3, %v2993_v29  ;;  %v1962_v5 = vpack.c.bf16 %v1566_v14, %v1566_v14 }
 0x1dc   : > { %v1963_v23 = vpack.c.bf16 %v1571_v46, %v1571_v46  ;;  %v1574_v24 = vadd.f32 %v2130_v4, %v1413_v28  ;;  %1795 = vst.msk [vmem:[%s3002_s10 + $0x24] sm:$0xf] %vm1785_vm8, %v1962_v5  ;;  %v2133_v51 = vpop.f32.mrb[28].mxu1 }
 0x1dd   : > { %v1578_v48 = vpop.f32.mrb[29].mxu1 }
 0x1de   : > { %1796 = vst.msk [vmem:[%s3002_s10 + $0x28] sm:$0xf] %vm1785_vm8, %v1963_v23  ;;  %v1964_v56 = vpack.c.bf16 %v1574_v24, %v1574_v24  ;;  %v2134_v59 = vpop.f32.mrb[30].mxu1  ;;  %v1490_v24 = vadd.f32 %v2986_v38, %v2993_v29 }
 0x1df   : > { %v1581_v2 = vpop.f32.mrb[31].mxu1 }
 0x1e0   : > { %1797 = vst.msk [vmem:[%s3002_s10 + $0x2c] sm:$0xf] %vm1785_vm8, %v1964_v56  ;;  %v2037_v21 = vpop.f32.mrb[24].mxu0 }
 0x1e1   : > { %v2038_v9 = vpop.f32.mrb[25].mxu0 }
 0x1e2   : > { %v2039_v53 = vadd.f32 %v2038_v9, %v2037_v21  ;;  %v2040_v54 = vpop.f32.mrb[26].mxu0  ;;  %v1493_v9 = vadd.f32 %v2988_v22, %v2993_v29 }
 0x1e3   : > { %v2041_v41 = vpop.f32.mrb[27].mxu0 }
 0x1e4   : > { %v2042_v44 = vadd.f32 %v2041_v41, %v2040_v54  ;;  %v1418_v10 = vadd.f32 %v2039_v53, %v2993_v29  ;;  %v3038_v27 = vpop.f32.mrb[32].mxu1 }
 0x1e5   : > { %v1594_v30 = vpop.f32.mrb[33].mxu1 }
 0x1e6   : > { %v1579_v52 = vadd.f32 %v1578_v48, %v1418_v10  ;;  %v1421_v36 = vadd.f32 %v2042_v44, %v2993_v29  ;;  %v3041_v49 = vpop.f32.mrb[34].mxu1  ;;  %v1485_v44 = vadd.f32 %v2984_v20, %v2993_v29 }
 0x1e7   : > { %v3043_v34 = vpop.f32.mrb[35].mxu1 }
 0x1e8   : > { %v1965_v11 = vpack.c.bf16 %v1579_v52, %v1579_v52  ;;  %v1582_v58 = vadd.f32 %v1581_v2, %v1421_v36 }
 0x1ea   : > { %1798 = vst.msk [vmem:[%s3002_s10 + $0x30] sm:$0xf] %vm1785_vm8, %v1965_v11  ;;  %v1966_v37 = vpack.c.bf16 %v1582_v58, %v1582_v58 }
 0x1ec   : > { %1799 = vst.msk [vmem:[%s3002_s10 + $0x34] sm:$0xf] %vm1785_vm8, %v1966_v37  ;;  %v2043_v19 = vpop.f32.mrb[28].mxu0  ;;  %v3049_v39 = vpop.f32.mrb[36].mxu1 }
 0x1ed   : > { %v2044_v12 = vpop.f32.mrb[29].mxu0  ;;  %v3051_v47 = vpop.f32.mrb[37].mxu1 }
 0x1ee   : > { %v2045_v45 = vadd.f32 %v2044_v12, %v2043_v19  ;;  %v2046_v25 = vpop.f32.mrb[30].mxu0  ;;  %v3053_v31 = vpop.f32.mrb[38].mxu1 }
 0x1ef   : > { %v2047_v32 = vpop.f32.mrb[31].mxu0  ;;  %v3055_v8 = vpop.f32.mrb[39].mxu1 }
 0x1f0   : > { %v1426_v26 = vadd.f32 %v2045_v45, %v2993_v29  ;;  %v2048_v16 = vadd.f32 %v2047_v32, %v2046_v25 }
 0x1f2   : > { %v1587_v7 = vadd.f32 %v2133_v51, %v1426_v26  ;;  %v1429_v13 = vadd.f32 %v2048_v16, %v2993_v29 }
 0x1f4   : > { %v1967_v0 = vpack.c.bf16 %v1587_v7, %v1587_v7  ;;  %v1590_v63 = vadd.f32 %v2134_v59, %v1429_v13  ;;  %v2145_v18 = vpop.f32.mrb[40].mxu1  ;;  %v1482_v59 = vadd.f32 %v2982_v42, %v2993_v29 }
 0x1f5   : > { %v1635_v15 = vadd.f32 %v2145_v18, %v1474_v57  ;;  %v1626_v55 = vpop.f32.mrb[41].mxu1 }
 0x1f6   : > { %1800 = vst.msk [vmem:[%s3002_s10 + $0x38] sm:$0xf] %vm1785_vm8, %v1967_v0  ;;  %v1968_v4 = vpack.c.bf16 %v1590_v63, %v1590_v63  ;;  %v1627_v60 = vadd.f32 %v1626_v55, %v1466_v40  ;;  %v2146_v6 = vpop.f32.mrb[42].mxu1 }
 0x1f7   : > { %v1979_v61 = vpack.c.bf16 %v1635_v15, %v1635_v15  ;;  %v1638_v43 = vadd.f32 %v2146_v6, %v1477_v1  ;;  %v1629_v62 = vpop.f32.mrb[43].mxu1 }
 0x1f8   : > { %1801 = vst.msk [vmem:[%s3002_s10 + $0x3c] sm:$0xf] %vm1785_vm8, %v1968_v4  ;;  %v1977_v17 = vpack.c.bf16 %v1627_v60, %v1627_v60  ;;  %v1630_v3 = vadd.f32 %v1629_v62, %v1469_v50  ;;  %v2049_v14 = vpop.f32.mrb[32].mxu0 }
 0x1f9   : > { %1812 = vst.msk [vmem:[%s3002_s10 + $0x68] sm:$0xf] %vm1785_vm8, %v1979_v61  ;;  %v1980_v35 = vpack.c.bf16 %v1638_v43, %v1638_v43  ;;  %v2050_v46 = vpop.f32.mrb[33].mxu0 }
 0x1fa   : > { %1810 = vst.msk [vmem:[%s3002_s10 + $0x60] sm:$0xf] %vm1785_vm8, %v1977_v17  ;;  %v1978_v28 = vpack.c.bf16 %v1630_v3, %v1630_v3  ;;  %v2051_v5 = vadd.f32 %v2050_v46, %v2049_v14  ;;  %v2052_v23 = vpop.f32.mrb[34].mxu0 }
 0x1fb   : > { %1813 = vst.msk [vmem:[%s3002_s10 + $0x6c] sm:$0xf] %vm1785_vm8, %v1980_v35  ;;  %v2053_v33 = vpop.f32.mrb[35].mxu0 }
 0x1fc   : > { %1811 = vst.msk [vmem:[%s3002_s10 + $0x64] sm:$0xf] %vm1785_vm8, %v1978_v28  ;;  %v1434_v51 = vadd.f32 %v2051_v5, %v2993_v29  ;;  %v2054_v48 = vadd.f32 %v2053_v33, %v2052_v23  ;;  %v2149_v56 = vpop.f32.mrb[44].mxu1 }
 0x1fd   : > { %v1651_v2 = vadd.f32 %v2149_v56, %v1490_v24  ;;  %v1642_v21 = vpop.f32.mrb[45].mxu1 }
 0x1fe   : > { %v1595_v53 = vadd.f32 %v1594_v30, %v1434_v51  ;;  %v1437_v38 = vadd.f32 %v2054_v48, %v2993_v29  ;;  %v1643_v54 = vadd.f32 %v1642_v21, %v1482_v59  ;;  %v2150_v41 = vpop.f32.mrb[46].mxu1 }
 0x1ff   : > { %v1983_v42 = vpack.c.bf16 %v1651_v2, %v1651_v2  ;;  %v1654_v10 = vadd.f32 %v2150_v41, %v1493_v9  ;;  %v1645_v52 = vpop.f32.mrb[47].mxu1 }
 0x200   : > { %v1969_v36 = vpack.c.bf16 %v1595_v53, %v1595_v53  ;;  %v1598_v11 = vadd.f32 %v3043_v34, %v1437_v38  ;;  %v1981_v58 = vpack.c.bf16 %v1643_v54, %v1643_v54  ;;  %v1646_v22 = vadd.f32 %v1645_v52, %v1485_v44 }
 0x201   : > { %1816 = vst.msk [vmem:[%s3002_s10 + $0x78] sm:$0xf] %vm1785_vm8, %v1983_v42  ;;  %v1984_v30 = vpack.c.bf16 %v1654_v10, %v1654_v10 }
 0x202   : > { %1802 = vst.msk [vmem:[%s3002_s10 + $0x40] sm:$0xf] %vm1785_vm8, %v1969_v36  ;;  %v1970_v37 = vpack.c.bf16 %v1598_v11, %v1598_v11  ;;  %1814 = vst.msk [vmem:[%s3002_s10 + $0x70] sm:$0xf] %vm1785_vm8, %v1981_v58  ;;  %v1982_v19 = vpack.c.bf16 %v1646_v22, %v1646_v22 }
 0x203   : > { %1817 = vst.msk [vmem:[%s3002_s10 + $0x7c] sm:$0xf] %vm1785_vm8, %v1984_v30 }
 0x204   : > { %1803 = vst.msk [vmem:[%s3002_s10 + $0x44] sm:$0xf] %vm1785_vm8, %v1970_v37  ;;  %1815 = vst.msk [vmem:[%s3002_s10 + $0x74] sm:$0xf] %vm1785_vm8, %v1982_v19  ;;  %v2055_v20 = vpop.f32.mrb[36].mxu0 }
 0x205   : > { %v2056_v34 = vpop.f32.mrb[37].mxu0 }
 0x206   : > { %v2057_v12 = vadd.f32 %v2056_v34, %v2055_v20  ;;  %v2058_v45 = vpop.f32.mrb[38].mxu0 }
 0x207   : > { %v2059_v25 = vpop.f32.mrb[39].mxu0 }
 0x208   : > { %v1442_v32 = vadd.f32 %v2057_v12, %v2993_v29  ;;  %v2060_v26 = vadd.f32 %v2059_v25, %v2058_v45 }
 0x20a   : > { %v1603_v16 = vadd.f32 %v3038_v27, %v1442_v32  ;;  %v1445_v7 = vadd.f32 %v2060_v26, %v2993_v29 }
 0x20c   : > { %v1971_v13 = vpack.c.bf16 %v1603_v16, %v1603_v16  ;;  %v1606_v57 = vadd.f32 %v3041_v49, %v1445_v7 }
 0x20e   : > { %1804 = vst.msk [vmem:[%s3002_s10 + $0x48] sm:$0xf] %vm1785_vm8, %v1971_v13  ;;  %v1972_v0 = vpack.c.bf16 %v1606_v57, %v1606_v57 }
 0x210   : > { %1805 = vst.msk [vmem:[%s3002_s10 + $0x4c] sm:$0xf] %vm1785_vm8, %v1972_v0  ;;  %v2061_v63 = vpop.f32.mrb[40].mxu0 }
 0x211   : > { %v2062_v18 = vpop.f32.mrb[41].mxu0 }
 0x212   : > { %v2063_v40 = vadd.f32 %v2062_v18, %v2061_v63  ;;  %v2064_v15 = vpop.f32.mrb[42].mxu0 }
 0x213   : > { %v2065_v55 = vpop.f32.mrb[43].mxu0 }
 0x214   : > { %v1450_v1 = vadd.f32 %v2063_v40, %v2993_v29  ;;  %v2066_v27 = vadd.f32 %v2065_v55, %v2064_v15 }
 0x216   : > { %v1611_v4 = vadd.f32 %v3051_v47, %v1450_v1  ;;  %v1453_v60 = vadd.f32 %v2066_v27, %v2993_v29 }
 0x218   : > { %v1973_v6 = vpack.c.bf16 %v1611_v4, %v1611_v4  ;;  %v1614_v49 = vadd.f32 %v3055_v8, %v1453_v60 }
 0x21a   : > { %1806 = vst.msk [vmem:[%s3002_s10 + $0x50] sm:$0xf] %vm1785_vm8, %v1973_v6  ;;  %v1974_v50 = vpack.c.bf16 %v1614_v49, %v1614_v49 }
 0x21c   : > { %1807 = vst.msk [vmem:[%s3002_s10 + $0x54] sm:$0xf] %vm1785_vm8, %v1974_v50  ;;  %v2067_v61 = vpop.f32.mrb[44].mxu0 }
 0x21d   : > { %v2068_v43 = vpop.f32.mrb[45].mxu0 }
 0x21e   : > { %v2069_v62 = vadd.f32 %v2068_v43, %v2067_v61  ;;  %v2070_v17 = vpop.f32.mrb[46].mxu0 }
 0x21f   : > { %v2071_v3 = vpop.f32.mrb[47].mxu0 }
 0x220   : > { %v1458_v14 = vadd.f32 %v2069_v62, %v2993_v29  ;;  %v2072_v47 = vadd.f32 %v2071_v3, %v2070_v17 }
 0x222   : > { %v1619_v35 = vadd.f32 %v3049_v39, %v1458_v14  ;;  %v1461_v46 = vadd.f32 %v2072_v47, %v2993_v29 }
 0x224   : > { %v1975_v28 = vpack.c.bf16 %v1619_v35, %v1619_v35  ;;  %v1622_v8 = vadd.f32 %v3053_v31, %v1461_v46 }
 0x226   : > { %1808 = vst.msk [vmem:[%s3002_s10 + $0x58] sm:$0xf] %vm1785_vm8, %v1975_v28  ;;  %v1976_v5 = vpack.c.bf16 %v1622_v8, %v1622_v8 }
 0x228   : > { %1809 = vst.msk [vmem:[%s3002_s10 + $0x5c] sm:$0xf] %vm1785_vm8, %v1976_v5 }
 0x229 PF: > { %s13_s12 = sadd.s32 1, %s2208_s12  }
 0x22a   : > { %p10_p4 = scmp.ge.s32.totalorder %s13_s12, 4  }
 0x22c   :  { %12 = sbr.rel (!%p10_p4) target bundleno = 1 (0x1), region = 62 }

// kernel: wave_attention.5
= control target key start
LH: loop header
LB: loop body
LE: loop exit
PB: predicated region body
PF: predicated region fallthrough
CT: control target
= control target key end

     0   :  { %s1251_s15 = smov 0   ;;  %s1253_s16 = smov 0   ;;  %s1714_s0 = inlined_call_operand.vmem [shape: f32[2,16,8,64], index: 0, kind: input, shape index: {}]   ;;  %s1715_s1 = inlined_call_operand.vmem [shape: bf16[32,8], index: 1, kind: input, shape index: {}]   ;;  %s1716_s2 = inlined_call_operand.vmem [shape: f32[1,8], index: 2, kind: input, shape index: {}]   ;;  %s1717_s3 = inlined_call_operand.vmem [shape: f32[1,8], index: 3, kind: input, shape index: {}]   ;;  %s1718_s4 = inlined_call_operand.vmem [shape: bf16[2,8,8,32], index: 4, kind: output, shape index: {}]  }
   0x1   :  { %s1255_s17 = smov 0  }
   0x2 LB: > { %s26_s18 = sadd.s32 1, %s1216_s16  ;;  %p1005_p0 = scmp.ge.s32.totalorder %s1220_s17, 1  ;;  %s1220_s17 = sphi %s1255_s17, %s14_s17   ;;  %s1216_s16 = sphi %s1253_s16, %s1727_s16   ;;  %s1212_s15 = sphi %s1251_s15, %s1726_s15  }
   0x3   : > { %p28_p1 = scmp.ge.s32.totalorder %s26_s18, 2  ;;  %p183_p2 = scmp.lt.s32.totalorder %s1220_s17, 3 }
   0x5   : > { %s1729_s18 = smov (%p28_p1, %s26_s18), 0  ;;  %p184_p3 = pnand %p1005_p0, %p183_p2 }
   0x6   : > { %p218_p4 = scmp.lt.s32.totalorder (!%p184_p3), %s1212_s15, 1  ;;  %v1196_v0 = vld [vmem:[%s1715_s1] sm:$0xff] (!%p184_p3)   ;;  %v1197_v1 = vld [vmem:[%s1715_s1 + $0x8] sm:$0xff] (!%p184_p3)   ;;  %vm342_vm0 = vcmask (!%p184_p3), 261120   ;;  %s1222_s27 = smov (!%p184_p3), 96   ;;  %vm870_vm1 = vcmask (!%p184_p3), 64512  }
   0x7   : > { %187 = sbr.rel (%p184_p3) target bundleno = 524 (0x20c), region = 36  ;;  %1068 = vmatprep.subr.bf16.mxu0 (!%p184_p3), %v1196_v0  ;;  %1104 = vmatprep.subr.bf16.mxu1 (!%p184_p3), %v1196_v0  ;;  %v1318_v50 = vld [vmem:[%s1716_s2] ss:$0 sm:$0xff] (!%p184_p3)  ;;  %s1223_s6 = smov (!%p184_p3), 8   ;;  %vm879_vm2 = vcmask (!%p184_p3), 130048   ;;  %vm888_vm3 = vcmask (!%p184_p3), 195584  }
   0x8   : > { %1069 = vmatpush3.bf16.msra.mxu0 (!%p184_p3), %v1196_v0  ;;  %1106 = vmatpush3.bf16.msra.mxu1 (!%p184_p3), %v1196_v0  ;;  %v1324_v52 = vld [vmem:[%s1717_s3] ss:$0 sm:$0xff] (!%p184_p3)  ;;  %s1224_s7 = smov (!%p184_p3), 16   ;;  %s1225_s8 = smov (!%p184_p3), 24   ;;  %vm905_vm4 = vcmask (!%p184_p3), 257024  }
   0x9   : > { %1070 = vmatprep.subr.bf16.mxu0 (!%p184_p3), %v1197_v1  ;;  %1105 = vmatprep.subr.bf16.mxu1 (!%p184_p3), %v1197_v1 }
   0xc   : > { %1071 = vmatpush3.bf16.msra.mxu0 (!%p184_p3), %v1197_v1  ;;  %1107 = vmatpush3.bf16.msra.mxu1 (!%p184_p3), %v1197_v1 }
   0xe   : > { %s1731_s15 = smov (!%p218_p4, %s1212_s15), 1 }
   0xf   : > { %s1040_s23 = sshll.u32 %s1731_s15, 7  ;;  %s1041_s9 = sshll.u32 %s1731_s15, 5 }
  0x10   : > { %s1281_s26 = scalar_lea.vmem %s1714_s0, %s1040_s23  ;;  %s1667_s12 = scalar_lea.vmem %s1718_s4, %s1041_s9 }
  0x11   : > { %v238_v2 = vld [vmem:[%s1281_s26] sm:$0xff]  ;;  %v240_v3 = vld [vmem:[%s1281_s26 + $0x10] sm:$0xff]  ;;  %v239_v4 = vld [vmem:[%s1281_s26 + $0x8] sm:$0xff] }
  0x12   : > { %v1042_v5 = vpack.c.bf16 %v240_v3, %v238_v2  ;;  %v241_v6 = vld [vmem:[%s1281_s26 + $0x18] sm:$0xff]  ;;  %v242_v7 = vld [vmem:[%s1281_s26 + $0x20] sm:$0xff]  ;;  %v244_v8 = vld [vmem:[%s1281_s26 + $0x30] sm:$0xff] }
  0x13   : > { %v1046_v9 = vpack.c.bf16 %v241_v6, %v239_v4  ;;  %v243_v10 = vld [vmem:[%s1281_s26 + $0x28] sm:$0xff]  ;;  %v245_v11 = vld [vmem:[%s1281_s26 + $0x38] sm:$0xff]  ;;  %v246_v12 = vld [vmem:[%s1281_s26 + $0x40] sm:$0xff]  ;;  %v1043_v13 = vpack.c.bf16 %v244_v8, %v242_v7 }
  0x14   : > { %290 = vrot.lane.b32.xlu0 %v1042_v5, %s1222_s27  ;;  %v1047_v14 = vpack.c.bf16 %v245_v11, %v243_v10  ;;  %v248_v15 = vld [vmem:[%s1281_s26 + $0x50] sm:$0xff]  ;;  %1072 = vmatprep.mubr.msk.bf16.mxu0 %vm342_vm0, %v1042_v5  ;;  %v247_v17 = vld [vmem:[%s1281_s26 + $0x48] sm:$0xff]  ;;  %v249_v18 = vld [vmem:[%s1281_s26 + $0x58] sm:$0xff] }
  0x15   : > { %318 = vrot.lane.b32.xlu1 %v1046_v9, %s1222_s27  ;;  %v1044_v16 = vpack.c.bf16 %v248_v15, %v246_v12  ;;  %1088 = vmatprep.mubr.msk.bf16.mxu1 %vm342_vm0, %v1046_v9  ;;  %v250_v19 = vld [vmem:[%s1281_s26 + $0x60] sm:$0xff]  ;;  %v252_v20 = vld [vmem:[%s1281_s26 + $0x70] sm:$0xff]  ;;  %v1048_v21 = vpack.c.bf16 %v249_v18, %v247_v17  ;;  %v251_v23 = vld [vmem:[%s1281_s26 + $0x68] sm:$0xff] }
  0x16   : > { %1073 = vmatmul.mubr.msk.bf16.vlgmr.msra.gmra.mrb[0].mxu0 %vm342_vm0, %v1043_v13  ;;  %1089 = vmatmul.mubr.msk.bf16.vlgmr.msra.gmra.mrb[0].mxu1 %vm342_vm0, %v1047_v14  ;;  %v1045_v22 = vpack.c.bf16 %v252_v20, %v250_v19  ;;  %v253_v24 = vld [vmem:[%s1281_s26 + $0x78] sm:$0xff] }
  0x17   : > { %1076 = vmatprep.mubr.msk.bf16.mxu0 %vm342_vm0, %v1044_v16  ;;  %1092 = vmatprep.mubr.msk.bf16.mxu1 %vm342_vm0, %v1048_v21  ;;  %v1049_v25 = vpack.c.bf16 %v253_v24, %v251_v23 }
  0x18   : > { %292 = vrot.lane.b32.xlu0 %v1043_v13, %s1222_s27 }
  0x19   : > { %320 = vrot.lane.b32.xlu1 %v1047_v14, %s1222_s27 }
  0x1c   : > { %294 = vrot.lane.b32.xlu0 %v1044_v16, %s1222_s27 }
  0x1d   : > { %296 = vrot.lane.b32.xlu1 %v1045_v22, %s1222_s27 }
  0x1e   : > { %1077 = vmatmul.mubr.msk.bf16.gmra.mrb[4].mxu0 %vm342_vm0, %v1045_v22  ;;  %1093 = vmatmul.mubr.msk.bf16.gmra.mrb[4].mxu1 %vm342_vm0, %v1049_v25 }
  0x20   : > { %322 = vrot.lane.b32.xlu0 %v1048_v21, %s1222_s27 }
  0x21   : > { %324 = vrot.lane.b32.xlu1 %v1049_v25, %s1222_s27 }
  0x86   : > { %v291_v26 = vpop.permute.xlu0 %290 }
  0x87   : > { %v319_v27 = vpop.permute.xlu1 %318  ;;  %1080 = vmatprep.mubr.msk.bf16.mxu0 %vm342_vm0, %v291_v26 }
  0x88   : > { %1096 = vmatprep.mubr.msk.bf16.mxu1 %vm342_vm0, %v319_v27 }
  0x8a   : > { %v293_v28 = vpop.permute.xlu0 %292 }
  0x8b   : > { %v321_v29 = vpop.permute.xlu1 %320  ;;  %1081 = vmatmul.mubr.msk.bf16.gmra.mrb[8].mxu0 %vm342_vm0, %v293_v28 }
  0x8c   : > { %1097 = vmatmul.mubr.msk.bf16.gmra.mrb[8].mxu1 %vm342_vm0, %v321_v29 }
  0x8e   : > { %v295_v30 = vpop.permute.xlu0 %294 }
  0x8f   : > { %v297_v31 = vpop.permute.xlu1 %296  ;;  %1084 = vmatprep.mubr.msk.bf16.mxu0 %vm342_vm0, %v295_v30 }
  0x92   : > { %v323_v32 = vpop.permute.xlu0 %322 }
  0x93   : > { %1085 = vmatmul.mubr.msk.bf16.gmra.mrb[12].mxu0 %vm342_vm0, %v297_v31  ;;  %v325_v33 = vpop.permute.xlu1 %324  ;;  %1100 = vmatprep.mubr.msk.bf16.mxu1 %vm342_vm0, %v323_v32 }
  0x94   : > { %1101 = vmatmul.mubr.msk.bf16.gmra.mrb[12].mxu1 %vm342_vm0, %v325_v33 }
  0xe9   : > { %v1074_v34 = vpop.f32.mrb[0].mxu0  ;;  %v1090_v35 = vpop.f32.mrb[0].mxu1 }
  0xea   : > { %v425_v36 = vpop.f32.mrb[1].mxu0  ;;  %v489_v37 = vpop.f32.mrb[1].mxu1  ;;  %v561_v51 = vmul.f32 %v1074_v34, %v1318_v50  ;;  %v577_v54 = vmul.f32 %v1090_v35, %v1318_v50 }
  0xeb   : > { %v1075_v38 = vpop.f32.mrb[2].mxu0  ;;  %v1091_v39 = vpop.f32.mrb[2].mxu1  ;;  %v559_v53 = vmul.f32 %v1318_v50, %v425_v36  ;;  %v575_v56 = vmul.f32 %v1318_v50, %v489_v37 }
  0xec   : > { %v428_v40 = vpop.f32.mrb[3].mxu0  ;;  %v492_v41 = vpop.f32.mrb[3].mxu1  ;;  %v562_v55 = vmul.f32 %v1075_v38, %v1318_v50  ;;  %v578_v57 = vmul.f32 %v1091_v39, %v1318_v50  ;;  %v1336_v62 = vadd.f32 %v1324_v52, %v561_v51  ;;  %v616_v3 = vadd.f32 %v1324_v52, %v577_v54 }
  0xed   : > { %v560_v58 = vmul.f32 %v1318_v50, %v428_v40  ;;  %v576_v59 = vmul.f32 %v1318_v50, %v492_v41  ;;  %v1342_v2 = vadd.f32 %v1324_v52, %v559_v53  ;;  %v614_v7 = vadd.f32 %v1324_v52, %v575_v56 }
  0xee   : > { %v1348_v6 = vadd.f32 %v1324_v52, %v562_v55  ;;  %v617_v8 = vadd.f32 %v1324_v52, %v578_v57  ;;  %v632_v14 = vmax.f32 %v1336_v62, 0.0  ;;  %v1370_v19 = vmax.f32 %v616_v3, 0.0 }
  0xef   : > { %v1354_v10 = vadd.f32 %v1324_v52, %v560_v58  ;;  %v615_v11 = vadd.f32 %v1324_v52, %v576_v59  ;;  %v630_v18 = vmax.f32 %v1342_v2, 0.0  ;;  %v1377_v23 = vmax.f32 %v614_v7, 0.0 }
  0xf0   : > { %v633_v22 = vmax.f32 %v1348_v6, 0.0  ;;  %v1379_v24 = vmax.f32 %v617_v8, 0.0 }
  0xf1   : > { %v1078_v42 = vpop.f32.mrb[4].mxu0  ;;  %v1094_v43 = vpop.f32.mrb[4].mxu1  ;;  %v631_v26 = vmax.f32 %v1354_v10, 0.0  ;;  %v1383_v27 = vmax.f32 %v615_v11, 0.0 }
  0xf2   : > { %v441_v44 = vpop.f32.mrb[5].mxu0  ;;  %v505_v45 = vpop.f32.mrb[5].mxu1  ;;  %v565_v60 = vmul.f32 %v1078_v42, %v1318_v50  ;;  %v581_v61 = vmul.f32 %v1094_v43, %v1318_v50 }
  0xf3   : > { %v1079_v46 = vpop.f32.mrb[6].mxu0  ;;  %v1095_v47 = vpop.f32.mrb[6].mxu1  ;;  %v563_v63 = vmul.f32 %v1318_v50, %v441_v44  ;;  %v579_v1 = vmul.f32 %v1318_v50, %v505_v45 }
  0xf4   : > { %v444_v48 = vpop.f32.mrb[7].mxu0  ;;  %v508_v49 = vpop.f32.mrb[7].mxu1  ;;  %v566_v0 = vmul.f32 %v1079_v46, %v1318_v50  ;;  %v582_v5 = vmul.f32 %v1095_v47, %v1318_v50  ;;  %v1358_v12 = vadd.f32 %v1324_v52, %v565_v60  ;;  %v620_v13 = vadd.f32 %v1324_v52, %v581_v61 }
  0xf5   : > { %v564_v4 = vmul.f32 %v1318_v50, %v444_v48  ;;  %v580_v9 = vmul.f32 %v1318_v50, %v508_v49  ;;  %v1363_v15 = vadd.f32 %v1324_v52, %v563_v63  ;;  %v618_v17 = vadd.f32 %v1324_v52, %v579_v1 }
  0xf6   : > { %v1366_v16 = vadd.f32 %v1324_v52, %v566_v0  ;;  %v621_v21 = vadd.f32 %v1324_v52, %v582_v5  ;;  %v636_v28 = vmax.f32 %v1358_v12, 0.0  ;;  %v1386_v29 = vmax.f32 %v620_v13, 0.0 }
  0xf7   : > { %v1373_v20 = vadd.f32 %v1324_v52, %v564_v4  ;;  %v619_v25 = vadd.f32 %v1324_v52, %v580_v9  ;;  %v634_v31 = vmax.f32 %v1363_v15, 0.0  ;;  %v1390_v33 = vmax.f32 %v618_v17, 0.0 }
  0xf8   : > { %v637_v32 = vmax.f32 %v1366_v16, 0.0  ;;  %v1394_v38 = vmax.f32 %v621_v21, 0.0 }
  0xf9   : > { %v635_v37 = vmax.f32 %v1373_v20, 0.0  ;;  %v1398_v43 = vmax.f32 %v619_v25, 0.0 }
 0x15e   : > { %v1082_v30 = vpop.f32.mrb[8].mxu0 }
 0x15f   : > { %v569_v34 = vmul.f32 %v1082_v30, %v1318_v50  ;;  %v457_v35 = vpop.f32.mrb[9].mxu0  ;;  %v1098_v36 = vpop.f32.mrb[8].mxu1 }
 0x160   : > { %v567_v39 = vmul.f32 %v1318_v50, %v457_v35  ;;  %v585_v40 = vmul.f32 %v1098_v36, %v1318_v50  ;;  %v1083_v41 = vpop.f32.mrb[10].mxu0  ;;  %v521_v42 = vpop.f32.mrb[9].mxu1 }
 0x161   : > { %v608_v44 = vadd.f32 %v1324_v52, %v569_v34  ;;  %v570_v45 = vmul.f32 %v1083_v41, %v1318_v50  ;;  %v583_v46 = vmul.f32 %v1318_v50, %v521_v42  ;;  %v460_v47 = vpop.f32.mrb[11].mxu0  ;;  %v1099_v48 = vpop.f32.mrb[10].mxu1 }
 0x162   : > { %v606_v49 = vadd.f32 %v1324_v52, %v567_v39  ;;  %v624_v51 = vadd.f32 %v1324_v52, %v585_v40  ;;  %v568_v53 = vmul.f32 %v1318_v50, %v460_v47  ;;  %v586_v54 = vmul.f32 %v1099_v48, %v1318_v50  ;;  %v524_v55 = vpop.f32.mrb[11].mxu1 }
 0x163   : > { %v640_v56 = vmax.f32 %v608_v44, 0.0  ;;  %v609_v57 = vadd.f32 %v1324_v52, %v570_v45  ;;  %v622_v58 = vadd.f32 %v1324_v52, %v583_v46  ;;  %v584_v59 = vmul.f32 %v1318_v50, %v524_v55 }
 0x164   : > { %v638_v60 = vmax.f32 %v606_v49, 0.0  ;;  %v1410_v61 = vmax.f32 %v624_v51, 0.0  ;;  %v607_v62 = vadd.f32 %v1324_v52, %v568_v53  ;;  %v625_v63 = vadd.f32 %v1324_v52, %v586_v54 }
 0x165   : > { %v1414_v0 = vadd.f32 %v640_v56, %v632_v14  ;;  %v1416_v1 = vsub.f32 %v632_v14, %v640_v56  ;;  %v641_v2 = vmax.f32 %v609_v57, 0.0  ;;  %v1418_v3 = vmax.f32 %v622_v58, 0.0 }
 0x166   : > { %v1420_v4 = vadd.f32 %v638_v60, %v630_v18  ;;  %v1422_v5 = vsub.f32 %v630_v18, %v638_v60  ;;  %v639_v7 = vmax.f32 %v607_v62, 0.0  ;;  %v1424_v8 = vmax.f32 %v625_v63, 0.0  ;;  %v1086_v9 = vpop.f32.mrb[12].mxu0 }
 0x167   : > { %v672_v11 = vadd.f32 %v1414_v0, %v1370_v19  ;;  %v696_v13 = vsub.f32 %v1414_v0, %v1370_v19  ;;  %v1432_v14 = vadd.f32 %v1416_v1, %v1370_v19  ;;  %v752_v17 = vsub.f32 %v1416_v1, %v1370_v19  ;;  %v473_v21 = vpop.f32.mrb[13].mxu0  ;;  %v1102_v18 = vpop.f32.mrb[12].mxu1 }
 0x168   : > { %v670_v25 = vadd.f32 %v1420_v4, %v1377_v23  ;;  %v694_v30 = vsub.f32 %v1420_v4, %v1377_v23  ;;  %v1442_v34 = vadd.f32 %v1422_v5, %v1377_v23  ;;  %v1087_v36 = vpop.f32.mrb[14].mxu0  ;;  %v537_v39 = vpop.f32.mrb[13].mxu1  ;;  %v1451_v41 = vadd.f32 %v641_v2, %v633_v22 }
 0x169   : > { %v1447_v40 = vadd.f32 %v672_v11, %v1410_v61  ;;  %v1455_v42 = vsub.f32 %v633_v22, %v641_v2  ;;  %v1459_v44 = vadd.f32 %v639_v7, %v631_v26  ;;  %v476_v45 = vpop.f32.mrb[15].mxu0  ;;  %v1103_v46 = vpop.f32.mrb[14].mxu1  ;;  %v1466_v48 = vsub.f32 %v631_v26, %v639_v7 }
 0x16a   : > { %v1462_v47 = vadd.f32 %v670_v25, %v1418_v3  ;;  %v623_v49 = vadd.f32 %v1324_v52, %v584_v59  ;;  %v573_v51 = vmul.f32 %v1086_v9, %v1318_v50  ;;  %v540_v6 = vpop.f32.mrb[15].mxu1  ;;  %v673_v22 = vadd.f32 %v1451_v41, %v1379_v24 }
 0x16b   : > { %v697_v53 = vsub.f32 %v1451_v41, %v1379_v24  ;;  %v1476_v54 = vadd.f32 %v1455_v42, %v1379_v24  ;;  %v671_v26 = vadd.f32 %v1459_v44, %v1383_v27  ;;  %v695_v55 = vsub.f32 %v1459_v44, %v1383_v27 }
 0x16c   : > { %v1486_v56 = vadd.f32 %v1466_v48, %v1383_v27  ;;  %v1491_v58 = vadd.f32 %v673_v22, %v1424_v8  ;;  %v1493_v59 = vmax.f32 %v623_v49, 0.0  ;;  %v612_v60 = vadd.f32 %v1324_v52, %v573_v51 }
 0x16d   : > { %v571_v62 = vmul.f32 %v1318_v50, %v473_v21  ;;  %v574_v63 = vmul.f32 %v1087_v36, %v1318_v50  ;;  %v572_v2 = vmul.f32 %v1318_v50, %v476_v45  ;;  %v589_v7 = vmul.f32 %v1102_v18, %v1318_v50 }
 0x16e   : > { %v587_v9 = vmul.f32 %v1318_v50, %v537_v39  ;;  %v1502_v11 = vadd.f32 %v671_v26, %v1493_v59  ;;  %v644_v25 = vmax.f32 %v612_v60, 0.0  ;;  %v590_v44 = vmul.f32 %v1103_v46, %v1318_v50 }
 0x16f   : > { %v610_v41 = vadd.f32 %v1324_v52, %v571_v62  ;;  %v613_v49 = vadd.f32 %v1324_v52, %v574_v63  ;;  %v611_v21 = vadd.f32 %v1324_v52, %v572_v2  ;;  %v628_v36 = vadd.f32 %v1324_v52, %v589_v7 }
 0x170   : > { %v626_v45 = vadd.f32 %v1324_v52, %v587_v9  ;;  %v1512_v18 = vadd.f32 %v644_v25, %v636_v28  ;;  %v1516_v39 = vsub.f32 %v636_v28, %v644_v25  ;;  %v629_v22 = vadd.f32 %v1324_v52, %v590_v44 }
 0x171   : > { %v642_v51 = vmax.f32 %v610_v41, 0.0  ;;  %v645_v46 = vmax.f32 %v613_v49, 0.0  ;;  %v643_v26 = vmax.f32 %v611_v21, 0.0  ;;  %v1519_v60 = vmax.f32 %v628_v36, 0.0 }
 0x172   : > { %v1521_v62 = vmax.f32 %v626_v45, 0.0  ;;  %v676_v63 = vadd.f32 %v1512_v18, %v1386_v29  ;;  %v700_v2 = vsub.f32 %v1512_v18, %v1386_v29  ;;  %v1529_v12 = vadd.f32 %v1516_v39, %v1386_v29 }
 0x173   : > { %v666_v7 = vadd.f32 %v642_v51, %v634_v31  ;;  %v1537_v9 = vsub.f32 %v634_v31, %v642_v51  ;;  %v669_v25 = vadd.f32 %v645_v46, %v637_v32  ;;  %v1543_v41 = vsub.f32 %v637_v32, %v645_v46 }
 0x174   : > { %v667_v44 = vadd.f32 %v643_v26, %v635_v37  ;;  %v1549_v49 = vsub.f32 %v635_v37, %v643_v26  ;;  %v1552_v21 = vadd.f32 %v676_v63, %v1519_v60  ;;  %v1554_v15 = vmax.f32 %v629_v22, 0.0 }
 0x175   : > { %v674_v31 = vadd.f32 %v666_v7, %v1390_v33  ;;  %v698_v36 = vsub.f32 %v666_v7, %v1390_v33  ;;  %v1560_v16 = vadd.f32 %v1537_v9, %v1390_v33  ;;  %v677_v20 = vadd.f32 %v669_v25, %v1394_v38 }
 0x176   : > { %v701_v37 = vsub.f32 %v669_v25, %v1394_v38  ;;  %v733_v45 = vadd.f32 %v1543_v41, %v1394_v38  ;;  %v675_v51 = vadd.f32 %v667_v44, %v1398_v43  ;;  %v699_v22 = vsub.f32 %v667_v44, %v1398_v43 }
 0x177   : > { %v731_v46 = vadd.f32 %v1549_v49, %v1398_v43  ;;  %v1577_v63 = vadd.f32 %v674_v31, %v1521_v62  ;;  %v1580_v7 = vadd.f32 %v677_v20, %v1554_v15  ;;  %v588_v25 = vmul.f32 %v1318_v50, %v540_v6 }
 0x178   : > { %v704_v32 = vsub.f32 %v696_v13, %v1410_v61  ;;  %v705_v44 = vsub.f32 %v697_v53, %v1424_v8  ;;  %v702_v26 = vsub.f32 %v694_v30, %v1418_v3  ;;  %v703_v31 = vsub.f32 %v695_v55, %v1493_v59 }
 0x179   : > { %v736_v20 = vsub.f32 %v1432_v14, %v1410_v61  ;;  %v627_v18 = vadd.f32 %v1324_v52, %v588_v25  ;;  %v737_v6 = vsub.f32 %v1476_v54, %v1424_v8  ;;  %v734_v0 = vsub.f32 %v1442_v34, %v1418_v3 }
 0x17a   : > { %v712_v50 = vmul.f32 0.5, %v704_v32  ;;  %v713_v13 = vmul.f32 0.5, %v705_v44  ;;  %v710_v53 = vmul.f32 0.5, %v702_v26  ;;  %v711_v28 = vmul.f32 0.5, %v703_v31 }
 0x17b   : > { %v744_v57 = vmul.f32 0.5, %v736_v20  ;;  %v659_v4 = vmax.f32 %v627_v18, 0.0  ;;  %v745_v30 = vmul.f32 0.5, %v737_v6  ;;  %v735_v55 = vsub.f32 %v1486_v56, %v1493_v59 }
 0x17c   : > { %v742_v35 = vmul.f32 0.5, %v734_v0  ;;  %v1136_v14 = vpack.i.bf16 %v713_v13, %v712_v50  ;;  %v1151_v10 = vpack.i.bf16 %v711_v28, %v710_v53  ;;  %v760_v52 = vadd.f32 %v752_v17, %v1410_v61 }
 0x17d   : > { %v1719_v34 = vsub.f32 %v1455_v42, %v1379_v24  ;;  %v1610_v32 = vadd.f32 %v675_v51, %v659_v4  ;;  %v1141_v18 = vpack.i.bf16 %v745_v30, %v744_v57  ;;  %v743_v26 = vmul.f32 0.5, %v735_v55 }
 0x17e   : > { %v1720_v56 = vsub.f32 %v1422_v5, %v1377_v23  ;;  %1137 = vrot.lane.b32.xlu1 %v1136_v14, %s1223_s6  ;;  %1152 = vrot.lane.b32.xlu0 %v1151_v10, %s1223_s6  ;;  %v768_v19 = vmul.f32 0.5, %v760_v52  ;;  %v1721_v24 = vsub.f32 %v1466_v48, %v1383_v27  ;;  %v709_v57 = vsub.f32 %v701_v37, %v1554_v15 }
 0x17f   : > { %v761_v54 = vadd.f32 %v1719_v34, %v1424_v8  ;;  %v708_v8 = vsub.f32 %v700_v2, %v1519_v60  ;;  %v1156_v17 = vpack.i.bf16 %v743_v26, %v742_v35  ;;  %v706_v23 = vsub.f32 %v698_v36, %v1521_v62 }
 0x180   : > { %v758_v25 = vadd.f32 %v1720_v56, %v1418_v3  ;;  %v759_v1 = vadd.f32 %v1721_v24, %v1493_v59  ;;  %v707_v51 = vsub.f32 %v699_v22, %v659_v4  ;;  %v717_v10 = vmul.f32 0.5, %v709_v57 }
 0x181   : > { %v769_v61 = vmul.f32 0.5, %v761_v54  ;;  %v716_v28 = vmul.f32 0.5, %v708_v8  ;;  %v714_v44 = vmul.f32 0.5, %v706_v23  ;;  %v740_v31 = vsub.f32 %v1529_v12, %v1519_v60 }
 0x182   : > { %v766_v42 = vmul.f32 0.5, %v758_v25  ;;  %v767_v5 = vmul.f32 0.5, %v759_v1  ;;  %v741_v27 = vsub.f32 %v733_v45, %v1554_v15  ;;  %1142 = vrot.lane.b32.xlu1 %v1141_v18, %s1224_s7  ;;  %1157 = vrot.lane.b32.xlu0 %v1156_v17, %s1224_s7  ;;  %v715_v48 = vmul.f32 0.5, %v707_v51 }
 0x183   : > { %v1146_v3 = vpack.i.bf16 %v769_v61, %v768_v19  ;;  %v738_v59 = vsub.f32 %v1560_v16, %v1521_v62  ;;  %v739_v2 = vsub.f32 %v731_v46, %v659_v4  ;;  %v1166_v36 = vpack.i.bf16 %v717_v10, %v716_v28 }
 0x184   : > { %v1161_v35 = vpack.i.bf16 %v767_v5, %v766_v42  ;;  %v748_v37 = vmul.f32 0.5, %v740_v31  ;;  %v749_v22 = vmul.f32 0.5, %v741_v27  ;;  %v1722_v12 = vsub.f32 %v1516_v39, %v1386_v29 }
 0x185   : > { %v1176_v45 = vpack.i.bf16 %v715_v48, %v714_v44  ;;  %v746_v50 = vmul.f32 0.5, %v738_v59  ;;  %v747_v6 = vmul.f32 0.5, %v739_v2  ;;  %v1723_v0 = vsub.f32 %v1543_v41, %v1394_v38 }
 0x186   : > { %v764_v20 = vadd.f32 %v1722_v12, %v1519_v60  ;;  %v1171_v53 = vpack.i.bf16 %v749_v22, %v748_v37  ;;  %v1724_v16 = vsub.f32 %v1537_v9, %v1390_v33  ;;  %v1725_v30 = vsub.f32 %v1549_v49, %v1398_v43  ;;  %1147 = vrot.lane.b32.xlu1 %v1146_v3, %s1225_s8 }
 0x187   : > { %v765_v13 = vadd.f32 %v1723_v0, %v1554_v15  ;;  %1162 = vrot.lane.b32.xlu0 %v1161_v35, %s1225_s8  ;;  %v1181_v29 = vpack.i.bf16 %v747_v6, %v746_v50  ;;  %v688_v54 = vmul.f32 0.5, %v1447_v40  ;;  %v689_v18 = vmul.f32 0.5, %v1491_v58 }
 0x188   : > { %v762_v46 = vadd.f32 %v1724_v16, %v1521_v62  ;;  %v763_v55 = vadd.f32 %v1725_v30, %v659_v4  ;;  %v772_v39 = vmul.f32 0.5, %v764_v20  ;;  %v686_v26 = vmul.f32 0.5, %v1462_v47 }
 0x189   : > { %v773_v60 = vmul.f32 0.5, %v765_v13  ;;  %v687_v56 = vmul.f32 0.5, %v1502_v11  ;;  %v692_v0 = vmul.f32 0.5, %v1552_v21  ;;  %v693_v13 = vmul.f32 0.5, %v1580_v7 }
 0x18a   : > { %v770_v14 = vmul.f32 0.5, %v762_v46  ;;  %v771_v52 = vmul.f32 0.5, %v763_v55  ;;  %1167 = vrot.lane.b32.xlu1 %v1166_v36, %s1223_s6  ;;  %v691_v16 = vmul.f32 0.5, %v1610_v32 }
 0x18b   : > { %v1191_v38 = vpack.i.bf16 %v773_v60, %v772_v39  ;;  %1177 = vrot.lane.b32.xlu0 %v1176_v45, %s1223_s6 }
 0x18c   : > { %v1186_v41 = vpack.i.bf16 %v771_v52, %v770_v14 }
 0x18e   : > { %1172 = vrot.lane.b32.xlu1 %v1171_v53, %s1224_s7  ;;  %v690_v53 = vmul.f32 0.5, %v1577_v63 }
 0x18f   : > { %1182 = vrot.lane.b32.xlu0 %v1181_v29, %s1224_s7 }
 0x192   : > { %1192 = vrot.lane.b32.xlu1 %v1191_v38, %s1225_s8 }
 0x193   : > { %1187 = vrot.lane.b32.xlu0 %v1186_v41, %s1225_s8 }
 0x1f0   : > { %v1138_v33 = vpop.permute.xlu1 %1137  ;;  %v1153_v43 = vpop.permute.xlu0 %1152 }
 0x1f1   : > { %v1140_v62 = vunpack.i.h.bf16 %v1138_v33  ;;  %v1139_v9 = vunpack.i.l.bf16 %v1138_v33  ;;  %v1155_v49 = vunpack.i.h.bf16 %v1153_v43  ;;  %v1154_v15 = vunpack.i.l.bf16 %v1153_v43 }
 0x1f3   : > { %v873_v1 = vsel %vm870_vm1, %v688_v54, %v1139_v9  ;;  %v874_v8 = vsel %vm870_vm1, %v689_v18, %v1140_v62  ;;  %v871_v17 = vsel %vm870_vm1, %v686_v26, %v1154_v15  ;;  %v872_v40 = vsel %vm870_vm1, %v687_v56, %v1155_v49 }
 0x1f4   : > { %v1143_v4 = vpop.permute.xlu1 %1142  ;;  %v1158_v34 = vpop.permute.xlu0 %1157 }
 0x1f5   : > { %v1145_v25 = vunpack.i.h.bf16 %v1143_v4  ;;  %v1144_v19 = vunpack.i.l.bf16 %v1143_v4  ;;  %v1160_v61 = vunpack.i.h.bf16 %v1158_v34  ;;  %v1159_v24 = vunpack.i.l.bf16 %v1158_v34 }
 0x1f7   : > { %v882_v3 = vsel %vm879_vm2, %v873_v1, %v1144_v19  ;;  %v883_v5 = vsel %vm879_vm2, %v874_v8, %v1145_v25  ;;  %v880_v28 = vsel %vm879_vm2, %v871_v17, %v1159_v24  ;;  %v881_v51 = vsel %vm879_vm2, %v872_v40, %v1160_v61 }
 0x1f8   : > { %v1148_v58 = vpop.permute.xlu1 %1147 }
 0x1f9   : > { %v1163_v47 = vpop.permute.xlu0 %1162  ;;  %v1150_v42 = vunpack.i.h.bf16 %v1148_v58  ;;  %v1149_v11 = vunpack.i.l.bf16 %v1148_v58 }
 0x1fa   : > { %v1165_v57 = vunpack.i.h.bf16 %v1163_v47  ;;  %v1164_v23 = vunpack.i.l.bf16 %v1163_v47 }
 0x1fb   : > { %v891_v10 = vsel %vm888_vm3, %v882_v3, %v1149_v11  ;;  %v892_v44 = vsel %vm888_vm3, %v883_v5, %v1150_v42 }
 0x1fc   : > { %v889_v31 = vsel %vm888_vm3, %v880_v28, %v1164_v23  ;;  %v890_v27 = vsel %vm888_vm3, %v881_v51, %v1165_v57  ;;  %v899_v35 = vpack.c.bf16 %v891_v10, %v891_v10  ;;  %v900_v48 = vpack.c.bf16 %v892_v44, %v892_v44  ;;  %v1168_v36 = vpop.permute.xlu1 %1167 }
 0x1fd   : > { %v897_v59 = vpack.c.bf16 %v889_v31, %v889_v31  ;;  %v898_v2 = vpack.c.bf16 %v890_v27, %v890_v27  ;;  %v1178_v37 = vpop.permute.xlu0 %1177  ;;  %v1170_v22 = vunpack.i.h.bf16 %v1168_v36  ;;  %v1169_v12 = vunpack.i.l.bf16 %v1168_v36 }
 0x1fe   : > { %908 = vst.msk [vmem:[%s1667_s12 + $0x8] sm:$0xf] %vm905_vm4, %v899_v35  ;;  %909 = vst.msk [vmem:[%s1667_s12 + $0xc] sm:$0xf] %vm905_vm4, %v900_v48  ;;  %v1180_v20 = vunpack.i.h.bf16 %v1178_v37  ;;  %v1179_v45 = vunpack.i.l.bf16 %v1178_v37 }
 0x1ff   : > { %906 = vst.msk [vmem:[%s1667_s12] sm:$0xf] %vm905_vm4, %v897_v59  ;;  %907 = vst.msk [vmem:[%s1667_s12 + $0x4] sm:$0xf] %vm905_vm4, %v898_v2  ;;  %v877_v39 = vsel %vm870_vm1, %v692_v0, %v1169_v12  ;;  %v878_v60 = vsel %vm870_vm1, %v693_v13, %v1170_v22 }
 0x200   : > { %v1173_v50 = vpop.permute.xlu1 %1172  ;;  %v875_v14 = vsel %vm870_vm1, %v690_v53, %v1179_v45  ;;  %v876_v52 = vsel %vm870_vm1, %v691_v16, %v1180_v20 }
 0x201   : > { %v1183_v6 = vpop.permute.xlu0 %1182  ;;  %v1175_v46 = vunpack.i.h.bf16 %v1173_v50  ;;  %v1174_v30 = vunpack.i.l.bf16 %v1173_v50 }
 0x202   : > { %v1185_v55 = vunpack.i.h.bf16 %v1183_v6  ;;  %v1184_v29 = vunpack.i.l.bf16 %v1183_v6 }
 0x203   : > { %v886_v33 = vsel %vm879_vm2, %v877_v39, %v1174_v30  ;;  %v887_v43 = vsel %vm879_vm2, %v878_v60, %v1175_v46 }
 0x204   : > { %v1193_v38 = vpop.permute.xlu1 %1192  ;;  %v884_v62 = vsel %vm879_vm2, %v875_v14, %v1184_v29  ;;  %v885_v9 = vsel %vm879_vm2, %v876_v52, %v1185_v55 }
 0x205   : > { %v1188_v21 = vpop.permute.xlu0 %1187  ;;  %v1195_v41 = vunpack.i.h.bf16 %v1193_v38  ;;  %v1194_v7 = vunpack.i.l.bf16 %v1193_v38 }
 0x206   : > { %v1190_v63 = vunpack.i.h.bf16 %v1188_v21  ;;  %v1189_v32 = vunpack.i.l.bf16 %v1188_v21 }
 0x207   : > { %v895_v49 = vsel %vm888_vm3, %v886_v33, %v1194_v7  ;;  %v896_v15 = vsel %vm888_vm3, %v887_v43, %v1195_v41 }
 0x208   : > { %v893_v4 = vsel %vm888_vm3, %v884_v62, %v1189_v32  ;;  %v894_v34 = vsel %vm888_vm3, %v885_v9, %v1190_v63  ;;  %v903_v54 = vpack.c.bf16 %v895_v49, %v895_v49  ;;  %v904_v18 = vpack.c.bf16 %v896_v15, %v896_v15 }
 0x209   : > { %v901_v26 = vpack.c.bf16 %v893_v4, %v893_v4  ;;  %v902_v56 = vpack.c.bf16 %v894_v34, %v894_v34 }
 0x20a   : > { %912 = vst.msk [vmem:[%s1667_s12 + $0x18] sm:$0xf] %vm905_vm4, %v903_v54  ;;  %913 = vst.msk [vmem:[%s1667_s12 + $0x1c] sm:$0xf] %vm905_vm4, %v904_v18 }
 0x20b   : > { %910 = vst.msk [vmem:[%s1667_s12 + $0x10] sm:$0xf] %vm905_vm4, %v901_v26  ;;  %911 = vst.msk [vmem:[%s1667_s12 + $0x14] sm:$0xf] %vm905_vm4, %v902_v56 }
 0x20c PF: > { %s14_s17 = sadd.s32 1, %s1220_s17   ;;  %s1726_s15 = smov %s1216_s16 }
 0x20d   : > { %p11_p5 = scmp.ge.s32.totalorder %s14_s17, 4   ;;  %s1727_s16 = smov %s1729_s18 }
 0x20f   :  { %13 = sbr.rel (!%p11_p5) target bundleno = 2 (0x2), region = 66 }

// kernel: wave_attention.8
= control target key start
LH: loop header
LB: loop body
LE: loop exit
PB: predicated region body
PF: predicated region fallthrough
CT: control target
= control target key end

     0   :  { %s2129_s26 = smov 0   ;;  %s2945_s0 = inlined_call_operand.vmem [shape: f32[2,16,16,10], index: 0, kind: input, shape index: {}]   ;;  %s2946_s1 = inlined_call_operand.vmem [shape: bf16[90,32], index: 1, kind: input, shape index: {}]   ;;  %s2947_s2 = inlined_call_operand.vmem [shape: f32[1,32], index: 2, kind: input, shape index: {}]   ;;  %s2948_s3 = inlined_call_operand.vmem [shape: f32[1,32], index: 3, kind: input, shape index: {}]   ;;  %s2949_s4 = inlined_call_operand.<no memory space> [shape: f32[1,1], index: 4, kind: input, shape index: {}]   ;;  %s2950_s5 = inlined_call_operand.vmem [shape: f32[1,32], index: 5, kind: input, shape index: {}]   ;;  %s2951_s6 = inlined_call_operand.vmem [shape: f32[1,32], index: 6, kind: input, shape index: {}]   ;;  %s2952_s7 = inlined_call_operand.vmem [shape: bf16[2,32,256], index: 7, kind: output, shape index: {}]  }
   0x1   :  { %v12_v0 = vstv %s2949_s4 }
   0x2   :  { %13 = vst [vmem:[#allocation2] sm:$0x1] %v12_v0 }
   0x3 LB: > { %s1863_s27 = sadd.s32 4294967295, %s2075_s26   ;;  %p1867_p0 = scmp.ge.s32.totalorder %s2075_s26, 1  ;;  %s2075_s26 = sphi %s2129_s26, %s19_s26  }
   0x4   : > { %p239_p1 = scmp.lt.s32.totalorder %s2075_s26, 3 }
   0x6   : > { %p240_p2 = pnand %p1867_p0, %p239_p1 }
   0x7   : > { %vm495_vm0 = vcmask (!%p240_p2), 1040384   ;;  %vm496_vm1 = vsmask.f32 (!%p240_p2), 256  ;;  %v2077_v1 = vmov (!%p240_p2), 0   ;;  %p271_p3 = scmp.lt.s32.totalorder (!%p240_p2), %s1863_s27, 1  ;;  %vm757_vm3 = vcmask (!%p240_p2), 1046528  }
   0x8   : > { %243 = sbr.rel (%p240_p2) target bundleno = 1091 (0x443), region = 48  ;;  %v345_v2 = vrot.slane (!%p240_p2), %v2077_v1, 7  ;;  %vm2137_vm2 = vmand (!%p240_p2), %vm495_vm0, %vm496_vm1  ;;  %2005 = vset.pattern.permute.xlu1 (!%p240_p2), %v2077_v1  ;;  %2058 = vset.pattern.permute.xlu0 (!%p240_p2), %v2077_v1  ;;  %s2078_s8 = smov (!%p240_p2), 20   ;;  %vm532_vm4 = vsmask.f32 (!%p240_p2), 7424  ;;  %v2059_v34 = vld [vmem:[%s2946_s1] sm:$0xff] (!%p240_p2)  }
   0x9   : > { %s2079_s9 = smov (!%p240_p2), 10   ;;  %v2060_v35 = vld [vmem:[%s2946_s1 + $0x8] sm:$0xff] (!%p240_p2)   ;;  %1930 = vmatprep.subr.bf16.mxu0 (!%p240_p2), %v2059_v34  ;;  %1974 = vmatprep.subr.bf16.mxu1 (!%p240_p2), %v2059_v34  ;;  %s2080_s14 = smov (!%p240_p2), 30   ;;  %v2061_v43 = vld [vmem:[%s2946_s1 + $0x10] sm:$0xff] (!%p240_p2)   ;;  %v2062_v57 = vld [vmem:[%s2946_s1 + $0x18] sm:$0xff] (!%p240_p2)   ;;  %vm1418_vm5 = vcmask (!%p240_p2), 1044480  }
   0xa   : > { %v2143_v4 = vsel (!%p240_p2), %vm2137_vm2, 0, %v345_v2  ;;  %v515_v5 = vsel (!%p240_p2), %vm2137_vm2, %v345_v2, 0  ;;  %1931 = vmatpush3.bf16.msra.mxu0 (!%p240_p2), %v2059_v34  ;;  %1980 = vmatpush3.bf16.msra.mxu1 (!%p240_p2), %v2059_v34  ;;  %s2081_s17 = smov (!%p240_p2), 60   ;;  %s2082_s22 = smov (!%p240_p2), 50   ;;  %v2064_v34 = vld [vmem:[%s2946_s1 + $0x28] sm:$0x1f] (!%p240_p2)  }
   0xb   : > { %v758_v6 = vrot.slane (!%p240_p2), %v2143_v4, 1  ;;  %v759_v7 = vrot.slane (!%p240_p2), %v515_v5, 1  ;;  %v534_v8 = vshrl.u32 (!%p240_p2), %v2143_v4, 16  ;;  %v536_v9 = vshll.u32 (!%p240_p2), %v2143_v4, 16  ;;  %1932 = vmatprep.subr.bf16.mxu0 (!%p240_p2), %v2060_v35  ;;  %1975 = vmatprep.subr.bf16.mxu1 (!%p240_p2), %v2060_v35  ;;  %s2083_s23 = smov (!%p240_p2), 40   ;;  %s2084_s24 = smov (!%p240_p2), 70  }
   0xc   : > { %v541_v10 = vshll.u32 (!%p240_p2), %v515_v5, 16  ;;  %s2085_s25 = smov (!%p240_p2), 80   ;;  %vm1079_vm6 = vcmask (!%p240_p2), 80896   ;;  %vm1112_vm7 = vcmask (!%p240_p2), 162816   ;;  %vm1145_vm8 = vcmask (!%p240_p2), 244736  }
   0xd   : > { %v2154_v11 = vsel (!%p240_p2), %vm757_vm3, %v758_v6, %v759_v7  ;;  %v538_v12 = vrot.slane (!%p240_p2), %v536_v9, 1  ;;  %v2063_v6 = vld [vmem:[%s2946_s1 + $0x20] sm:$0xff] (!%p240_p2)   ;;  %vm1178_vm9 = vcmask (!%p240_p2), 326656   ;;  %vm1211_vm10 = vcmask (!%p240_p2), 408576  }
   0xe   : > { %855 = vrot.lane.b32.xlu1 (!%p240_p2), %v2154_v11, %s2078_s8  ;;  %v543_v13 = vrot.slane (!%p240_p2), %v541_v10, 1  ;;  %1933 = vmatpush3.bf16.msra.mxu0 (!%p240_p2), %v2060_v35  ;;  %vm1244_vm11 = vcmask (!%p240_p2), 490496   ;;  %vm1277_vm12 = vcmask (!%p240_p2), 572416   ;;  %vm1310_vm13 = vcmask (!%p240_p2), 654336  }
   0xf   : > { %s2956_s27 = smov (!%p271_p3, %s1863_s27), 1  ;;  %v539_v17 = vor.u32 %v538_v12, %v534_v8  ;;  %1981 = vmatpush3.bf16.msra.mxu1 %v2060_v35  ;;  %1934 = vmatprep.subr.bf16.mxu0 %v2061_v43  ;;  %vm1385_vm14 = vcmask 736256   ;;  %vm1583_vm15 = vcmask 261120   ;;  %vm1657_vm0 = vcmask 253952  }
  0x10   : > { %s1902_s4 = sshll.u32 %s2956_s27, 8  ;;  %1976 = vmatprep.subr.bf16.mxu1 %v2061_v43 }
  0x11   : > { %s2159_s30 = scalar_lea.vmem %s2945_s0, %s1902_s4  ;;  %v2170_v24 = vsel %vm532_vm4, %v539_v17, %v543_v13 }
  0x12   : > { %v284_v14 = vld [vmem:[%s2159_s30 + $0x10] sm:$0xff]  ;;  %v285_v15 = vld [vmem:[%s2159_s30 + $0x18] sm:$0xff]  ;;  %v282_v16 = vld [vmem:[%s2159_s30] sm:$0xff]  ;;  %823 = vrot.lane.b32.xlu0 %v2170_v24, %s2079_s9  ;;  %1935 = vmatpush3.bf16.msra.mxu0 %v2061_v43 }
  0x13   : > { %v315_v18 = vpack.c.bf16 %v285_v15, %v284_v14  ;;  %v283_v19 = vld [vmem:[%s2159_s30 + $0x8] sm:$0xff]  ;;  %v286_v20 = vld [vmem:[%s2159_s30 + $0x20] sm:$0xff]  ;;  %v288_v52 = vld [vmem:[%s2159_s30 + $0x30] sm:$0xff]  ;;  %1982 = vmatpush3.bf16.msra.mxu1 %v2061_v43  ;;  %1936 = vmatprep.subr.bf16.mxu0 %v2062_v57 }
  0x14   : > { %v287_v21 = vld [vmem:[%s2159_s30 + $0x28] sm:$0xff]  ;;  %v314_v22 = vpack.c.bf16 %v283_v19, %v282_v16  ;;  %v289_v53 = vld [vmem:[%s2159_s30 + $0x38] sm:$0xff]  ;;  %1977 = vmatprep.subr.bf16.mxu1 %v2062_v57  ;;  %v290_v19 = vld [vmem:[%s2159_s30 + $0x40] sm:$0xff] }
  0x15   : > { %v316_v23 = vpack.c.bf16 %v287_v21, %v286_v20  ;;  %v357_v25 = vshrl.u32 %v315_v18, 16  ;;  %v360_v26 = vshll.u32 %v315_v18, 16  ;;  %v317_v1 = vpack.c.bf16 %v289_v53, %v288_v52  ;;  %v291_v20 = vld [vmem:[%s2159_s30 + $0x48] sm:$0xff] }
  0x16   : > { %v350_v27 = vshrl.u32 %v314_v22, 16  ;;  %v353_v28 = vshll.u32 %v314_v22, 16  ;;  %1937 = vmatpush3.bf16.msra.mxu0 %v2062_v57 }
  0x17   : > { %v364_v29 = vshrl.u32 %v316_v23, 16  ;;  %v367_v30 = vshll.u32 %v316_v23, 16  ;;  %v359_v31 = vrot.slane %v357_v25, 7  ;;  %v371_v13 = vshrl.u32 %v317_v1, 16  ;;  %1983 = vmatpush3.bf16.msra.mxu1 %v2062_v57  ;;  %1938 = vmatprep.subr.bf16.mxu0 %v2063_v6 }
  0x18   : > { %v352_v32 = vrot.slane %v350_v27, 7  ;;  %1978 = vmatprep.subr.bf16.mxu1 %v2063_v6  ;;  %v374_v18 = vshll.u32 %v317_v1, 16  ;;  %v318_v23 = vpack.c.bf16 %v291_v20, %v290_v19 }
  0x19   : > { %v366_v33 = vrot.slane %v364_v29, 7  ;;  %v362_v36 = vor.u32 %v360_v26, %v359_v31  ;;  %v517_v42 = vsel %vm2137_vm2, %v359_v31, 0  ;;  %v373_v17 = vrot.slane %v371_v13, 7 }
  0x1a   : > { %v355_v37 = vor.u32 %v353_v28, %v352_v32  ;;  %v516_v39 = vsel %vm2137_vm2, %v352_v32, 0  ;;  %v765_v55 = vrot.slane %v517_v42, 1  ;;  %v565_v56 = vshll.u32 %v517_v42, 16  ;;  %1939 = vmatpush3.bf16.msra.mxu0 %v2063_v6 }
  0x1b   : > { %v369_v38 = vor.u32 %v367_v30, %v366_v33  ;;  %v2184_v40 = vsel %vm2137_vm2, 0, %v362_v36  ;;  %v762_v46 = vrot.slane %v516_v39, 1  ;;  %v553_v49 = vshll.u32 %v516_v39, 16  ;;  %1984 = vmatpush3.bf16.msra.mxu1 %v2063_v6  ;;  %1986 = vmatprep.subr.msk.bf16.mxu0 %vm1418_vm5, %v2064_v34 }
  0x1c   : > { %889 = vrot.lane.b32.xlu1 %v2184_v40, %s2080_s14  ;;  %v2190_v41 = vsel %vm2137_vm2, 0, %v355_v37  ;;  %v560_v50 = vshll.u32 %v2184_v40, 16  ;;  %v764_v54 = vrot.slane %v2184_v40, 1  ;;  %v558_v59 = vshrl.u32 %v2184_v40, 16  ;;  %1987 = vmatprep.subr.msk.bf16.mxu1 %vm1418_vm5, %v2064_v34 }
  0x1d   : > { %887 = vrot.lane.b32.xlu0 %v2190_v41, %s2080_s14  ;;  %v2201_v44 = vsel %vm2137_vm2, 0, %v369_v38  ;;  %v761_v45 = vrot.slane %v2190_v41, 1  ;;  %v548_v47 = vshll.u32 %v2190_v41, 16  ;;  %v546_v48 = vshrl.u32 %v2190_v41, 16 }
  0x1e   : > { %v562_v60 = vrot.slane %v560_v50, 1  ;;  %v572_v61 = vshll.u32 %v2201_v44, 16  ;;  %v555_v63 = vrot.slane %v553_v49, 1  ;;  %v518_v0 = vsel %vm2137_vm2, %v366_v33, 0 }
  0x1f   : > { %v550_v51 = vrot.slane %v548_v47, 1  ;;  %v763_v58 = vsel %vm757_vm3, %v761_v45, %v762_v46  ;;  %v766_v2 = vsel %vm757_vm3, %v764_v54, %v765_v55  ;;  %v567_v5 = vrot.slane %v565_v56, 1  ;;  %v292_v45 = vld [vmem:[%s2159_s30 + $0x50] sm:$0xff]  ;;  %v293_v46 = vld [vmem:[%s2159_s30 + $0x58] sm:$0xff] }
  0x20   : > { %985 = vrot.lane.b32.xlu1 %v2201_v44, %s2081_s17  ;;  %v563_v7 = vor.u32 %v562_v60, %v558_v59  ;;  %v570_v8 = vshrl.u32 %v2201_v44, 16  ;;  %v574_v9 = vrot.slane %v572_v61, 1  ;;  %v577_v10 = vshll.u32 %v518_v0, 16 }
  0x21   : > { %983 = vrot.lane.b32.xlu0 %v2184_v40, %s2081_s17  ;;  %v551_v62 = vor.u32 %v550_v51, %v546_v48  ;;  %v376_v22 = vor.u32 %v374_v18, %v373_v17  ;;  %v767_v25 = vrot.slane %v2201_v44, 1  ;;  %v768_v26 = vrot.slane %v518_v0, 1  ;;  %v295_v0 = vld [vmem:[%s2159_s30 + $0x68] sm:$0xff] }
  0x22   : > { %v568_v14 = vsel %vm532_vm4, %v563_v7, %v567_v5  ;;  %v575_v15 = vor.u32 %v574_v9, %v570_v8  ;;  %v579_v16 = vrot.slane %v577_v10, 1  ;;  %v378_v28 = vshrl.u32 %v318_v23, 16 }
  0x23   : > { %v556_v12 = vsel %vm532_vm4, %v551_v62, %v555_v63  ;;  %v2243_v27 = vsel %vm2137_vm2, 0, %v376_v22  ;;  %v769_v30 = vsel %vm757_vm3, %v767_v25, %v768_v26  ;;  %v519_v31 = vsel %vm2137_vm2, %v373_v17, 0  ;;  %v294_v63 = vld [vmem:[%s2159_s30 + $0x60] sm:$0xff]  ;;  %v297_v25 = vld [vmem:[%s2159_s30 + $0x78] sm:$0xff] }
  0x24   : > { %857 = vrot.lane.b32.xlu1 %v763_v58, %s2078_s8  ;;  %v580_v21 = vsel %vm532_vm4, %v575_v15, %v579_v16  ;;  %v584_v29 = vshll.u32 %v2243_v27, 16  ;;  %v380_v32 = vrot.slane %v378_v28, 7  ;;  %v381_v33 = vshll.u32 %v318_v23, 16  ;;  %v296_v23 = vld [vmem:[%s2159_s30 + $0x70] sm:$0xff] }
  0x25   : > { %951 = vrot.lane.b32.xlu0 %v763_v58, %s2082_s22  ;;  %v582_v35 = vshrl.u32 %v2243_v27, 16  ;;  %v589_v37 = vshll.u32 %v519_v31, 16  ;;  %v1420_v47 = vsel %vm1418_vm5, %v2064_v34, 0  ;;  %v770_v49 = vrot.slane %v2243_v27, 1 }
  0x26   : > { %v586_v36 = vrot.slane %v584_v29, 1  ;;  %v383_v38 = vor.u32 %v381_v33, %v380_v32  ;;  %1941 = vmatpush3.bf16.msra.mxu0 %v1420_v47  ;;  %v771_v50 = vrot.slane %v519_v31, 1  ;;  %1985 = vmatpush3.bf16.msra.mxu1 %v1420_v47  ;;  %v520_v52 = vsel %vm2137_vm2, %v380_v32, 0  ;;  %v299_v47 = vld [vmem:[%s2159_s30 + $0x88] sm:$0xff] }
  0x27   : > { %v591_v42 = vrot.slane %v589_v37, 1  ;;  %v319_v53 = vpack.c.bf16 %v293_v46, %v292_v45  ;;  %v601_v57 = vshll.u32 %v520_v52, 16  ;;  %v320_v5 = vpack.c.bf16 %v295_v0, %v294_v63  ;;  %v298_v46 = vld [vmem:[%s2159_s30 + $0x80] sm:$0xff] }
  0x28   : > { %953 = vrot.lane.b32.xlu1 %v766_v2, %s2082_s22  ;;  %v587_v39 = vor.u32 %v586_v36, %v582_v35  ;;  %v2261_v43 = vsel %vm2137_vm2, 0, %v383_v38  ;;  %v772_v54 = vsel %vm757_vm3, %v770_v49, %v771_v50  ;;  %v774_v7 = vrot.slane %v520_v52, 1 }
  0x29   : > { %825 = vrot.lane.b32.xlu0 %v556_v12, %s2079_s9  ;;  %v596_v51 = vshll.u32 %v2261_v43, 16  ;;  %v594_v55 = vshrl.u32 %v2261_v43, 16  ;;  %v385_v58 = vshrl.u32 %v319_v53, 16  ;;  %v603_v60 = vrot.slane %v601_v57, 1 }
  0x2a   : > { %v592_v48 = vsel %vm532_vm4, %v587_v39, %v591_v42  ;;  %v388_v62 = vshll.u32 %v319_v53, 16  ;;  %v773_v6 = vrot.slane %v2261_v43, 1  ;;  %v392_v9 = vshrl.u32 %v320_v5, 16 }
  0x2b   : > { %v598_v56 = vrot.slane %v596_v51, 1  ;;  %v387_v61 = vrot.slane %v385_v58, 7  ;;  %v395_v15 = vshll.u32 %v320_v5, 16  ;;  %v321_v32 = vpack.c.bf16 %v297_v25, %v296_v23  ;;  %v300_v5 = vld [vmem:[%s2159_s30 + $0x90] sm:$0xff] }
  0x2c   : > { %921 = vrot.lane.b32.xlu1 %v568_v14, %s2083_s23  ;;  %v322_v50 = vpack.c.bf16 %v299_v47, %v298_v46 }
  0x2d   : > { %919 = vrot.lane.b32.xlu0 %v556_v12, %s2083_s23  ;;  %v599_v59 = vor.u32 %v598_v56, %v594_v55  ;;  %v775_v12 = vsel %vm757_vm3, %v773_v6, %v774_v7  ;;  %v521_v13 = vsel %vm2137_vm2, %v387_v61, 0  ;;  %v399_v37 = vshrl.u32 %v321_v32, 16  ;;  %v301_v6 = vld [vmem:[%s2159_s30 + $0x98] sm:$0xff] }
  0x2e   : > { %v613_v18 = vshll.u32 %v521_v13, 16  ;;  %v777_v29 = vrot.slane %v521_v13, 1  ;;  %v402_v45 = vshll.u32 %v321_v32, 16 }
  0x2f   : > { %v604_v1 = vsel %vm532_vm4, %v599_v59, %v603_v60  ;;  %v401_v42 = vrot.slane %v399_v37, 7  ;;  %v409_v59 = vshll.u32 %v322_v50, 16 }
  0x30   : > { %1017 = vrot.lane.b32.xlu1 %v580_v21, %s2084_s24 }
  0x31   : > { %1015 = vrot.lane.b32.xlu0 %v568_v14, %s2084_s24  ;;  %v404_v49 = vor.u32 %v402_v45, %v401_v42  ;;  %v523_v57 = vsel %vm2137_vm2, %v401_v42, 0 }
  0x33   : > { %v2338_v53 = vsel %vm2137_vm2, 0, %v404_v49 }
  0x34   : > { %827 = vrot.lane.b32.xlu1 %v568_v14, %s2079_s9  ;;  %v394_v14 = vrot.slane %v392_v9, 7  ;;  %v632_v55 = vshll.u32 %v2338_v53, 16  ;;  %v630_v60 = vshrl.u32 %v2338_v53, 16  ;;  %v782_v9 = vrot.slane %v2338_v53, 1 }
  0x35   : > { %1047 = vrot.lane.b32.xlu0 %v766_v2, %s2085_s25 }
  0x36   : > { %v397_v19 = vor.u32 %v395_v15, %v394_v14  ;;  %v522_v31 = vsel %vm2137_vm2, %v394_v14, 0  ;;  %v323_v14 = vpack.c.bf16 %v301_v6, %v300_v5 }
  0x37   : > { %v625_v36 = vshll.u32 %v522_v31, 16  ;;  %v780_v52 = vrot.slane %v522_v31, 1 }
  0x38   : > { %829 = vrot.lane.b32.xlu1 %v580_v21, %s2079_s9  ;;  %v2307_v22 = vsel %vm2137_vm2, 0, %v397_v19  ;;  %v413_v19 = vshrl.u32 %v323_v14, 16 }
  0x39   : > { %1049 = vrot.lane.b32.xlu0 %v769_v30, %s2085_s25  ;;  %v618_v34 = vshrl.u32 %v2307_v22, 16  ;;  %v627_v39 = vrot.slane %v625_v36, 1  ;;  %v779_v51 = vrot.slane %v2307_v22, 1 }
  0x3b   : > { %v781_v56 = vsel %vm757_vm3, %v779_v51, %v780_v52 }
  0x3c   : > { %861 = vrot.lane.b32.xlu1 %v769_v30, %s2078_s8 }
  0x3d   : > { %859 = vrot.lane.b32.xlu0 %v766_v2, %s2078_s8  ;;  %v390_v2 = vor.u32 %v388_v62, %v387_v61  ;;  %v634_v61 = vrot.slane %v632_v55, 1  ;;  %v637_v62 = vshll.u32 %v523_v57, 16 }
  0x3f   : > { %v2292_v8 = vsel %vm2137_vm2, 0, %v390_v2  ;;  %v635_v0 = vor.u32 %v634_v61, %v630_v60 }
  0x40   : > { %893 = vrot.lane.b32.xlu1 %v2243_v27, %s2080_s14  ;;  %v608_v10 = vshll.u32 %v2292_v8, 16  ;;  %v606_v16 = vshrl.u32 %v2292_v8, 16  ;;  %v776_v28 = vrot.slane %v2292_v8, 1 }
  0x41   : > { %891 = vrot.lane.b32.xlu0 %v2201_v44, %s2080_s14 }
  0x42   : > { %v610_v17 = vrot.slane %v608_v10, 1  ;;  %v778_v33 = vsel %vm757_vm3, %v776_v28, %v777_v29  ;;  %v783_v10 = vrot.slane %v523_v57, 1  ;;  %v416_v28 = vshll.u32 %v323_v14, 16  ;;  %v302_v29 = vld [vmem:[%s2159_s30 + $0xa0] sm:$0xff] }
  0x44   : > { %925 = vrot.lane.b32.xlu1 %v592_v48, %s2083_s23  ;;  %v611_v20 = vor.u32 %v610_v17, %v606_v16  ;;  %v784_v15 = vsel %vm757_vm3, %v782_v9, %v783_v10  ;;  %v304_v10 = vld [vmem:[%s2159_s30 + $0xb0] sm:$0xff] }
  0x45   : > { %923 = vrot.lane.b32.xlu0 %v580_v21, %s2083_s23  ;;  %v615_v21 = vrot.slane %v613_v18, 1 }
  0x47   : > { %v616_v26 = vsel %vm532_vm4, %v611_v20, %v615_v21 }
  0x48   : > { %957 = vrot.lane.b32.xlu1 %v772_v54, %s2082_s22 }
  0x49   : > { %955 = vrot.lane.b32.xlu0 %v769_v30, %s2082_s22  ;;  %v620_v30 = vshll.u32 %v2307_v22, 16 }
  0x4b   : > { %v622_v35 = vrot.slane %v620_v30, 1  ;;  %v303_v30 = vld [vmem:[%s2159_s30 + $0xa8] sm:$0xff] }
  0x4c   : > { %989 = vrot.lane.b32.xlu1 %v2261_v43, %s2081_s17 }
  0x4d   : > { %987 = vrot.lane.b32.xlu0 %v2243_v27, %s2081_s17  ;;  %v623_v38 = vor.u32 %v622_v35, %v618_v34  ;;  %v324_v34 = vpack.c.bf16 %v303_v30, %v302_v29 }
  0x4f   : > { %v420_v42 = vshrl.u32 %v324_v34, 16  ;;  %v423_v51 = vshll.u32 %v324_v34, 16 }
  0x50   : > { %1021 = vrot.lane.b32.xlu1 %v604_v1, %s2084_s24 }
  0x51   : > { %1019 = vrot.lane.b32.xlu0 %v592_v48, %s2084_s24 }
  0x54   : > { %831 = vrot.lane.b32.xlu1 %v592_v48, %s2079_s9  ;;  %v628_v48 = vsel %vm532_vm4, %v623_v38, %v627_v39 }
  0x55   : > { %1051 = vrot.lane.b32.xlu0 %v772_v54, %s2085_s25 }
  0x58   : > { %833 = vrot.lane.b32.xlu1 %v604_v1, %s2079_s9 }
  0x59   : > { %1053 = vrot.lane.b32.xlu0 %v775_v12, %s2085_s25 }
  0x5c   : > { %865 = vrot.lane.b32.xlu1 %v775_v12, %s2078_s8 }
  0x5d   : > { %863 = vrot.lane.b32.xlu0 %v772_v54, %s2078_s8  ;;  %v406_v54 = vshrl.u32 %v322_v50, 16  ;;  %v422_v50 = vrot.slane %v420_v42, 7 }
  0x5f   : > { %v408_v58 = vrot.slane %v406_v54, 7 }
  0x60   : > { %897 = vrot.lane.b32.xlu1 %v2292_v8, %s2080_s14 }
  0x61   : > { %895 = vrot.lane.b32.xlu0 %v2261_v43, %s2080_s14  ;;  %v411_v63 = vor.u32 %v409_v59, %v408_v58  ;;  %v524_v13 = vsel %vm2137_vm2, %v408_v58, 0  ;;  %v425_v58 = vor.u32 %v423_v51, %v422_v50 }
  0x62   : > { %v649_v18 = vshll.u32 %v524_v13, 16  ;;  %v786_v38 = vrot.slane %v524_v13, 1 }
  0x63   : > { %v2353_v2 = vsel %vm2137_vm2, 0, %v411_v63  ;;  %v2415_v6 = vsel %vm2137_vm2, 0, %v425_v58 }
  0x64   : > { %929 = vrot.lane.b32.xlu1 %v616_v26, %s2083_s23  ;;  %v642_v16 = vshrl.u32 %v2353_v2, 16  ;;  %v651_v25 = vrot.slane %v649_v18, 1  ;;  %v785_v37 = vrot.slane %v2353_v2, 1  ;;  %v668_v18 = vshll.u32 %v2415_v6, 16 }
  0x65   : > { %927 = vrot.lane.b32.xlu0 %v604_v1, %s2083_s23  ;;  %v639_v1 = vrot.slane %v637_v62, 1  ;;  %v666_v30 = vshrl.u32 %v2415_v6, 16 }
  0x67   : > { %v640_v7 = vsel %vm532_vm4, %v635_v0, %v639_v1 }
  0x68   : > { %961 = vrot.lane.b32.xlu1 %v778_v33, %s2082_s22 }
  0x69   : > { %959 = vrot.lane.b32.xlu0 %v775_v12, %s2082_s22  ;;  %v644_v12 = vshll.u32 %v2353_v2, 16 }
  0x6b   : > { %v646_v17 = vrot.slane %v644_v12, 1  ;;  %v305_v12 = vld [vmem:[%s2159_s30 + $0xb8] sm:$0xff] }
  0x6c   : > { %993 = vrot.lane.b32.xlu1 %v2307_v22, %s2081_s17 }
  0x6d   : > { %991 = vrot.lane.b32.xlu0 %v2292_v8, %s2081_s17  ;;  %v647_v23 = vor.u32 %v646_v17, %v642_v16 }
  0x6f   : > { %v2379_v31 = vsel %vm532_vm4, %v647_v23, %v651_v25  ;;  %v325_v23 = vpack.c.bf16 %v305_v12, %v304_v10 }
  0x70   : > { %1025 = vrot.lane.b32.xlu1 %v628_v48, %s2084_s24 }
  0x71   : > { %1023 = vrot.lane.b32.xlu0 %v616_v26, %s2084_s24 }
  0x74   : > { %835 = vrot.lane.b32.xlu1 %v616_v26, %s2079_s9  ;;  %v415_v26 = vrot.slane %v413_v19, 7 }
  0x75   : > { %1055 = vrot.lane.b32.xlu0 %v778_v33, %s2085_s25 }
  0x76   : > { %v525_v49 = vsel %vm2137_vm2, %v415_v26, 0 }
  0x78   : > { %837 = vrot.lane.b32.xlu1 %v628_v48, %s2079_s9 }
  0x79   : > { %1057 = vrot.lane.b32.xlu0 %v781_v56, %s2085_s25 }
  0x7c   : > { %869 = vrot.lane.b32.xlu1 %v781_v56, %s2078_s8 }
  0x7d   : > { %867 = vrot.lane.b32.xlu0 %v778_v33, %s2078_s8  ;;  %v418_v33 = vor.u32 %v416_v28, %v415_v26 }
  0x7f   : > { %v2389_v39 = vsel %vm2137_vm2, 0, %v418_v33 }
  0x80   : > { %901 = vrot.lane.b32.xlu1 %v2338_v53, %s2080_s14  ;;  %v856_v20 = vpop.permute.xlu1 %855  ;;  %v656_v46 = vshll.u32 %v2389_v39, 16  ;;  %v654_v54 = vshrl.u32 %v2389_v39, 16  ;;  %v788_v14 = vrot.slane %v2389_v39, 1 }
  0x81   : > { %899 = vrot.lane.b32.xlu0 %v2307_v22, %s2080_s14 }
  0x82   : > { %v658_v55 = vrot.slane %v656_v46, 1 }
  0x84   : > { %933 = vrot.lane.b32.xlu1 %v640_v7, %s2083_s23  ;;  %v824_v21 = vpop.permute.xlu0 %823  ;;  %v659_v63 = vor.u32 %v658_v55, %v654_v54  ;;  %v306_v54 = vld [vmem:[%s2159_s30 + $0xc0] sm:$0xff] }
  0x85   : > { %931 = vrot.lane.b32.xlu0 %v628_v48, %s2083_s23  ;;  %v2395_v48 = vsel %vm757_vm3, %v785_v37, %v786_v38  ;;  %v1081_v59 = vsel %vm1079_vm6, %v2143_v4, %v824_v21  ;;  %v526_v21 = vsel %vm2137_vm2, %v422_v50, 0  ;;  %v430_v50 = vshll.u32 %v325_v23, 16 }
  0x86   : > { %v1114_v1 = vsel %vm1112_vm7, %v1081_v59, %v856_v20  ;;  %v673_v33 = vshll.u32 %v526_v21, 16 }
  0x88   : > { %965 = vrot.lane.b32.xlu1 %v784_v15, %s2082_s22  ;;  %v675_v46 = vrot.slane %v673_v33, 1 }
  0x89   : > { %963 = vrot.lane.b32.xlu0 %v781_v56, %s2082_s22  ;;  %v661_v56 = vshll.u32 %v525_v49, 16 }
  0x8b   : > { %v663_v0 = vrot.slane %v661_v56, 1 }
  0x8c   : > { %997 = vrot.lane.b32.xlu1 %v2353_v2, %s2081_s17 }
  0x8d   : > { %995 = vrot.lane.b32.xlu0 %v2338_v53, %s2081_s17  ;;  %v664_v17 = vsel %vm532_vm4, %v659_v63, %v663_v0 }
  0x8e   : > { %v890_v32 = vpop.permute.xlu1 %889 }
  0x8f   : > { %v888_v35 = vpop.permute.xlu0 %887 }
  0x90   : > { %1029 = vrot.lane.b32.xlu1 %v2379_v31, %s2084_s24 }
  0x91   : > { %1027 = vrot.lane.b32.xlu0 %v640_v7, %s2084_s24 }
  0x92   : > { %v2384_v36 = vpop.permute.xlu1 %985 }
  0x93   : > { %v984_v45 = vpop.permute.xlu0 %983 }
  0x94   : > { %839 = vrot.lane.b32.xlu1 %v640_v7, %s2079_s9 }
  0x95   : > { %1059 = vrot.lane.b32.xlu0 %v784_v15, %s2085_s25 }
  0x96   : > { %v858_v47 = vpop.permute.xlu1 %857 }
  0x97   : > { %v952_v52 = vpop.permute.xlu0 %951 }
  0x98   : > { %841 = vrot.lane.b32.xlu1 %v2379_v31, %s2079_s9 }
  0x99   : > { %1061 = vrot.lane.b32.xlu0 %v2395_v48, %s2085_s25 }
  0x9a   : > { %v954_v57 = vpop.permute.xlu1 %953 }
  0x9b   : > { %v826_v60 = vpop.permute.xlu0 %825 }
  0x9c   : > { %v1083_v61 = vsel %vm1079_vm6, %v2190_v41, %v826_v60  ;;  %873 = vrot.lane.b32.xlu1 %v2395_v48, %s2078_s8  ;;  %v1147_v41 = vsel %vm1145_vm8, %v1114_v1, %v888_v35  ;;  %v427_v35 = vshrl.u32 %v325_v23, 16 }
  0x9d   : > { %v1116_v62 = vsel %vm1112_vm7, %v1083_v61, %v858_v47  ;;  %871 = vrot.lane.b32.xlu0 %v784_v15, %s2078_s8  ;;  %v789_v15 = vrot.slane %v525_v49, 1  ;;  %v791_v61 = vrot.slane %v2415_v6, 1 }
  0x9e   : > { %v922_v5 = vpop.permute.xlu1 %921  ;;  %v1149_v7 = vsel %vm1145_vm8, %v1116_v62, %v890_v32  ;;  %v670_v32 = vrot.slane %v668_v18, 1  ;;  %v429_v49 = vrot.slane %v427_v35, 7  ;;  %v792_v62 = vrot.slane %v526_v21, 1 }
  0x9f   : > { %v920_v9 = vpop.permute.xlu0 %919  ;;  %v1182_v19 = vsel %vm1178_vm9, %v1149_v7, %v922_v5  ;;  %v790_v28 = vsel %vm757_vm3, %v788_v14, %v789_v15 }
  0xa0   : > { %v1180_v13 = vsel %vm1178_vm9, %v1147_v41, %v920_v9  ;;  %905 = vrot.lane.b32.xlu1 %v2389_v39, %s2080_s14  ;;  %v1215_v29 = vsel %vm1211_vm10, %v1182_v19, %v954_v57  ;;  %v432_v57 = vor.u32 %v430_v50, %v429_v49  ;;  %v793_v7 = vsel %vm757_vm3, %v791_v61, %v792_v62 }
  0xa1   : > { %v1213_v16 = vsel %vm1211_vm10, %v1180_v13, %v952_v52  ;;  %903 = vrot.lane.b32.xlu0 %v2353_v2, %s2080_s14  ;;  %v1248_v42 = vsel %vm1244_vm11, %v1215_v29, %v2384_v36  ;;  %v307_v36 = vld [vmem:[%s2159_s30 + $0xc8] sm:$0xff]  ;;  %v527_v9 = vsel %vm2137_vm2, %v429_v49, 0  ;;  %v308_v29 = vld [vmem:[%s2159_s30 + $0xd0] sm:$0xff] }
  0xa2   : > { %v1018_v20 = vpop.permute.xlu1 %1017  ;;  %v1246_v26 = vsel %vm1244_vm11, %v1213_v16, %v984_v45  ;;  %v671_v45 = vor.u32 %v670_v32, %v666_v30  ;;  %v326_v58 = vpack.c.bf16 %v307_v36, %v306_v54  ;;  %v2467_v63 = vsel %vm2137_vm2, 0, %v432_v57  ;;  %v309_v30 = vld [vmem:[%s2159_s30 + $0xd8] sm:$0xff] }
  0xa3   : > { %v1016_v25 = vpop.permute.xlu0 %1015  ;;  %v1281_v51 = vsel %vm1277_vm12, %v1248_v42, %v1018_v20  ;;  %v680_v5 = vshll.u32 %v2467_v63, 16  ;;  %v678_v14 = vshrl.u32 %v2467_v63, 16  ;;  %v685_v16 = vshll.u32 %v527_v9, 16 }
  0xa4   : > { %937 = vrot.lane.b32.xlu1 %v664_v17, %s2083_s23  ;;  %v1279_v37 = vsel %vm1277_vm12, %v1246_v26, %v1016_v25  ;;  %v434_v0 = vshrl.u32 %v326_v58, 16  ;;  %v437_v12 = vshll.u32 %v326_v58, 16  ;;  %v794_v32 = vrot.slane %v2467_v63, 1 }
  0xa5   : > { %935 = vrot.lane.b32.xlu0 %v2379_v31, %s2083_s23  ;;  %v682_v15 = vrot.slane %v680_v5, 1  ;;  %v687_v21 = vrot.slane %v685_v16, 1  ;;  %v795_v33 = vrot.slane %v527_v9, 1 }
  0xa6   : > { %v2440_v34 = vpop.permute.xlu1 %827  ;;  %v436_v10 = vrot.slane %v434_v0, 7 }
  0xa7   : > { %v1048_v38 = vpop.permute.xlu0 %1047  ;;  %v683_v20 = vor.u32 %v682_v15, %v678_v14  ;;  %v796_v54 = vsel %vm757_vm3, %v794_v32, %v795_v33  ;;  %v311_v14 = vld [vmem:[%s2159_s30 + $0xe8] sm:$0xff] }
  0xa8   : > { %969 = vrot.lane.b32.xlu1 %v790_v28, %s2082_s22  ;;  %v1312_v31 = vsel %vm1310_vm13, %v1279_v37, %v1048_v38  ;;  %v439_v18 = vor.u32 %v437_v12, %v436_v10  ;;  %v528_v37 = vsel %vm2137_vm2, %v436_v10, 0 }
  0xa9   : > { %967 = vrot.lane.b32.xlu0 %v2395_v48, %s2082_s22  ;;  %1942 = vmatprep.mubr.msk.bf16.mxu0 %vm1385_vm14, %v1312_v31  ;;  %v676_v48 = vsel %vm532_vm4, %v671_v45, %v675_v46  ;;  %v688_v35 = vsel %vm532_vm4, %v683_v20, %v687_v21  ;;  %v327_v45 = vpack.c.bf16 %v309_v30, %v308_v29 }
  0xaa   : > { %v2450_v47 = vpop.permute.xlu1 %829  ;;  %v2482_v25 = vsel %vm2137_vm2, 0, %v439_v18 }
  0xab   : > { %v1050_v52 = vpop.permute.xlu0 %1049  ;;  %v692_v38 = vshll.u32 %v2482_v25, 16  ;;  %v444_v10 = vshll.u32 %v327_v45, 16  ;;  %v797_v21 = vrot.slane %v2482_v25, 1 }
  0xac   : > { %v1314_v55 = vsel %vm1310_vm13, %v1281_v51, %v1050_v52  ;;  %1001 = vrot.lane.b32.xlu1 %v2415_v6, %s2081_s17  ;;  %v1087_v51 = vsel %vm1079_vm6, %v2201_v44, %v2450_v47 }
  0xad   : > { %999 = vrot.lane.b32.xlu0 %v2389_v39, %s2081_s17  ;;  %1943 = vmatmul.mubr.msk.bf16.vlgmr.msra.gmra.mrb[0].mxu0 %vm1385_vm14, %v1314_v55  ;;  %v694_v36 = vrot.slane %v692_v38, 1 }
  0xae   : > { %v862_v56 = vpop.permute.xlu1 %861 }
  0xaf   : > { %v860_v59 = vpop.permute.xlu0 %859  ;;  %v1120_v55 = vsel %vm1112_vm7, %v1087_v51, %v862_v56 }
  0xb0   : > { %1033 = vrot.lane.b32.xlu1 %v676_v48, %s2084_s24 }
  0xb1   : > { %1031 = vrot.lane.b32.xlu0 %v664_v17, %s2084_s24 }
  0xb2   : > { %v894_v60 = vpop.permute.xlu1 %893 }
  0xb3   : > { %v892_v1 = vpop.permute.xlu0 %891  ;;  %v1153_v61 = vsel %vm1145_vm8, %v1120_v55, %v894_v60 }
  0xb4   : > { %843 = vrot.lane.b32.xlu1 %v664_v17, %s2079_s9 }
  0xb5   : > { %1063 = vrot.lane.b32.xlu0 %v790_v28, %s2085_s25 }
  0xb6   : > { %v926_v41 = vpop.permute.xlu1 %925 }
  0xb7   : > { %v924_v13 = vpop.permute.xlu0 %923  ;;  %v1186_v47 = vsel %vm1178_vm9, %v1153_v61, %v926_v41 }
  0xb8   : > { %845 = vrot.lane.b32.xlu1 %v676_v48, %s2079_s9 }
  0xb9   : > { %1065 = vrot.lane.b32.xlu0 %v793_v7, %s2085_s25 }
  0xba   : > { %v958_v17 = vpop.permute.xlu1 %957 }
  0xbb   : > { %v956_v19 = vpop.permute.xlu0 %955  ;;  %v1219_v56 = vsel %vm1211_vm10, %v1186_v47, %v958_v17 }
  0xbc   : > { %877 = vrot.lane.b32.xlu1 %v793_v7, %s2078_s8 }
  0xbd   : > { %875 = vrot.lane.b32.xlu0 %v790_v28, %s2078_s8  ;;  %v1085_v28 = vsel %vm1079_vm6, %v2184_v40, %v2440_v34  ;;  %v690_v40 = vshrl.u32 %v2482_v25, 16  ;;  %v697_v34 = vshll.u32 %v528_v37, 16 }
  0xbe   : > { %v990_v23 = vpop.permute.xlu1 %989  ;;  %v1118_v42 = vsel %vm1112_vm7, %v1085_v28, %v860_v59  ;;  %v441_v59 = vshrl.u32 %v327_v45, 16 }
  0xbf   : > { %v988_v26 = vpop.permute.xlu0 %987  ;;  %v1151_v46 = vsel %vm1145_vm8, %v1118_v42, %v892_v1  ;;  %v695_v0 = vor.u32 %v694_v36, %v690_v40  ;;  %v699_v1 = vrot.slane %v697_v34, 1  ;;  %v1252_v60 = vsel %vm1244_vm11, %v1219_v56, %v990_v23 }
  0xc0   : > { %909 = vrot.lane.b32.xlu1 %v2467_v63, %s2080_s14  ;;  %v1184_v50 = vsel %vm1178_vm9, %v1151_v46, %v924_v13  ;;  %v443_v9 = vrot.slane %v441_v59, 7  ;;  %v310_v13 = vld [vmem:[%s2159_s30 + $0xe0] sm:$0xff]  ;;  %v798_v23 = vrot.slane %v528_v37, 1  ;;  %v313_v59 = vld [vmem:[%s2159_s30 + $0xf8] sm:$0xff] }
  0xc1   : > { %907 = vrot.lane.b32.xlu0 %v2415_v6, %s2080_s14  ;;  %v1217_v52 = vsel %vm1211_vm10, %v1184_v50, %v956_v19  ;;  %v328_v18 = vpack.c.bf16 %v311_v14, %v310_v13 }
  0xc2   : > { %v1022_v31 = vpop.permute.xlu1 %1021  ;;  %v1250_v57 = vsel %vm1244_vm11, %v1217_v52, %v988_v26  ;;  %v446_v17 = vor.u32 %v444_v10, %v443_v9  ;;  %v799_v28 = vsel %vm757_vm3, %v797_v21, %v798_v23  ;;  %v529_v38 = vsel %vm2137_vm2, %v443_v9, 0 }
  0xc3   : > { %v1020_v49 = vpop.permute.xlu0 %1019  ;;  %v1285_v41 = vsel %vm1277_vm12, %v1252_v60, %v1022_v31  ;;  %v448_v29 = vshrl.u32 %v328_v18, 16  ;;  %v451_v37 = vshll.u32 %v328_v18, 16  ;;  %v709_v46 = vshll.u32 %v529_v38, 16 }
  0xc4   : > { %941 = vrot.lane.b32.xlu1 %v688_v35, %s2083_s23  ;;  %v1283_v62 = vsel %vm1277_vm12, %v1250_v57, %v1020_v49  ;;  %v2539_v26 = vsel %vm2137_vm2, 0, %v446_v17  ;;  %v312_v57 = vld [vmem:[%s2159_s30 + $0xf0] sm:$0xff] }
  0xc5   : > { %939 = vrot.lane.b32.xlu0 %v676_v48, %s2083_s23  ;;  %v704_v32 = vshll.u32 %v2539_v26, 16  ;;  %v450_v42 = vrot.slane %v448_v29, 7  ;;  %v711_v51 = vrot.slane %v709_v46, 1  ;;  %v800_v61 = vrot.slane %v2539_v26, 1 }
  0xc6   : > { %v2511_v58 = vpop.permute.xlu1 %831 }
  0xc7   : > { %v1052_v44 = vpop.permute.xlu0 %1051  ;;  %v706_v45 = vrot.slane %v704_v32, 1  ;;  %v453_v50 = vor.u32 %v451_v37, %v450_v42 }
  0xc8   : > { %v1316_v48 = vsel %vm1310_vm13, %v1283_v62, %v1052_v44  ;;  %973 = vrot.lane.b32.xlu1 %v796_v54, %s2082_s22  ;;  %v801_v62 = vrot.slane %v529_v38, 1 }
  0xc9   : > { %971 = vrot.lane.b32.xlu0 %v793_v7, %s2082_s22  ;;  %1946 = vmatprep.mubr.msk.bf16.mxu0 %vm1385_vm14, %v1316_v48  ;;  %v700_v7 = vsel %vm532_vm4, %v695_v0, %v699_v1  ;;  %v2554_v36 = vsel %vm2137_vm2, 0, %v453_v50  ;;  %v530_v0 = vsel %vm2137_vm2, %v450_v42, 0  ;;  %v329_v1 = vpack.c.bf16 %v313_v59, %v312_v57 }
  0xca   : > { %v2522_v5 = vpop.permute.xlu1 %833  ;;  %v716_v47 = vshll.u32 %v2554_v36, 16  ;;  %v721_v14 = vshll.u32 %v530_v0, 16  ;;  %v803_v50 = vrot.slane %v2554_v36, 1 }
  0xcb   : > { %v1054_v12 = vpop.permute.xlu0 %1053  ;;  %v458_v42 = vshll.u32 %v329_v1, 16 }
  0xcc   : > { %v1318_v15 = vsel %vm1310_vm13, %v1285_v41, %v1054_v12  ;;  %1005 = vrot.lane.b32.xlu1 %v2482_v25, %s2081_s17  ;;  %v1091_v41 = vsel %vm1079_vm6, %v2261_v43, %v2522_v5  ;;  %v718_v13 = vrot.slane %v716_v47, 1 }
  0xcd   : > { %1003 = vrot.lane.b32.xlu0 %v2467_v63, %s2081_s17  ;;  %1947 = vmatmul.mubr.msk.bf16.gmra.mrb[4].mxu0 %vm1385_vm14, %v1318_v15 }
  0xce   : > { %v866_v16 = vpop.permute.xlu1 %865 }
  0xcf   : > { %v864_v19 = vpop.permute.xlu0 %863  ;;  %v1124_v15 = vsel %vm1112_vm7, %v1091_v41, %v866_v16  ;;  %v723_v16 = vrot.slane %v721_v14, 1 }
  0xd0   : > { %1037 = vrot.lane.b32.xlu1 %v700_v7, %s2084_s24 }
  0xd1   : > { %1035 = vrot.lane.b32.xlu0 %v688_v35, %s2084_s24 }
  0xd2   : > { %v898_v20 = vpop.permute.xlu1 %897 }
  0xd3   : > { %v896_v30 = vpop.permute.xlu0 %895  ;;  %v1157_v21 = vsel %vm1145_vm8, %v1124_v15, %v898_v20 }
  0xd4   : > { %847 = vrot.lane.b32.xlu1 %v688_v35, %s2079_s9  ;;  %v702_v35 = vshrl.u32 %v2539_v26, 16 }
  0xd5   : > { %1067 = vrot.lane.b32.xlu0 %v796_v54, %s2085_s25 }
  0xd6   : > { %v930_v33 = vpop.permute.xlu1 %929  ;;  %v707_v34 = vor.u32 %v706_v45, %v702_v35 }
  0xd7   : > { %v928_v31 = vpop.permute.xlu0 %927 }
  0xd8   : > { %849 = vrot.lane.b32.xlu1 %v700_v7, %s2079_s9  ;;  %v712_v44 = vsel %vm532_vm4, %v707_v34, %v711_v51 }
  0xd9   : > { %1069 = vrot.lane.b32.xlu0 %v799_v28, %s2085_s25 }
  0xda   : > { %v962_v49 = vpop.permute.xlu1 %961 }
  0xdb   : > { %v960_v40 = vpop.permute.xlu0 %959 }
  0xdc   : > { %881 = vrot.lane.b32.xlu1 %v799_v28, %s2078_s8 }
  0xdd   : > { %879 = vrot.lane.b32.xlu0 %v796_v54, %s2078_s8  ;;  %v1089_v54 = vsel %vm1079_vm6, %v2243_v27, %v2511_v58  ;;  %v802_v27 = vsel %vm757_vm3, %v800_v61, %v801_v62  ;;  %v714_v58 = vshrl.u32 %v2554_v36, 16 }
  0xde   : > { %v994_v52 = vpop.permute.xlu1 %993  ;;  %v1122_v48 = vsel %vm1112_vm7, %v1089_v54, %v864_v19  ;;  %v455_v19 = vshrl.u32 %v329_v1, 16 }
  0xdf   : > { %v992_v55 = vpop.permute.xlu0 %991  ;;  %v1155_v60 = vsel %vm1145_vm8, %v1122_v48, %v896_v30  ;;  %v1190_v30 = vsel %vm1178_vm9, %v1157_v21, %v930_v33 }
  0xe0   : > { %913 = vrot.lane.b32.xlu1 %v2539_v26, %s2080_s14  ;;  %v1188_v10 = vsel %vm1178_vm9, %v1155_v60, %v928_v31  ;;  %v1223_v5 = vsel %vm1211_vm10, %v1190_v30, %v962_v49  ;;  %v457_v38 = vrot.slane %v455_v19, 7 }
  0xe1   : > { %911 = vrot.lane.b32.xlu0 %v2482_v25, %s2080_s14  ;;  %v1221_v12 = vsel %vm1211_vm10, %v1188_v10, %v960_v40  ;;  %v1256_v32 = vsel %vm1244_vm11, %v1223_v5, %v994_v52  ;;  %v804_v40 = vrot.slane %v530_v0, 1 }
  0xe2   : > { %v1026_v56 = vpop.permute.xlu1 %1025  ;;  %v1254_v17 = vsel %vm1244_vm11, %v1221_v12, %v992_v55  ;;  %v460_v45 = vor.u32 %v458_v42, %v457_v38  ;;  %v531_v59 = vsel %vm2137_vm2, %v457_v38, 0 }
  0xe3   : > { %v1024_v9 = vpop.permute.xlu0 %1023  ;;  %v1289_v37 = vsel %vm1277_vm12, %v1256_v32, %v1026_v56  ;;  %v805_v57 = vsel %vm757_vm3, %v803_v50, %v804_v40  ;;  %v814_v47 = vshll.u32 %v531_v59, 16 }
  0xe4   : > { %945 = vrot.lane.b32.xlu1 %v712_v44, %s2083_s23  ;;  %v1287_v23 = vsel %vm1277_vm12, %v1254_v17, %v1024_v9  ;;  %v514_v34 = vsel %vm2137_vm2, 0, %v460_v45 }
  0xe5   : > { %943 = vrot.lane.b32.xlu0 %v700_v7, %s2083_s23  ;;  %v719_v7 = vor.u32 %v718_v13, %v714_v58  ;;  %v809_v52 = vshll.u32 %v514_v34, 16  ;;  %v807_v62 = vshrl.u32 %v514_v34, 16  ;;  %v816_v0 = vrot.slane %v814_v47, 1 }
  0xe6   : > { %v836_v18 = vpop.permute.xlu1 %835  ;;  %v820_v10 = vrot.slane %v514_v34, 1  ;;  %v821_v58 = vrot.slane %v531_v59, 1 }
  0xe7   : > { %v1056_v29 = vpop.permute.xlu0 %1055  ;;  %v811_v54 = vrot.slane %v809_v52, 1  ;;  %v1093_v3 = vsel %vm1079_vm6, %v2292_v8, %v836_v18 }
  0xe8   : > { %v1320_v43 = vsel %vm1310_vm13, %v1287_v23, %v1056_v29  ;;  %977 = vrot.lane.b32.xlu1 %v802_v27, %s2082_s22  ;;  %v822_v17 = vsel %vm757_vm3, %v820_v10, %v821_v58 }
  0xe9   : > { %975 = vrot.lane.b32.xlu0 %v799_v28, %s2082_s22  ;;  %1950 = vmatprep.mubr.msk.bf16.mxu0 %vm1385_vm14, %v1320_v43  ;;  %v724_v28 = vsel %vm532_vm4, %v719_v7, %v723_v16 }
  0xea   : > { %v838_v20 = vpop.permute.xlu1 %837 }
  0xeb   : > { %v1058_v33 = vpop.permute.xlu0 %1057  ;;  %v1095_v8 = vsel %vm1079_vm6, %v2307_v22, %v838_v20 }
  0xec   : > { %v1322_v31 = vsel %vm1310_vm13, %v1289_v37, %v1058_v33  ;;  %1009 = vrot.lane.b32.xlu1 %v2554_v36, %s2081_s17 }
  0xed   : > { %1007 = vrot.lane.b32.xlu0 %v2539_v26, %s2081_s17  ;;  %1951 = vmatmul.mubr.msk.bf16.gmra.mrb[8].mxu0 %vm1385_vm14, %v1322_v31 }
  0xee   : > { %v870_v35 = vpop.permute.xlu1 %869 }
  0xef   : > { %v868_v46 = vpop.permute.xlu0 %867  ;;  %v1128_v18 = vsel %vm1112_vm7, %v1095_v8, %v870_v35 }
  0xf0   : > { %1041 = vrot.lane.b32.xlu1 %v724_v28, %s2084_s24  ;;  %v1126_v41 = vsel %vm1112_vm7, %v1093_v3, %v868_v46 }
  0xf1   : > { %1039 = vrot.lane.b32.xlu0 %v712_v44, %s2084_s24 }
  0xf2   : > { %v902_v49 = vpop.permute.xlu1 %901 }
  0xf3   : > { %v900_v51 = vpop.permute.xlu0 %899  ;;  %v1161_v23 = vsel %vm1145_vm8, %v1128_v18, %v902_v49 }
  0xf4   : > { %851 = vrot.lane.b32.xlu1 %v712_v44, %s2079_s9  ;;  %v812_v44 = vor.u32 %v811_v54, %v807_v62 }
  0xf5   : > { %1071 = vrot.lane.b32.xlu0 %v802_v27, %s2085_s25 }
  0xf6   : > { %v934_v55 = vpop.permute.xlu1 %933  ;;  %v817_v9 = vsel %vm532_vm4, %v812_v44, %v816_v0 }
  0xf7   : > { %v932_v61 = vpop.permute.xlu0 %931  ;;  %v1194_v43 = vsel %vm1178_vm9, %v1161_v23, %v934_v55 }
  0xf8   : > { %853 = vrot.lane.b32.xlu1 %v724_v28, %s2079_s9 }
  0xf9   : > { %1073 = vrot.lane.b32.xlu0 %v805_v57, %s2085_s25 }
  0xfa   : > { %v966_v48 = vpop.permute.xlu1 %965 }
  0xfb   : > { %v964_v56 = vpop.permute.xlu0 %963  ;;  %v1227_v5 = vsel %vm1211_vm10, %v1194_v43, %v966_v48 }
  0xfc   : > { %885 = vrot.lane.b32.xlu1 %v805_v57, %s2078_s8 }
  0xfd   : > { %883 = vrot.lane.b32.xlu0 %v802_v27, %s2078_s8  ;;  %v1159_v27 = vsel %vm1145_vm8, %v1126_v41, %v900_v51 }
  0xfe   : > { %v998_v1 = vpop.permute.xlu1 %997  ;;  %v1192_v14 = vsel %vm1178_vm9, %v1159_v27, %v932_v61 }
  0xff   : > { %v996_v60 = vpop.permute.xlu0 %995  ;;  %v1225_v15 = vsel %vm1211_vm10, %v1192_v14, %v964_v56  ;;  %v1260_v7 = vsel %vm1244_vm11, %v1227_v5, %v998_v1 }
 0x100   : > { %917 = vrot.lane.b32.xlu1 %v514_v34, %s2080_s14  ;;  %v1258_v19 = vsel %vm1244_vm11, %v1225_v15, %v996_v60 }
 0x101   : > { %915 = vrot.lane.b32.xlu0 %v2554_v36, %s2080_s14  ;;  %s1903_s14 = sshll.u32 %s2956_s27, 5 }
 0x102   : > { %v1030_v12 = vpop.permute.xlu1 %1029 }
 0x103   : > { %v1028_v13 = vpop.permute.xlu0 %1027  ;;  %v1293_v32 = vsel %vm1277_vm12, %v1260_v7, %v1030_v12 }
 0x104   : > { %949 = vrot.lane.b32.xlu1 %v817_v9, %s2083_s23  ;;  %v1291_v29 = vsel %vm1277_vm12, %v1258_v19, %v1028_v13 }
 0x105   : > { %947 = vrot.lane.b32.xlu0 %v724_v28, %s2083_s23 }
 0x106   : > { %v840_v21 = vpop.permute.xlu1 %839 }
 0x107   : > { %v1060_v30 = vpop.permute.xlu0 %1059  ;;  %v1097_v50 = vsel %vm1079_vm6, %v2338_v53, %v840_v21 }
 0x108   : > { %v1324_v22 = vsel %vm1310_vm13, %v1291_v29, %v1060_v30  ;;  %981 = vrot.lane.b32.xlu1 %v822_v17, %s2082_s22 }
 0x109   : > { %979 = vrot.lane.b32.xlu0 %v805_v57, %s2082_s22  ;;  %1954 = vmatprep.mubr.msk.bf16.mxu0 %vm1385_vm14, %v1324_v22 }
 0x10a   : > { %v842_v16 = vpop.permute.xlu1 %841 }
 0x10b   : > { %v1062_v20 = vpop.permute.xlu0 %1061 }
 0x10c   : > { %v1326_v38 = vsel %vm1310_vm13, %v1293_v32, %v1062_v20  ;;  %1013 = vrot.lane.b32.xlu1 %v2143_v4, %s2081_s17 }
 0x10d   : > { %1011 = vrot.lane.b32.xlu0 %v514_v34, %s2081_s17  ;;  %1955 = vmatmul.mubr.msk.bf16.gmra.mrb[12].mxu0 %vm1385_vm14, %v1326_v38  ;;  %s280_s17 = scalar_lea.vmem %s2952_s7, %s1903_s14 }
 0x10e   : > { %v874_v42 = vpop.permute.xlu1 %873 }
 0x10f   : > { %v872_v37 = vpop.permute.xlu0 %871 }
 0x110   : > { %1045 = vrot.lane.b32.xlu1 %v2170_v24, %s2084_s24  ;;  %v1130_v24 = vsel %vm1112_vm7, %v1097_v50, %v872_v37 }
 0x111   : > { %1043 = vrot.lane.b32.xlu0 %v817_v9, %s2084_s24 }
 0x112   : > { %v906_v33 = vpop.permute.xlu1 %905 }
 0x113   : > { %v904_v31 = vpop.permute.xlu0 %903 }
 0x114   : > { %1077 = vrot.lane.b32.xlu1 %v2154_v11, %s2085_s25  ;;  %v1163_v34 = vsel %vm1145_vm8, %v1130_v24, %v904_v31  ;;  %v1099_v11 = vsel %vm1079_vm6, %v2353_v2, %v842_v16 }
 0x115   : > { %1075 = vrot.lane.b32.xlu0 %v822_v17, %s2085_s25  ;;  %v1132_v57 = vsel %vm1112_vm7, %v1099_v11, %v874_v42 }
 0x116   : > { %v938_v28 = vpop.permute.xlu1 %937  ;;  %v1165_v53 = vsel %vm1145_vm8, %v1132_v57, %v906_v33 }
 0x117   : > { %v936_v4 = vpop.permute.xlu0 %935  ;;  %v1198_v47 = vsel %vm1178_vm9, %v1165_v53, %v938_v28 }
 0x118   : > { %v1196_v52 = vsel %vm1178_vm9, %v1163_v34, %v936_v4 }
 0x11a   : > { %v970_v35 = vpop.permute.xlu1 %969 }
 0x11b   : > { %v968_v45 = vpop.permute.xlu0 %967  ;;  %v1231_v56 = vsel %vm1211_vm10, %v1198_v47, %v970_v35 }
 0x11c   : > { %v1229_v55 = vsel %vm1211_vm10, %v1196_v52, %v968_v45 }
 0x11e   : > { %v1002_v46 = vpop.permute.xlu1 %1001 }
 0x11f   : > { %v1000_v49 = vpop.permute.xlu0 %999  ;;  %v1264_v2 = vsel %vm1244_vm11, %v1231_v56, %v1002_v46 }
 0x120   : > { %v1262_v59 = vsel %vm1244_vm11, %v1229_v55, %v1000_v49 }
 0x122   : > { %v1034_v40 = vpop.permute.xlu1 %1033 }
 0x123   : > { %v1032_v51 = vpop.permute.xlu0 %1031  ;;  %v1297_v0 = vsel %vm1277_vm12, %v1264_v2, %v1034_v40 }
 0x124   : > { %v1295_v62 = vsel %vm1277_vm12, %v1262_v59, %v1032_v51 }
 0x126   : > { %v844_v61 = vpop.permute.xlu1 %843 }
 0x127   : > { %v1064_v54 = vpop.permute.xlu0 %1063  ;;  %v1101_v15 = vsel %vm1079_vm6, %v2389_v39, %v844_v61 }
 0x128   : > { %v1328_v48 = vsel %vm1310_vm13, %v1295_v62, %v1064_v54 }
 0x129   : > { %1958 = vmatprep.mubr.msk.bf16.mxu1 %vm1385_vm14, %v1328_v48 }
 0x12a   : > { %v846_v44 = vpop.permute.xlu1 %845 }
 0x12b   : > { %v1066_v1 = vpop.permute.xlu0 %1065  ;;  %v1103_v29 = vsel %vm1079_vm6, %v2415_v6, %v846_v44 }
 0x12c   : > { %v1330_v60 = vsel %vm1310_vm13, %v1297_v0, %v1066_v1 }
 0x12d   : > { %1959 = vmatmul.mubr.msk.bf16.vlgmr.msra.gmra.mrb[0].mxu1 %vm1385_vm14, %v1330_v60 }
 0x12e   : > { %v878_v3 = vpop.permute.xlu1 %877 }
 0x12f   : > { %v876_v9 = vpop.permute.xlu0 %875  ;;  %v1136_v43 = vsel %vm1112_vm7, %v1103_v29, %v878_v3 }
 0x130   : > { %v1134_v17 = vsel %vm1112_vm7, %v1101_v15, %v876_v9 }
 0x132   : > { %v910_v10 = vpop.permute.xlu1 %909 }
 0x133   : > { %v908_v58 = vpop.permute.xlu0 %907  ;;  %v1169_v39 = vsel %vm1145_vm8, %v1136_v43, %v910_v10 }
 0x134   : > { %v1167_v19 = vsel %vm1145_vm8, %v1134_v17, %v908_v58 }
 0x136   : > { %v942_v41 = vpop.permute.xlu1 %941 }
 0x137   : > { %v940_v12 = vpop.permute.xlu0 %939  ;;  %v1202_v32 = vsel %vm1178_vm9, %v1169_v39, %v942_v41 }
 0x138   : > { %v1200_v23 = vsel %vm1178_vm9, %v1167_v19, %v940_v12 }
 0x13a   : > { %v974_v27 = vpop.permute.xlu1 %973 }
 0x13b   : > { %v972_v13 = vpop.permute.xlu0 %971  ;;  %v1235_v38 = vsel %vm1211_vm10, %v1202_v32, %v974_v27 }
 0x13c   : > { %v1233_v30 = vsel %vm1211_vm10, %v1200_v23, %v972_v13 }
 0x13e   : > { %v1006_v14 = vpop.permute.xlu1 %1005 }
 0x13f   : > { %v1004_v8 = vpop.permute.xlu0 %1003  ;;  %v1268_v6 = vsel %vm1244_vm11, %v1235_v38, %v1006_v14 }
 0x140   : > { %v1266_v22 = vsel %vm1244_vm11, %v1233_v30, %v1004_v8 }
 0x142   : > { %v1038_v18 = vpop.permute.xlu1 %1037 }
 0x143   : > { %v1036_v21 = vpop.permute.xlu0 %1035  ;;  %v1301_v37 = vsel %vm1277_vm12, %v1268_v6, %v1038_v18 }
 0x144   : > { %v1299_v7 = vsel %vm1277_vm12, %v1266_v22, %v1036_v21 }
 0x146   : > { %v848_v5 = vpop.permute.xlu1 %847 }
 0x147   : > { %v1068_v16 = vpop.permute.xlu0 %1067  ;;  %v1105_v51 = vsel %vm1079_vm6, %v2467_v63, %v848_v5 }
 0x148   : > { %v1332_v20 = vsel %vm1310_vm13, %v1299_v7, %v1068_v16 }
 0x149   : > { %1962 = vmatprep.mubr.msk.bf16.mxu1 %vm1385_vm14, %v1332_v20 }
 0x14a   : > { %v850_v42 = vpop.permute.xlu1 %849 }
 0x14b   : > { %v1070_v33 = vpop.permute.xlu0 %1069  ;;  %v1107_v61 = vsel %vm1079_vm6, %v2482_v25, %v850_v42 }
 0x14c   : > { %v1334_v31 = vsel %vm1310_vm13, %v1301_v37, %v1070_v33 }
 0x14d   : > { %1963 = vmatmul.mubr.msk.bf16.gmra.mrb[4].mxu1 %vm1385_vm14, %v1334_v31 }
 0x14e   : > { %v882_v28 = vpop.permute.xlu1 %881 }
 0x14f   : > { %v880_v4 = vpop.permute.xlu0 %879  ;;  %v1140_v62 = vsel %vm1112_vm7, %v1107_v61, %v882_v28 }
 0x150   : > { %v1138_v52 = vsel %vm1112_vm7, %v1105_v51, %v880_v4 }
 0x152   : > { %v914_v35 = vpop.permute.xlu1 %913 }
 0x153   : > { %v912_v45 = vpop.permute.xlu0 %911  ;;  %v1173_v63 = vsel %vm1145_vm8, %v1140_v62, %v914_v35 }
 0x154   : > { %v1171_v55 = vsel %vm1145_vm8, %v1138_v52, %v912_v45 }
 0x156   : > { %v946_v46 = vpop.permute.xlu1 %945 }
 0x157   : > { %v944_v49 = vpop.permute.xlu0 %943  ;;  %v1206_v2 = vsel %vm1178_vm9, %v1173_v63, %v946_v46 }
 0x158   : > { %v1204_v59 = vsel %vm1178_vm9, %v1171_v55, %v944_v49 }
 0x15a   : > { %v978_v50 = vpop.permute.xlu1 %977 }
 0x15b   : > { %v976_v24 = vpop.permute.xlu0 %975  ;;  %v1239_v0 = vsel %vm1211_vm10, %v1206_v2, %v978_v50 }
 0x15c   : > { %v1237_v53 = vsel %vm1211_vm10, %v1204_v59, %v976_v24 }
 0x15e   : > { %v1010_v40 = vpop.permute.xlu1 %1009 }
 0x15f   : > { %v1008_v34 = vpop.permute.xlu0 %1007  ;;  %v1272_v25 = vsel %vm1244_vm11, %v1239_v0, %v1010_v40 }
 0x160   : > { %v1270_v54 = vsel %vm1244_vm11, %v1237_v53, %v1008_v34 }
 0x162   : > { %v1042_v11 = vpop.permute.xlu1 %1041 }
 0x163   : > { %v1040_v57 = vpop.permute.xlu0 %1039  ;;  %v1305_v60 = vsel %vm1277_vm12, %v1272_v25, %v1042_v11 }
 0x164   : > { %v1303_v48 = vsel %vm1277_vm12, %v1270_v54, %v1040_v57  ;;  %v2735_v57 = vld [vmem:[%s2947_s2] ss:$0 sm:$0xff] }
 0x166   : > { %v852_v47 = vpop.permute.xlu1 %851 }
 0x167   : > { %v1072_v56 = vpop.permute.xlu0 %1071  ;;  %v1109_v21 = vsel %vm1079_vm6, %v2539_v26, %v852_v47 }
 0x168   : > { %v1336_v44 = vsel %vm1310_vm13, %v1303_v48, %v1072_v56 }
 0x169   : > { %1966 = vmatprep.mubr.msk.bf16.mxu1 %vm1385_vm14, %v1336_v44 }
 0x16a   : > { %v854_v1 = vpop.permute.xlu1 %853 }
 0x16b   : > { %v1074_v3 = vpop.permute.xlu0 %1073  ;;  %v1111_v18 = vsel %vm1079_vm6, %v2554_v36, %v854_v1 }
 0x16c   : > { %v1338_v9 = vsel %vm1310_vm13, %v1305_v60, %v1074_v3 }
 0x16d   : > { %1967 = vmatmul.mubr.msk.bf16.gmra.mrb[8].mxu1 %vm1385_vm14, %v1338_v9 }
 0x16e   : > { %v886_v10 = vpop.permute.xlu1 %885 }
 0x16f   : > { %v884_v58 = vpop.permute.xlu0 %883  ;;  %v1144_v23 = vsel %vm1112_vm7, %v1111_v18, %v886_v10 }
 0x170   : > { %v1142_v30 = vsel %vm1112_vm7, %v1109_v21, %v884_v58 }
 0x172   : > { %v918_v41 = vpop.permute.xlu1 %917 }
 0x173   : > { %v916_v12 = vpop.permute.xlu0 %915  ;;  %v1177_v43 = vsel %vm1145_vm8, %v1144_v23, %v918_v41 }
 0x174   : > { %v1175_v39 = vsel %vm1145_vm8, %v1142_v30, %v916_v12 }
 0x176   : > { %v950_v27 = vpop.permute.xlu1 %949 }
 0x177   : > { %v948_v13 = vpop.permute.xlu0 %947  ;;  %v1210_v7 = vsel %vm1178_vm9, %v1177_v43, %v950_v27 }
 0x178   : > { %v1208_v36 = vsel %vm1178_vm9, %v1175_v39, %v948_v13 }
 0x17a   : > { %v982_v14 = vpop.permute.xlu1 %981 }
 0x17b   : > { %v980_v8 = vpop.permute.xlu0 %979  ;;  %v1243_v20 = vsel %vm1211_vm10, %v1210_v7, %v982_v14 }
 0x17c   : > { %v1241_v26 = vsel %vm1211_vm10, %v1208_v36, %v980_v8 }
 0x17e   : > { %v1014_v15 = vpop.permute.xlu1 %1013 }
 0x17f   : > { %v1012_v17 = vpop.permute.xlu0 %1011  ;;  %v1276_v38 = vsel %vm1244_vm11, %v1243_v20, %v1014_v15 }
 0x180   : > { %v1944_v19 = vpop.f32.mrb[0].mxu0  ;;  %v1274_v6 = vsel %vm1244_vm11, %v1241_v26, %v1012_v17 }
 0x181   : > { %v1456_v29 = vpop.f32.mrb[1].mxu0  ;;  %v2746_v63 = vadd.f32 %v1944_v19, %v2735_v57 }
 0x182   : > { %v1945_v22 = vpop.f32.mrb[2].mxu0  ;;  %v1046_v5 = vpop.permute.xlu1 %1045  ;;  %v2741_v61 = vadd.f32 %v2735_v57, %v1456_v29 }
 0x183   : > { %v1459_v16 = vpop.f32.mrb[3].mxu0  ;;  %v1044_v32 = vpop.permute.xlu0 %1043  ;;  %v1309_v42 = vsel %vm1277_vm12, %v1276_v38, %v1046_v5  ;;  %v1587_v44 = vsel %vm1583_vm15, %v2746_v63, 0.0  ;;  %v2753_v0 = vadd.f32 %v1945_v22, %v2735_v57 }
 0x184   : > { %v1307_v33 = vsel %vm1277_vm12, %v1274_v6, %v1044_v32  ;;  %v2738_v59 = vadd.f32 %v2735_v57, %v1459_v16  ;;  %v1584_v48 = vsel %vm1583_vm15, %v2741_v61, 0.0 }
 0x185   : > { %v1589_v60 = vsel %vm1583_vm15, %v2753_v0, 0.0 }
 0x186   : > { %v1078_v37 = vpop.permute.xlu1 %1077  ;;  %v1585_v62 = vsel %vm1583_vm15, %v2738_v59, 0.0 }
 0x187   : > { %v1342_v31 = vsel %vm1310_vm13, %v1309_v42, %v1078_v37  ;;  %v1076_v28 = vpop.permute.xlu0 %1075  ;;  %v1586_v2 = vadd.f32 %v1585_v62, %v1584_v48 }
 0x188   : > { %v1340_v4 = vsel %vm1310_vm13, %v1307_v33, %v1076_v28 }
 0x189   : > { %1970 = vmatprep.mubr.msk.bf16.mxu1 %vm1385_vm14, %v1340_v4  ;;  %v1588_v1 = vadd.f32 %v1587_v44, %v1586_v2 }
 0x18a   : > { %1971 = vmatmul.mubr.msk.bf16.gmra.mrb[12].mxu1 %vm1385_vm14, %v1342_v31 }
 0x18b   : > { %v1590_v10 = vadd.f32 %v1589_v60, %v1588_v1 }
 0x1a0   : > { %v1948_v35 = vpop.f32.mrb[4].mxu0 }
 0x1a1   : > { %v1472_v45 = vpop.f32.mrb[5].mxu0  ;;  %v2768_v12 = vadd.f32 %v1948_v35, %v2735_v57 }
 0x1a2   : > { %v1949_v46 = vpop.f32.mrb[6].mxu0  ;;  %v2756_v25 = vadd.f32 %v2735_v57, %v1472_v45 }
 0x1a3   : > { %v1475_v49 = vpop.f32.mrb[7].mxu0  ;;  %v1595_v13 = vsel %vm1583_vm15, %v2768_v12, 0.0  ;;  %v2773_v14 = vadd.f32 %v1949_v46, %v2735_v57 }
 0x1a4   : > { %v1591_v3 = vsel %vm1583_vm15, %v2756_v25, 0.0  ;;  %v2763_v9 = vadd.f32 %v2735_v57, %v1475_v49 }
 0x1a5   : > { %v1592_v58 = vadd.f32 %v1591_v3, %v1590_v10  ;;  %v1597_v17 = vsel %vm1583_vm15, %v2773_v14, 0.0 }
 0x1a6   : > { %v1593_v41 = vsel %vm1583_vm15, %v2763_v9, 0.0 }
 0x1a7   : > { %v1594_v27 = vadd.f32 %v1593_v41, %v1592_v58 }
 0x1a9   : > { %v1596_v15 = vadd.f32 %v1595_v13, %v1594_v27 }
 0x1ab   : > { %v1598_v21 = vadd.f32 %v1597_v17, %v1596_v15 }
 0x1c0   : > { %v1952_v50 = vpop.f32.mrb[8].mxu0 }
 0x1c1   : > { %v1488_v24 = vpop.f32.mrb[9].mxu0  ;;  %v2788_v30 = vadd.f32 %v1952_v50, %v2735_v57 }
 0x1c2   : > { %v1953_v40 = vpop.f32.mrb[10].mxu0  ;;  %v2776_v8 = vadd.f32 %v2735_v57, %v1488_v24 }
 0x1c3   : > { %v1491_v34 = vpop.f32.mrb[11].mxu0  ;;  %v1603_v7 = vsel %vm1583_vm15, %v2788_v30, 0.0  ;;  %v2793_v16 = vadd.f32 %v1953_v40, %v2735_v57 }
 0x1c4   : > { %v1599_v18 = vsel %vm1583_vm15, %v2776_v8, 0.0  ;;  %v2783_v19 = vadd.f32 %v2735_v57, %v1491_v34 }
 0x1c5   : > { %v1600_v23 = vadd.f32 %v1599_v18, %v1598_v21  ;;  %v1605_v26 = vsel %vm1583_vm15, %v2793_v16, 0.0 }
 0x1c6   : > { %v1601_v29 = vsel %vm1583_vm15, %v2783_v19, 0.0 }
 0x1c7   : > { %v1602_v43 = vadd.f32 %v1601_v29, %v1600_v23 }
 0x1c9   : > { %v1604_v20 = vadd.f32 %v1603_v7, %v1602_v43 }
 0x1cb   : > { %v1606_v42 = vadd.f32 %v1605_v26, %v1604_v20 }
 0x1e0   : > { %v1956_v51 = vpop.f32.mrb[12].mxu0 }
 0x1e1   : > { %v1504_v52 = vpop.f32.mrb[13].mxu0  ;;  %v2808_v31 = vadd.f32 %v1956_v51, %v2735_v57 }
 0x1e2   : > { %v1957_v11 = vpop.f32.mrb[14].mxu0  ;;  %v2796_v32 = vadd.f32 %v2735_v57, %v1504_v52 }
 0x1e3   : > { %v1507_v55 = vpop.f32.mrb[15].mxu0  ;;  %v1611_v4 = vsel %vm1583_vm15, %v2808_v31, 0.0  ;;  %v2813_v35 = vadd.f32 %v1957_v11, %v2735_v57 }
 0x1e4   : > { %v1607_v38 = vsel %vm1583_vm15, %v2796_v32, 0.0  ;;  %v2803_v6 = vadd.f32 %v2735_v57, %v1507_v55 }
 0x1e5   : > { %v1608_v37 = vadd.f32 %v1607_v38, %v1606_v42  ;;  %v1613_v49 = vsel %vm1583_vm15, %v2813_v35, 0.0 }
 0x1e6   : > { %v1609_v33 = vsel %vm1583_vm15, %v2803_v6, 0.0 }
 0x1e7   : > { %v1610_v28 = vadd.f32 %v1609_v33, %v1608_v37 }
 0x1e9   : > { %v1612_v46 = vadd.f32 %v1611_v4, %v1610_v28 }
 0x1eb   : > { %v1614_v40 = vadd.f32 %v1613_v49, %v1612_v46 }
 0x200   : > { %v1960_v53 = vpop.f32.mrb[0].mxu1 }
 0x201   : > { %v1520_v54 = vpop.f32.mrb[1].mxu1  ;;  %v2828_v52 = vadd.f32 %v1960_v53, %v2735_v57 }
 0x202   : > { %v1961_v47 = vpop.f32.mrb[2].mxu1  ;;  %v2816_v45 = vadd.f32 %v2735_v57, %v1520_v54 }
 0x203   : > { %v1523_v56 = vpop.f32.mrb[3].mxu1  ;;  %v1619_v55 = vsel %vm1583_vm15, %v2828_v52, 0.0  ;;  %v2833_v62 = vadd.f32 %v1961_v47, %v2735_v57 }
 0x204   : > { %v1615_v50 = vsel %vm1583_vm15, %v2816_v45, 0.0  ;;  %v2823_v24 = vadd.f32 %v2735_v57, %v1523_v56 }
 0x205   : > { %v1616_v34 = vadd.f32 %v1615_v50, %v1614_v40  ;;  %v1621_v1 = vsel %vm1583_vm15, %v2833_v62, 0.0 }
 0x206   : > { %v1617_v51 = vsel %vm1583_vm15, %v2823_v24, 0.0 }
 0x207   : > { %v1618_v11 = vadd.f32 %v1617_v51, %v1616_v34 }
 0x209   : > { %v1620_v48 = vadd.f32 %v1619_v55, %v1618_v11 }
 0x20b   : > { %v1622_v10 = vadd.f32 %v1621_v1, %v1620_v48 }
 0x220   : > { %v1964_v22 = vpop.f32.mrb[4].mxu1 }
 0x221   : > { %v1536_v5 = vpop.f32.mrb[5].mxu1  ;;  %v2848_v41 = vadd.f32 %v1964_v22, %v2735_v57 }
 0x222   : > { %v1965_v39 = vpop.f32.mrb[6].mxu1  ;;  %v2836_v54 = vadd.f32 %v2735_v57, %v1536_v5 }
 0x223   : > { %v1539_v36 = vpop.f32.mrb[7].mxu1  ;;  %v1627_v13 = vsel %vm1583_vm15, %v2848_v41, 0.0  ;;  %v2853_v15 = vadd.f32 %v1965_v39, %v2735_v57 }
 0x224   : > { %v1623_v53 = vsel %vm1583_vm15, %v2836_v54, 0.0  ;;  %v2843_v60 = vadd.f32 %v2735_v57, %v1539_v36 }
 0x225   : > { %v1624_v47 = vadd.f32 %v1623_v53, %v1622_v10  ;;  %v1629_v21 = vsel %vm1583_vm15, %v2853_v15, 0.0 }
 0x226   : > { %v1625_v58 = vsel %vm1583_vm15, %v2843_v60, 0.0 }
 0x227   : > { %v1626_v27 = vadd.f32 %v1625_v58, %v1624_v47 }
 0x229   : > { %v1628_v18 = vadd.f32 %v1627_v13, %v1626_v27 }
 0x22b   : > { %v1630_v43 = vadd.f32 %v1629_v21, %v1628_v18  ;;  %v1661_v21 = vld [vmem:[#allocation2] sm:$0x1] }
 0x240   : > { %v1968_v56 = vpop.f32.mrb[8].mxu1 }
 0x241   : > { %v1552_v2 = vpop.f32.mrb[9].mxu1  ;;  %v2868_v39 = vadd.f32 %v1968_v56, %v2735_v57 }
 0x242   : > { %v1969_v44 = vpop.f32.mrb[10].mxu1  ;;  %v2856_v17 = vadd.f32 %v2735_v57, %v1552_v2 }
 0x243   : > { %v1555_v3 = vpop.f32.mrb[11].mxu1  ;;  %v1635_v36 = vsel %vm1583_vm15, %v2868_v39, 0.0  ;;  %v2873_v20 = vadd.f32 %v1969_v44, %v2735_v57 }
 0x244   : > { %v1631_v23 = vsel %vm1583_vm15, %v2856_v17, 0.0  ;;  %v2863_v29 = vadd.f32 %v2735_v57, %v1555_v3 }
 0x245   : > { %v1632_v22 = vadd.f32 %v1631_v23, %v1630_v43  ;;  %v1637_v37 = vsel %vm1583_vm15, %v2873_v20, 0.0 }
 0x246   : > { %v1633_v5 = vsel %vm1583_vm15, %v2863_v29, 0.0 }
 0x247   : > { %v1634_v7 = vadd.f32 %v1633_v5, %v1632_v22  ;;  %v1664_v5 = vld [vmem:[%s2950_s5] sm:$0x1] }
 0x249   : > { %v1636_v26 = vadd.f32 %v1635_v36, %v1634_v7  ;;  %v1672_v7 = vld [vmem:[%s2951_s6] sm:$0x1] }
 0x24b   : > { %v1638_v4 = vadd.f32 %v1637_v37, %v1636_v26 }
 0x25d   : > { %v1972_v38 = vpop.f32.mrb[12].mxu1 }
 0x25e   : > { %v1568_v42 = vpop.f32.mrb[13].mxu1  ;;  %v2881_v49 = vadd.f32 %v1972_v38, %v2735_v57 }
 0x25f   : > { %v2878_v33 = vadd.f32 %v2735_v57, %v1568_v42  ;;  %v1973_v28 = vpop.f32.mrb[14].mxu1 }
 0x260   : > { %v1571_v46 = vpop.f32.mrb[15].mxu1  ;;  %v2889_v51 = vadd.f32 %v1973_v28, %v2735_v57  ;;  %v1643_v48 = vsel %vm1583_vm15, %v2881_v49, 0.0 }
 0x261   : > { %v1639_v50 = vsel %vm1583_vm15, %v2878_v33, 0.0  ;;  %v2886_v40 = vadd.f32 %v2735_v57, %v1571_v46  ;;  %v1655_v57 = vld [vmem:[%s2948_s3] sm:$0x1] }
 0x262   : > { %v1640_v34 = vadd.f32 %v1639_v50, %v1638_v4  ;;  %v1645_v2 = vsel %vm1583_vm15, %v2889_v51, 0.0  ;;  %v1680_v4 = vlaneseq }
 0x263   : > { %v1641_v11 = vsel %vm1583_vm15, %v2886_v40, 0.0 }
 0x264   : > { %v1642_v55 = vadd.f32 %v1641_v11, %v1640_v34  ;;  %v1681_v46 = vshrl.u32 %v1680_v4, 7 }
 0x266   : > { %v1644_v56 = vadd.f32 %v1643_v48, %v1642_v55  ;;  %v1682_v50 = vsub.s32 0, %v1681_v46 }
 0x268   : > { %v1646_v44 = vadd.f32 %v1645_v2, %v1644_v56 }
 0x26a   : > { %v1647_v1 = vrot.slane %v1646_v44, 4 }
 0x26c   : > { %v1648_v53 = vadd.f32 %v1647_v1, %v1646_v44 }
 0x26e   : > { %v1649_v3 = vrot.slane %v1648_v53, 2 }
 0x270   : > { %v1650_v10 = vadd.f32 %v1649_v3, %v1648_v53 }
 0x272   : > { %v1651_v47 = vrot.slane %v1650_v10, 1 }
 0x274   : > { %v1652_v58 = vadd.f32 %v1651_v47, %v1650_v10 }
 0x276   : > { %v1654_v27 = vmul.f32 0.00390625, %v1652_v58 }
 0x278   : > { %v1656_v13 = vmul.f32 %v1655_v57, %v1654_v27 }
 0x27a   : > { %v1658_v18 = vsel %vm1657_vm0, %v1656_v13, 0.0 }
 0x27b   : > { %1659 = vadd.xlane.f32.xlu0 %v1658_v18 }
 0x308   : > { %v1660_v23 = vpop.xlane.xlu0 %1659 }
 0x309   : > { %v1662_v43 = vadd.f32 %v1661_v21, %v1660_v23 }
 0x30b   : > { %v1663_v22 = vmax.f32 %v1662_v43, 0.0 }
 0x30d   : > { %1667 = vperm.xlu1 %2005, %v1663_v22  }
 0x38c   : > { %v1668_v36 = vpop.permute.xlu1 %1667 }
 0x38d   : > { %v1670_v26 = vmul.f32 %v1668_v36, %v1664_v5 }
 0x38f   : > { %v1673_v38 = vadd.f32 %v1672_v7, %v1670_v26 }
 0x391   : > { %v1895_v42 = vmul.f32 -1.442695, %v1673_v38 }
 0x393   : > { %2065 = vpow2.f32 %v1895_v42 }
 0x39d   : > { %v2066_v37 = vpop.eup %2065 }
 0x39e   : > { %v1677_v28 = vadd.f32 1.0, %v2066_v37 }
 0x3a0   : > { %2067 = vrcp.f32 %v1677_v28 }
 0x3aa   : > { %v2068_v34 = vpop.eup %2067 }
 0x3ab   : > { %v1683_v11 = vrot.slane %v2068_v34, %v1682_v50 }
 0x3ad   : > { %v1684_v55 = vmul.f32 %v1683_v11, %v2741_v61  ;;  %v1700_v48 = vmul.f32 %v1683_v11, %v2816_v45  ;;  %v1685_v56 = vmul.f32 %v1683_v11, %v2738_v59  ;;  %v1701_v2 = vmul.f32 %v1683_v11, %v2823_v24 }
 0x3ae   : > { %v1686_v1 = vmul.f32 %v1683_v11, %v2746_v63  ;;  %v1702_v53 = vmul.f32 %v1683_v11, %v2828_v52  ;;  %v1687_v10 = vmul.f32 %v1683_v11, %v2753_v0  ;;  %v1703_v47 = vmul.f32 %v1683_v11, %v2833_v62 }
 0x3af   : > { %v2006_v44 = vpack.i.bf16 %v1700_v48, %v1684_v55  ;;  %v2008_v3 = vpack.i.bf16 %v1701_v2, %v1685_v56  ;;  %v1688_v61 = vmul.f32 %v1683_v11, %v2756_v25  ;;  %v1704_v59 = vmul.f32 %v1683_v11, %v2836_v54 }
 0x3b0   : > { %v2010_v58 = vpack.i.bf16 %v1702_v53, %v1686_v1  ;;  %v2012_v45 = vpack.i.bf16 %v1703_v47, %v1687_v10  ;;  %v1689_v24 = vmul.f32 %v1683_v11, %v2763_v9  ;;  %v1705_v63 = vmul.f32 %v1683_v11, %v2843_v60 }
 0x3b1   : > { %2007 = vxpose.xlu1.b32.start [1/16] (narrow) %v2006_v44, 32  ;;  %v2014_v57 = vpack.i.bf16 %v1704_v59, %v1688_v61  ;;  %v1690_v52 = vmul.f32 %v1683_v11, %v2768_v12  ;;  %v1706_v0 = vmul.f32 %v1683_v11, %v2848_v41  ;;  %v1691_v62 = vmul.f32 %v1683_v11, %v2773_v14 }
 0x3b2   : > { %v2016_v27 = vpack.i.bf16 %v1705_v63, %v1689_v24  ;;  %v1707_v25 = vmul.f32 %v1683_v11, %v2853_v15  ;;  %v1692_v54 = vmul.f32 %v1683_v11, %v2776_v8  ;;  %v1708_v9 = vmul.f32 %v1683_v11, %v2856_v17 }
 0x3b3   : > { %v2018_v13 = vpack.i.bf16 %v1706_v0, %v1690_v52  ;;  %v1693_v60 = vmul.f32 %v1683_v11, %v2783_v19  ;;  %v1709_v12 = vmul.f32 %v1683_v11, %v2863_v29  ;;  %v1694_v41 = vmul.f32 %v1683_v11, %v2788_v30 }
 0x3b4   : > { %v2020_v18 = vpack.i.bf16 %v1707_v25, %v1691_v62  ;;  %v2022_v21 = vpack.i.bf16 %v1708_v9, %v1692_v54  ;;  %v1710_v14 = vmul.f32 %v1683_v11, %v2868_v39  ;;  %v1695_v15 = vmul.f32 %v1683_v11, %v2793_v16 }
 0x3b5   : > { %2009 = vxpose.xlu1.b32.cont [2/16] (narrow) %v2008_v3, 32  ;;  %v2024_v23 = vpack.i.bf16 %v1709_v12, %v1693_v60  ;;  %v1711_v8 = vmul.f32 %v1683_v11, %v2873_v20  ;;  %v1696_v17 = vmul.f32 %v1683_v11, %v2796_v32  ;;  %v1712_v19 = vmul.f32 %v1683_v11, %v2878_v33 }
 0x3b6   : > { %v2026_v43 = vpack.i.bf16 %v1710_v14, %v1694_v41  ;;  %v1697_v29 = vmul.f32 %v1683_v11, %v2803_v6  ;;  %v1713_v30 = vmul.f32 %v1683_v11, %v2886_v40  ;;  %v1698_v5 = vmul.f32 %v1683_v11, %v2808_v31 }
 0x3b7   : > { %v2028_v22 = vpack.i.bf16 %v1711_v8, %v1695_v15  ;;  %v2030_v39 = vpack.i.bf16 %v1712_v19, %v1696_v17  ;;  %v1714_v16 = vmul.f32 %v1683_v11, %v2881_v49  ;;  %v1699_v7 = vmul.f32 %v1683_v11, %v2813_v35 }
 0x3b8   : > { %v2032_v20 = vpack.i.bf16 %v1713_v30, %v1697_v29  ;;  %v1715_v32 = vmul.f32 %v1683_v11, %v2889_v51 }
 0x3b9   : > { %2011 = vxpose.xlu1.b32.cont [3/16] (narrow) %v2010_v58, 32  ;;  %v2034_v33 = vpack.i.bf16 %v1714_v16, %v1698_v5 }
 0x3ba   : > { %v2036_v36 = vpack.i.bf16 %v1715_v32, %v1699_v7 }
 0x3bd   : > { %2013 = vxpose.xlu1.b32.cont [4/16] (narrow) %v2012_v45, 32 }
 0x3c1   : > { %2015 = vxpose.xlu1.b32.cont [5/16] (narrow) %v2014_v57, 32 }
 0x3c5   : > { %2017 = vxpose.xlu1.b32.cont [6/16] (narrow) %v2016_v27, 32 }
 0x3c9   : > { %2019 = vxpose.xlu1.b32.cont [7/16] (narrow) %v2018_v13, 32 }
 0x3cd   : > { %2021 = vxpose.xlu1.b32.cont [8/16] (narrow) %v2020_v18, 32 }
 0x3d1   : > { %2023 = vxpose.xlu1.b32.cont [9/16] (narrow) %v2022_v21, 32 }
 0x3d5   : > { %2025 = vxpose.xlu1.b32.cont [10/16] (narrow) %v2024_v23, 32 }
 0x3d9   : > { %2027 = vxpose.xlu1.b32.cont [11/16] (narrow) %v2026_v43, 32 }
 0x3dd   : > { %2029 = vxpose.xlu1.b32.cont [12/16] (narrow) %v2028_v22, 32 }
 0x3e1   : > { %2031 = vxpose.xlu1.b32.cont [13/16] (narrow) %v2030_v39, 32 }
 0x3e5   : > { %2033 = vxpose.xlu1.b32.cont [14/16] (narrow) %v2032_v20, 32 }
 0x3e9   : > { %2035 = vxpose.xlu1.b32.cont [15/16] (narrow) %v2034_v33, 32 }
 0x3ed   : > { %2037 = vxpose.xlu1.b32.end [16/16] (narrow) %v2036_v36, 32 }
 0x431   : > { %v2038_v6 = vpop.trf.xlu1 }
 0x432   : > { %v2042_v26 = vunpack.i.h.bf16 %v2038_v6  ;;  %v2039_v40 = vunpack.i.l.bf16 %v2038_v6 }
 0x434   : > { %v1904_v31 = vpack.c.bf16 %v2042_v26, %v2039_v40 }
 0x435   : > { %v2043_v49 = vpop.trf.xlu1 }
 0x436   : > { %1804 = vst [vmem:[%s280_s17] sm:$0xff] %v1904_v31  ;;  %v2047_v38 = vunpack.i.h.bf16 %v2043_v49  ;;  %v2044_v42 = vunpack.i.l.bf16 %v2043_v49 }
 0x438   : > { %v1905_v35 = vpack.c.bf16 %v2047_v38, %v2044_v42 }
 0x439   : > { %v2048_v37 = vpop.trf.xlu1 }
 0x43a   : > { %1805 = vst [vmem:[%s280_s17 + $0x8] sm:$0xff] %v1905_v35  ;;  %v2052_v51 = vunpack.i.h.bf16 %v2048_v37  ;;  %v2049_v28 = vunpack.i.l.bf16 %v2048_v37 }
 0x43c   : > { %v1906_v4 = vpack.c.bf16 %v2052_v51, %v2049_v28 }
 0x43d   : > { %v2053_v46 = vpop.trf.xlu1 }
 0x43e   : > { %1806 = vst [vmem:[%s280_s17 + $0x10] sm:$0xff] %v1906_v4  ;;  %v2057_v50 = vunpack.i.h.bf16 %v2053_v46  ;;  %v2054_v34 = vunpack.i.l.bf16 %v2053_v46 }
 0x440   : > { %v1907_v11 = vpack.c.bf16 %v2057_v50, %v2054_v34 }
 0x442   : > { %1807 = vst [vmem:[%s280_s17 + $0x18] sm:$0xff] %v1907_v11 }
 0x443 PF: > { %s19_s26 = sadd.s32 1, %s2075_s26  }
 0x444   : > { %p16_p4 = scmp.ge.s32.totalorder %s19_s26, 4  }
 0x446   :  { %18 = sbr.rel (!%p16_p4) target bundleno = 3 (0x3), region = 78 }

// kernel: wave_attention.6
= control target key start
LH: loop header
LB: loop body
LE: loop exit
PB: predicated region body
PF: predicated region fallthrough
CT: control target
= control target key end

     0   :  { %s1650_s15 = smov 0   ;;  %s2347_s0 = inlined_call_operand.vmem [shape: bf16[2,8,8,32], index: 0, kind: input, shape index: {}]   ;;  %s2348_s1 = inlined_call_operand.vmem [shape: bf16[288,32], index: 1, kind: input, shape index: {}]   ;;  %s2349_s2 = inlined_call_operand.vmem [shape: f32[1,32], index: 2, kind: input, shape index: {}]   ;;  %s2350_s3 = inlined_call_operand.vmem [shape: f32[1,32], index: 3, kind: input, shape index: {}]   ;;  %s2351_s4 = inlined_call_operand.vmem [shape: bf16[2,8,2,8,16], index: 4, kind: output, shape index: {}]  }
   0x1 LB: > { %s1362_s16 = sadd.s32 4294967295, %s1615_s15   ;;  %p1366_p0 = scmp.ge.s32.totalorder %s1615_s15, 1  ;;  %s1615_s15 = sphi %s1650_s15, %s14_s15  }
   0x2   : > { %p162_p1 = scmp.lt.s32.totalorder %s1615_s15, 3 }
   0x4   : > { %p163_p2 = pnand %p1366_p0, %p162_p1 }
   0x5   : > { %p188_p3 = scmp.lt.s32.totalorder (!%p163_p2), %s1362_s16, 1  ;;  %vm315_vm0 = vcmask (!%p163_p2), 1040384   ;;  %vm316_vm1 = vsmask.f32 (!%p163_p2), 256  ;;  %vm327_vm2 = vcmask (!%p163_p2), 1044480   ;;  %v1617_v0 = vmov (!%p163_p2), 0  }
   0x6   : > { %166 = sbr.rel (%p163_p2) target bundleno = 705 (0x2c1), region = 36  ;;  %v246_v1 = vrot.slane (!%p163_p2), %v1617_v0, 7  ;;  %vm1658_vm3 = vmand (!%p163_p2), %vm315_vm0, %vm316_vm1  ;;  %vm328_vm4 = vsmask.f32 (!%p163_p2), 4352  ;;  %v1591_v5 = vld [vmem:[%s2348_s1 + $0x40] sm:$0xff] (!%p163_p2)   ;;  %vm494_vm6 = vcmask (!%p163_p2), 1042432  }
   0x7   : > { %vm1664_vm5 = vmand (!%p163_p2), %vm327_vm2, %vm328_vm4  ;;  %v1592_v7 = vld [vmem:[%s2348_s1] sm:$0xff] (!%p163_p2)   ;;  %1461 = vmatprep.subr.bf16.mxu0 (!%p163_p2), %v1591_v5  ;;  %1519 = vmatprep.subr.bf16.mxu1 (!%p163_p2), %v1591_v5  ;;  %vm495_vm7 = vcmask (!%p163_p2), 1046532   ;;  %v1593_v40 = vld [vmem:[%s2348_s1 + $0x48] sm:$0xff] (!%p163_p2)   ;;  %s1618_s7 = smov (!%p163_p2), 64   ;;  %s1619_s14 = smov (!%p163_p2), 96   ;;  %vm645_vm12 = vcmask (!%p163_p2), 261120  }
   0x8   : > { %v318_v4 = vsel (!%p163_p2), %vm1658_vm3, 0, %v246_v1  ;;  %1462 = vmatpush3.bf16.msra.mxu0 (!%p163_p2), %v1592_v7  ;;  %1527 = vmatpush3.bf16.msra.mxu1 (!%p163_p2), %v1592_v7  ;;  %v1594_v41 = vld [vmem:[%s2348_s1 + $0x8] sm:$0xff] (!%p163_p2)   ;;  %v1595_v46 = vld [vmem:[%s2348_s1 + $0x50] sm:$0xff] (!%p163_p2)   ;;  %v1597_v0 = vld [vmem:[%s2348_s1 + $0x58] sm:$0xff] (!%p163_p2)   ;;  %vm379_vm9 = vsmask.f32 (!%p163_p2), 3328 }
   0x9   : > { %v1681_v6 = vsel (!%p163_p2), %vm1664_vm5, %v318_v4, 0  ;;  %1463 = vmatprep.subr.bf16.mxu0 (!%p163_p2), %v1593_v40  ;;  %1520 = vmatprep.subr.bf16.mxu1 (!%p163_p2), %v1593_v40  ;;  %v1596_v55 = vld [vmem:[%s2348_s1 + $0x10] sm:$0xff] (!%p163_p2)   ;;  %vm1774_vm8 = vmor (!%p163_p2), %vm494_vm6, %vm495_vm7  ;;  %vm380_vm10 = vsmask.f32 (!%p163_p2), 7440  ;;  %s1620_s23 = smov (!%p163_p2), 32   ;;  %v1606_v3 = vld [vmem:[%s2348_s1 + $0x38] sm:$0xff] (!%p163_p2)  }
   0xa   : > { %v1689_v9 = vcombine.low (!%p163_p2), %v1681_v6, %v1681_v6  ;;  %v1722_v51 = vcombine.high (!%p163_p2), %v1681_v6, %v1681_v6  ;;  %vm1918_vm11 = vmor (!%p163_p2), %vm379_vm9, %vm380_vm10  ;;  %vm658_vm13 = vcmask (!%p163_p2), 523264   ;;  %vm667_vm14 = vcmask (!%p163_p2), 785408   ;;  %s1623_s18 = smov (!%p163_p2), 104   ;;  %s1624_s19 = smov (!%p163_p2), 8  }
   0xb   : > { %vm1224_vm15 = vcmask (!%p163_p2), 64512   ;;  %vm1281_vm0 = vcmask (!%p163_p2), 125952  }
   0xc   : > { %1464 = vmatpush3.bf16.msra.mxu0 (!%p163_p2), %v1594_v41  ;;  %1528 = vmatpush3.bf16.msra.mxu1 (!%p163_p2), %v1594_v41 }
   0xd   : > { %s2361_s16 = smov (!%p188_p3, %s1362_s16), 1  ;;  %1465 = vmatprep.subr.bf16.mxu0 %v1595_v46  ;;  %1521 = vmatprep.subr.bf16.mxu1 %v1595_v46 }
   0xe   : > { %s1459_s17 = sshll.u32 %s2361_s16, 5  ;;  %s1460_s20 = sshll.u32 %s2361_s16, 6 }
   0xf   : > { %s1677_s22 = scalar_lea.vmem %s2347_s0, %s1459_s17  ;;  %s1622_s17 = smov 112  }
  0x10   : > { %v206_v8 = vld [vmem:[%s1677_s22 + $0x1c] sm:$0xf]  ;;  %v200_v10 = vld [vmem:[%s1677_s22 + $0x4] sm:$0xf]  ;;  %v201_v11 = vld [vmem:[%s1677_s22 + $0x8] sm:$0xf]  ;;  %1466 = vmatpush3.bf16.msra.mxu0 %v1596_v55  ;;  %1529 = vmatpush3.bf16.msra.mxu1 %v1596_v55 }
  0x11   : > { %v300_v12 = vshrl.u32 %v206_v8, 16  ;;  %v303_v13 = vshll.u32 %v206_v8, 16  ;;  %v258_v14 = vshrl.u32 %v200_v10, 16  ;;  %v261_v15 = vshll.u32 %v200_v10, 16  ;;  %v202_v16 = vld [vmem:[%s1677_s22 + $0xc] sm:$0xf]  ;;  %1467 = vmatprep.subr.bf16.mxu0 %v1597_v0  ;;  %1522 = vmatprep.subr.bf16.mxu1 %v1597_v0 }
  0x12   : > { %v265_v17 = vshrl.u32 %v201_v11, 16  ;;  %v268_v18 = vshll.u32 %v201_v11, 16  ;;  %v203_v19 = vld [vmem:[%s1677_s22 + $0x10] sm:$0xf]  ;;  %v272_v20 = vshrl.u32 %v202_v16, 16  ;;  %v275_v21 = vshll.u32 %v202_v16, 16 }
  0x13   : > { %v302_v22 = vrot.slane %v300_v12, 7  ;;  %v260_v23 = vrot.slane %v258_v14, 7  ;;  %v279_v24 = vshrl.u32 %v203_v19, 16  ;;  %v282_v25 = vshll.u32 %v203_v19, 16  ;;  %v199_v26 = vld [vmem:[%s1677_s22] sm:$0xf] }
  0x14   : > { %v267_v27 = vrot.slane %v265_v17, 7  ;;  %v274_v28 = vrot.slane %v272_v20, 7  ;;  %v251_v29 = vshrl.u32 %v199_v26, 16  ;;  %v254_v30 = vshll.u32 %v199_v26, 16  ;;  %v205_v31 = vld [vmem:[%s1677_s22 + $0x18] sm:$0xf] }
  0x15   : > { %v305_v32 = vor.u32 %v303_v13, %v302_v22  ;;  %v263_v33 = vor.u32 %v261_v15, %v260_v23  ;;  %v281_v34 = vrot.slane %v279_v24, 7  ;;  %v293_v35 = vshrl.u32 %v205_v31, 16  ;;  %v1598_v14 = vld [vmem:[%s2348_s1 + $0x18] sm:$0xff]   ;;  %v1599_v15 = vld [vmem:[%s2348_s1 + $0x60] sm:$0xff]  }
  0x16   : > { %v270_v36 = vor.u32 %v268_v18, %v267_v27  ;;  %v277_v37 = vor.u32 %v275_v21, %v274_v28  ;;  %v253_v38 = vrot.slane %v251_v29, 7  ;;  %v296_v39 = vshll.u32 %v205_v31, 16  ;;  %1468 = vmatpush3.bf16.msra.mxu0 %v1598_v14  ;;  %1530 = vmatpush3.bf16.msra.mxu1 %v1598_v14  ;;  %v1603_v14 = vld [vmem:[%s2348_s1 + $0x70] sm:$0xff]  }
  0x17   : > { %v326_v42 = vsel %vm1658_vm3, 0, %v305_v32  ;;  %v320_v43 = vsel %vm1658_vm3, 0, %v263_v33  ;;  %v284_v44 = vor.u32 %v282_v25, %v281_v34  ;;  %v295_v45 = vrot.slane %v293_v35, 7  ;;  %v204_v32 = vld [vmem:[%s1677_s22 + $0x14] sm:$0xf]  ;;  %1469 = vmatprep.subr.bf16.mxu0 %v1599_v15  ;;  %1523 = vmatprep.subr.bf16.mxu1 %v1599_v15 }
  0x18   : > { %v1712_v47 = vsel %vm1664_vm5, %v326_v42, 0  ;;  %v321_v48 = vsel %vm1658_vm3, 0, %v270_v36  ;;  %v332_v49 = vsel %vm1664_vm5, %v320_v43, 0  ;;  %v322_v50 = vsel %vm1658_vm3, 0, %v277_v37  ;;  %v1600_v37 = vld [vmem:[%s2348_s1 + $0x20] sm:$0xff]   ;;  %v1601_v42 = vld [vmem:[%s2348_s1 + $0x68] sm:$0xff]  }
  0x19   : > { %v1422_v52 = vcombine.low %v1712_v47, %v1681_v6  ;;  %v1728_v53 = vcombine.low %v1712_v47, %v1712_v47  ;;  %v1732_v54 = vsel %vm1664_vm5, %v321_v48, 0  ;;  %v1739_v56 = vcombine.high %v1712_v47, %v1712_v47 }
  0x1a   : > { %v1743_v57 = vcombine.low %v1732_v54, %v1732_v54  ;;  %v1746_v58 = vcombine.low %v332_v49, %v1732_v54  ;;  %v1748_v59 = vcombine.low %v332_v49, %v332_v49  ;;  %v1751_v60 = vcombine.high %v332_v49, %v332_v49  ;;  %1470 = vmatpush3.bf16.msra.mxu0 %v1600_v37 }
  0x1b   : > { %633 = vrot.lane.b32.xlu0 %v1422_v52, %s1618_s7  ;;  %v323_v61 = vsel %vm1658_vm3, 0, %v284_v44  ;;  %v1757_v62 = vsel %vm1664_vm5, %v322_v50, 0  ;;  %v256_v63 = vor.u32 %v254_v30, %v253_v38  ;;  %v1764_v1 = vcombine.high %v1732_v54, %v1732_v54  ;;  %1531 = vmatpush3.bf16.msra.mxu1 %v1600_v37  ;;  %v1605_v37 = vld [vmem:[%s2348_s1 + $0x78] sm:$0xff]  }
  0x1c   : > { %627 = vrot.lane.b32.xlu1 %v1746_v58, %s1618_s7  ;;  %v1770_v4 = vsel %vm1664_vm5, %v323_v61, 0  ;;  %v298_v5 = vor.u32 %v296_v39, %v295_v45  ;;  %v1389_v8 = vrot.slane %v1748_v59, 9  ;;  %v1785_v11 = vcombine.low %v1757_v62, %v1757_v62  ;;  %1471 = vmatprep.subr.bf16.mxu0 %v1601_v42 }
  0x1d   : > { %v1781_v10 = vcombine.low %v1757_v62, %v1770_v4  ;;  %v319_v12 = vsel %vm1658_vm3, 0, %v256_v63  ;;  %v507_v13 = vrot.slane %v1751_v60, 5  ;;  %v1397_v18 = vrot.slane %v1728_v53, 9  ;;  %1524 = vmatprep.subr.bf16.mxu1 %v1601_v42 }
  0x1e   : > { %v1798_v16 = vsel %vm1664_vm5, %v319_v12, 0  ;;  %v325_v17 = vsel %vm1658_vm3, 0, %v298_v5  ;;  %v550_v19 = vrot.slane %v1739_v56, 5  ;;  %v1387_v31 = vrot.slane %v1689_v9, 9 }
  0x1f   : > { %629 = vrot.lane.b32.xlu0 %v1781_v10, %s1618_s7  ;;  %v1410_v20 = vcombine.low %v1798_v16, %v332_v49  ;;  %v1809_v21 = vcombine.low %v1798_v16, %v1798_v16  ;;  %v1813_v22 = vsel %vm1664_vm5, %v325_v17, 0  ;;  %v1817_v23 = vcombine.high %v1798_v16, %v1798_v16 }
  0x20   : > { %v1821_v24 = vcombine.low %v1813_v22, %v1813_v22  ;;  %v1413_v25 = vcombine.low %v1813_v22, %v1712_v47  ;;  %v1827_v26 = vsel %vm1774_vm8, %v1389_v8, %v507_v13  ;;  %v1831_v27 = vcombine.high %v1813_v22, %v1813_v22  ;;  %v1602_v47 = vld [vmem:[%s2348_s1 + $0x28] sm:$0xff]  }
  0x21   : > { %600 = vrot.lane.b32.xlu1 %v1410_v20, %s1619_s14  ;;  %v1388_v28 = vrot.slane %v1809_v21, 9  ;;  %v503_v29 = vrot.slane %v1817_v23, 5  ;;  %v1838_v30 = vsel %vm1774_vm8, %v1397_v18, %v550_v19  ;;  %v499_v35 = vrot.slane %v1722_v51, 5  ;;  %1472 = vmatpush3.bf16.msra.mxu0 %v1602_v47 }
  0x22   : > { %v1394_v33 = vrot.slane %v1821_v24, 9  ;;  %v527_v34 = vrot.slane %v1831_v27, 5  ;;  %v1847_v36 = vcombine.high %v1757_v62, %v1757_v62  ;;  %v1390_v39 = vrot.slane %v1743_v57, 9  ;;  %1532 = vmatpush3.bf16.msra.mxu1 %v1602_v47  ;;  %1473 = vmatprep.subr.bf16.mxu0 %v1603_v14 }
  0x23   : > { %v504_v38 = vsel %vm1774_vm8, %v1388_v28, %v503_v29  ;;  %v511_v40 = vrot.slane %v1764_v1, 5  ;;  %v1391_v41 = vrot.slane %v1785_v11, 9  ;;  %v1867_v45 = vsel %vm1774_vm8, %v1387_v31, %v499_v35  ;;  %1525 = vmatprep.subr.bf16.mxu1 %v1603_v14 }
  0x24   : > { %v1418_v43 = vcombine.low %v504_v38, %v1827_v26  ;;  %v1863_v44 = vsel %vm1774_vm8, %v1394_v33, %v527_v34  ;;  %v515_v46 = vrot.slane %v1847_v36, 5  ;;  %v1875_v48 = vcombine.low %v1770_v4, %v1770_v4 }
  0x25   : > { %606 = vrot.lane.b32.xlu1 %v1413_v25, %s1619_s14  ;;  %v1406_v49 = vcombine.low %v1867_v45, %v504_v38  ;;  %v1424_v50 = vcombine.low %v1838_v30, %v1867_v45  ;;  %v1883_v52 = vsel %vm1774_vm8, %v1390_v39, %v511_v40  ;;  %v1421_v55 = vcombine.low %v1863_v44, %v1838_v30 }
  0x26   : > { %618 = vrot.lane.b32.xlu0 %v1418_v43, %s1620_s23  ;;  %v1890_v61 = vsel %vm1774_vm8, %v1391_v41, %v515_v46  ;;  %v286_v63 = vshrl.u32 %v204_v32, 16  ;;  %v289_v0 = vshll.u32 %v204_v32, 16  ;;  %v383_v8 = vshrl.u32 %v1689_v9, 16 }
  0x27   : > { %v1419_v5 = vcombine.low %v1883_v52, %v1890_v61  ;;  %v386_v12 = vshll.u32 %v1689_v9, 16  ;;  %v392_v13 = vshll.u32 %v1722_v51, 16  ;;  %v397_v17 = vshrl.u32 %v1809_v21, 16 }
  0x28   : > { %v288_v15 = vrot.slane %v286_v63, 7  ;;  %v400_v18 = vshll.u32 %v1809_v21, 16  ;;  %v406_v19 = vshll.u32 %v1817_v23, 16  ;;  %v385_v20 = vrot.slane %v383_v8, 4  ;;  %v1604_v21 = vld [vmem:[%s2348_s1 + $0x30] sm:$0xff]  }
  0x29   : > { %588 = vrot.lane.b32.xlu1 %v1406_v49, %s1618_s7  ;;  %v388_v9 = vrot.slane %v386_v12, 5  ;;  %v394_v25 = vrot.slane %v392_v13, 5  ;;  %v411_v51 = vshrl.u32 %v1748_v59, 16  ;;  %v399_v29 = vrot.slane %v397_v17, 4  ;;  %1474 = vmatpush3.bf16.msra.mxu0 %v1604_v21 }
  0x2a   : > { %624 = vrot.lane.b32.xlu0 %v1421_v55, %s1620_s23  ;;  %v291_v28 = vor.u32 %v289_v0, %v288_v15  ;;  %v402_v31 = vrot.slane %v400_v18, 5  ;;  %v408_v32 = vrot.slane %v406_v19, 5  ;;  %v414_v34 = vshll.u32 %v1748_v59, 16  ;;  %1533 = vmatpush3.bf16.msra.mxu1 %v1604_v21 }
  0x2b   : > { %v389_v23 = vor.u32 %v388_v9, %v385_v20  ;;  %v413_v33 = vrot.slane %v411_v51, 4  ;;  %v420_v35 = vshll.u32 %v1751_v60, 16  ;;  %v425_v59 = vshrl.u32 %v1743_v57, 16  ;;  %1475 = vmatprep.subr.bf16.mxu0 %v1605_v37  ;;  %1526 = vmatprep.subr.bf16.mxu1 %v1605_v37 }
  0x2c   : > { %v324_v38 = vsel %vm1658_vm3, 0, %v291_v28  ;;  %v403_v40 = vor.u32 %v402_v31, %v399_v29  ;;  %v428_v60 = vshll.u32 %v1743_v57, 16  ;;  %v416_v43 = vrot.slane %v414_v34, 5 }
  0x2d   : > { %v1926_v41 = vsel %vm1664_vm5, %v324_v38, 0  ;;  %v390_v42 = vrot.slane %v389_v23, 4  ;;  %v422_v2 = vrot.slane %v420_v35, 5  ;;  %v427_v55 = vrot.slane %v425_v59, 4  ;;  %1476 = vmatpush3.bf16.msra.mxu0 %v1606_v3 }
  0x2e   : > { %620 = vrot.lane.b32.xlu0 %v1419_v5, %s1620_s23  ;;  %v1383_v46 = vcombine.low %v1926_v41, %v1926_v41  ;;  %v1384_v47 = vcombine.high %v1926_v41, %v1926_v41  ;;  %v404_v49 = vrot.slane %v403_v40, 4  ;;  %v417_v63 = vor.u32 %v416_v43, %v413_v33  ;;  %1534 = vmatpush3.bf16.msra.mxu1 %v1606_v3 }
  0x2f   : > { %v1938_v57 = vsel %vm1918_vm11, %v390_v42, %v394_v25  ;;  %v430_v0 = vrot.slane %v428_v60, 5  ;;  %v434_v5 = vshll.u32 %v1764_v1, 16  ;;  %v481_v31 = vshrl.u32 %v1821_v24, 16 }
  0x30   : > { %v1393_v8 = vrot.slane %v1383_v46, 9  ;;  %v523_v12 = vrot.slane %v1384_v47, 5  ;;  %v1943_v13 = vsel %vm1918_vm11, %v404_v49, %v408_v32  ;;  %v467_v14 = vshrl.u32 %v1383_v46, 16 }
  0x31   : > { %v1402_v15 = vcombine.low %v1938_v57, %v1943_v13  ;;  %v418_v17 = vrot.slane %v417_v63, 4  ;;  %v431_v18 = vor.u32 %v430_v0, %v427_v55  ;;  %v436_v19 = vrot.slane %v434_v5, 5 }
  0x32   : > { %v1949_v20 = vsel %vm1774_vm8, %v1393_v8, %v523_v12  ;;  %v469_v1 = vrot.slane %v467_v14, 4  ;;  %v470_v9 = vshll.u32 %v1383_v46, 16  ;;  %v476_v25 = vshll.u32 %v1384_v47, 16 }
  0x33   : > { %v1953_v51 = vcombine.low %v1949_v20, %v1863_v44  ;;  %568 = vrot.lane.b32.xlu0 %v1402_v15, %s1620_s23  ;;  %v1958_v28 = vsel %vm1918_vm11, %v418_v17, %v422_v2  ;;  %v432_v29 = vrot.slane %v431_v18, 4  ;;  %v1963_v32 = vcombine.low %v1827_v26, %v1883_v52 }
  0x34   : > { %v1414_v21 = vcombine.low %v1943_v13, %v1958_v28  ;;  %v472_v23 = vrot.slane %v470_v9, 5  ;;  %v484_v44 = vshll.u32 %v1821_v24, 16  ;;  %v483_v34 = vrot.slane %v481_v31, 4  ;;  %v1980_v24 = vld [vmem:[%s2348_s1 + $0x80] sm:$0xff]  }
  0x35   : > { %594 = vrot.lane.b32.xlu1 %v1953_v51, %s1618_s7  ;;  %v1972_v33 = vsel %vm1918_vm11, %v432_v29, %v436_v19  ;;  %v490_v35 = vshll.u32 %v1831_v27, 16  ;;  %v535_v37 = vshrl.u32 %v1728_v53, 16  ;;  %v478_v52 = vrot.slane %v476_v25, 5  ;;  %1507 = vmatprep.subr.bf16.mxu1 %v1980_v24 }
  0x36   : > { %v473_v26 = vor.u32 %v472_v23, %v469_v1  ;;  %v486_v38 = vrot.slane %v484_v44, 5  ;;  %v538_v40 = vshll.u32 %v1728_v53, 16  ;;  %v1403_v59 = vcombine.low %v1958_v28, %v1972_v33 }
  0x37   : > { %v492_v60 = vrot.slane %v490_v35, 5  ;;  %v537_v42 = vrot.slane %v535_v37, 4  ;;  %v544_v43 = vshll.u32 %v1739_v56, 16  ;;  %v1382_v47 = vcombine.high %v1770_v4, %v1770_v4 }
  0x38   : > { %v474_v27 = vrot.slane %v473_v26, 4  ;;  %v487_v2 = vor.u32 %v486_v38, %v483_v34  ;;  %v540_v46 = vrot.slane %v538_v40, 5  ;;  %v439_v49 = vshrl.u32 %v1785_v11, 16 }
  0x39   : > { %590 = vrot.lane.b32.xlu1 %v1963_v32, %s1618_s7  ;;  %v546_v53 = vrot.slane %v544_v43, 5  ;;  %v442_v55 = vshll.u32 %v1785_v11, 16  ;;  %v448_v3 = vshll.u32 %v1847_v36, 16  ;;  %v453_v5 = vshrl.u32 %v1875_v48, 16 }
  0x3a   : > { %v1995_v56 = vsel %vm1918_vm11, %v474_v27, %v478_v52  ;;  %v488_v63 = vrot.slane %v487_v2, 4  ;;  %v541_v0 = vor.u32 %v540_v46, %v537_v42  ;;  %v441_v8 = vrot.slane %v439_v49, 4 }
  0x3b   : > { %v444_v12 = vrot.slane %v442_v55, 5  ;;  %v456_v14 = vshll.u32 %v1875_v48, 16  ;;  %v455_v11 = vrot.slane %v453_v5, 4  ;;  %v462_v18 = vshll.u32 %v1382_v47, 16 }
  0x3c   : > { %v2001_v15 = vsel %vm1918_vm11, %v488_v63, %v492_v60  ;;  %v542_v17 = vrot.slane %v541_v0, 4  ;;  %v450_v1 = vrot.slane %v448_v3, 5  ;;  %v1392_v35 = vrot.slane %v1875_v48, 9 }
  0x3d   : > { %636 = vrot.lane.b32.xlu1 %v1403_v59, %s1619_s14  ;;  %v1405_v36 = vcombine.low %v1995_v56, %v2001_v15  ;;  %v445_v19 = vor.u32 %v444_v12, %v441_v8  ;;  %v458_v9 = vrot.slane %v456_v14, 5  ;;  %v464_v29 = vrot.slane %v462_v18, 5  ;;  %v1608_v18 = vld [vmem:[%s2348_s1 + $0x88] sm:$0xff]  }
  0x3e   : > { %v547_v25 = vsel %vm1918_vm11, %v542_v17, %v546_v53  ;;  %v519_v37 = vrot.slane %v1382_v47, 5  ;;  %v1398_v26 = vcombine.low %v1681_v6, %v1798_v16  ;;  %v1411_v52 = vcombine.low %v1732_v54, %v1757_v62 }
  0x3f   : > { %574 = vrot.lane.b32.xlu0 %v1405_v36, %s1620_s23  ;;  %v1417_v31 = vcombine.low %v2001_v15, %v547_v25  ;;  %v1423_v23 = vcombine.low %v547_v25, %v1938_v57  ;;  %v446_v44 = vrot.slane %v445_v19, 4  ;;  %v459_v34 = vor.u32 %v458_v9, %v455_v11 }
  0x40   : > { %v520_v54 = vsel %vm1774_vm8, %v1392_v35, %v519_v37  ;;  %v1401_v39 = vcombine.low %v1926_v41, %v1813_v22  ;;  %v1412_v7 = vcombine.low %v1770_v4, %v1926_v41 }
  0x41   : > { %570 = vrot.lane.b32.xlu1 %v1403_v59, %s1620_s23  ;;  %v451_v38 = vsel %vm1918_vm11, %v446_v44, %v450_v1  ;;  %v460_v40 = vrot.slane %v459_v34, 4  ;;  %v1420_v62 = vcombine.low %v520_v54, %v1949_v20  ;;  %v1408_v16 = vcombine.low %v1890_v61, %v520_v54 }
  0x42   : > { %v1415_v60 = vcombine.low %v1972_v33, %v451_v38 }
  0x43   : > { %642 = vrot.lane.b32.xlu0 %v1423_v23, %s1619_s14  ;;  %v2023_v48 = vsel %vm1918_vm11, %v460_v40, %v464_v29 }
  0x44   : > { %v1404_v57 = vcombine.low %v451_v38, %v2023_v48  ;;  %v1416_v6 = vcombine.low %v2023_v48, %v1995_v56 }
  0x45   : > { %602 = vrot.lane.b32.xlu1 %v1411_v52, %s1619_s14 }
  0x47   : > { %638 = vrot.lane.b32.xlu0 %v1404_v57, %s1619_s14 }
  0x49   : > { %572 = vrot.lane.b32.xlu1 %v1404_v57, %s1620_s23 }
  0x4b   : > { %622 = vrot.lane.b32.xlu0 %v1420_v62, %s1620_s23  ;;  %s2264_s23 = scalar_lea.vmem %s2351_s4, %s1460_s20 }
  0x4d   : > { %592 = vrot.lane.b32.xlu1 %v1408_v16, %s1618_s7 }
  0x4f   : > { %631 = vrot.lane.b32.xlu0 %v1401_v39, %s1618_s7 }
  0x51   : > { %604 = vrot.lane.b32.xlu1 %v1412_v7, %s1619_s14 }
  0x53   : > { %640 = vrot.lane.b32.xlu0 %v1405_v36, %s1619_s14  ;;  %s1621_s14 = smov 120  }
  0x8d   : > { %v634_v20 = vpop.permute.xlu0 %633 }
  0x8e   : > { %v628_v33 = vpop.permute.xlu1 %627 }
  0x91   : > { %v630_v59 = vpop.permute.xlu0 %629 }
  0x93   : > { %v601_v61 = vpop.permute.xlu1 %600 }
  0x97   : > { %v607_v43 = vpop.permute.xlu1 %606 }
  0x98   : > { %v619_v42 = vpop.permute.xlu0 %618 }
  0x99   : > { %v682_v41 = vsel %vm645_vm12, %v1414_v21, %v619_v42 }
  0x9a   : > { %v693_v3 = vsel %vm658_vm13, %v682_v41, %v628_v33 }
  0x9b   : > { %v589_v2 = vpop.permute.xlu1 %588 }
  0x9c   : > { %v625_v27 = vpop.permute.xlu0 %624 }
  0x9d   : > { %v691_v8 = vsel %vm645_vm12, %v1417_v31, %v625_v27 }
  0x9e   : > { %v699_v15 = vsel %vm658_vm13, %v691_v8, %v634_v20 }
  0xa0   : > { %v621_v22 = vpop.permute.xlu0 %620 }
  0xa1   : > { %v685_v17 = vsel %vm645_vm12, %v1415_v60, %v621_v22 }
  0xa2   : > { %v695_v9 = vsel %vm658_vm13, %v685_v17, %v630_v59 }
  0xa5   : > { %v569_v47 = vpop.permute.xlu0 %568 }
  0xa6   : > { %v648_v4 = vsel %vm645_vm12, %v1398_v26, %v569_v47 }
  0xa7   : > { %v595_v46 = vpop.permute.xlu1 %594  ;;  %v660_v49 = vsel %vm658_vm13, %v648_v4, %v589_v2 }
  0xa8   : > { %v669_v5 = vsel %vm667_vm14, %v660_v49, %v601_v61 }
  0xab   : > { %v591_v53 = vpop.permute.xlu1 %590 }
  0xaf   : > { %v637_v55 = vpop.permute.xlu1 %636 }
  0xb0   : > { %v701_v63 = vsel %vm667_vm14, %v693_v3, %v637_v55 }
  0xb1   : > { %v575_v0 = vpop.permute.xlu0 %574  ;;  %864 = vmatprep.mubr.bf16.mxu0 %v701_v63 }
  0xb2   : > { %v657_v12 = vsel %vm645_vm12, %v1401_v39, %v575_v0  ;;  %865 = vmatmul.mubr.bf16.vlgmr.msra.gmra.mrb[0].mxu0 %v669_v5 }
  0xb3   : > { %v571_v13 = vpop.permute.xlu1 %570  ;;  %v666_v21 = vsel %vm658_vm13, %v657_v12, %v595_v46  ;;  %v1448_v46 = vld [vmem:[%s2350_s3] ss:$0 sm:$0xff] }
  0xb4   : > { %v651_v28 = vsel %vm645_vm12, %v1746_v58, %v571_v13  ;;  %v678_v19 = vsel %vm667_vm14, %v666_v21, %v607_v43  ;;  %v1447_v43 = vld [vmem:[%s2349_s2] ss:$0 sm:$0xff] }
  0xb5   : > { %v643_v14 = vpop.permute.xlu0 %642  ;;  %v662_v36 = vsel %vm658_vm13, %v651_v28, %v591_v53 }
  0xb6   : > { %v710_v11 = vsel %vm667_vm14, %v699_v15, %v643_v14 }
  0xb7   : > { %888 = vmatprep.mubr.bf16.mxu1 %v710_v11  ;;  %v603_v1 = vpop.permute.xlu1 %602 }
  0xb8   : > { %889 = vmatmul.mubr.bf16.vlgmr.msra.gmra.mrb[0].mxu1 %v678_v19  ;;  %v672_v25 = vsel %vm667_vm14, %v662_v36, %v603_v1 }
  0xb9   : > { %1508 = vmatpush3.bf16.msra.mxu1 %v1980_v24  ;;  %v639_v58 = vpop.permute.xlu0 %638  ;;  %1511 = vmatprep.mubr.msk.bf16.mxu1 %vm645_vm12, %v1963_v32 }
  0xba   : > { %v704_v29 = vsel %vm667_vm14, %v695_v9, %v639_v58  ;;  %1509 = vmatprep.subr.bf16.mxu1 %v1608_v18 }
  0xbb   : > { %872 = vmatprep.mubr.bf16.mxu0 %v704_v29  ;;  %v573_v31 = vpop.permute.xlu1 %572 }
  0xbc   : > { %873 = vmatmul.mubr.bf16.gmra.mrb[4].mxu0 %v672_v25  ;;  %v654_v44 = vsel %vm645_vm12, %v1781_v10, %v573_v31 }
  0xbd   : > { %1510 = vmatpush3.bf16.msra.mxu1 %v1608_v18  ;;  %v623_v23 = vpop.permute.xlu0 %622 }
  0xbe   : > { %v688_v34 = vsel %vm645_vm12, %v1416_v6, %v623_v23 }
  0xbf   : > { %v593_v24 = vpop.permute.xlu1 %592 }
  0xc0   : > { %1512 = vmatmul.mubr.msk.bf16.vlgmr.msra.gmra.mrb[4].mxu1 %vm645_vm12, %v1408_v16  ;;  %v664_v35 = vsel %vm658_vm13, %v654_v44, %v593_v24 }
  0xc1   : > { %1515 = vmatprep.mubr.msk.bf16.mxu1 %vm645_vm12, %v1953_v51  ;;  %v632_v32 = vpop.permute.xlu0 %631 }
  0xc2   : > { %v697_v37 = vsel %vm658_vm13, %v688_v34, %v632_v32 }
  0xc3   : > { %v605_v26 = vpop.permute.xlu1 %604 }
  0xc4   : > { %v675_v10 = vsel %vm667_vm14, %v664_v35, %v605_v26 }
  0xc5   : > { %v641_v52 = vpop.permute.xlu0 %640 }
  0xc6   : > { %v707_v38 = vsel %vm667_vm14, %v697_v37, %v641_v52 }
  0xc7   : > { %880 = vmatprep.mubr.bf16.mxu0 %v707_v38 }
  0xc8   : > { %1516 = vmatmul.mubr.msk.bf16.gmra.mrb[8].mxu1 %vm645_vm12, %v1424_v50  ;;  %881 = vmatmul.mubr.bf16.gmra.mrb[8].mxu0 %v675_v10 }
 0x185   : > { %v1477_v56 = vpop.f32.mrb[0].mxu0 }
 0x186   : > { %v1478_v51 = vpop.f32.mrb[1].mxu0 }
 0x187   : > { %v1479_v40 = vadd.f32 %v1478_v51, %v1477_v56  ;;  %v1480_v60 = vpop.f32.mrb[2].mxu0 }
 0x188   : > { %v1481_v48 = vpop.f32.mrb[3].mxu0 }
 0x189   : > { %v1482_v57 = vadd.f32 %v1481_v48, %v1480_v60 }
 0x18b   : > { %v1495_v6 = vpop.f32.mrb[0].mxu1 }
 0x18c   : > { %v1496_v54 = vpop.f32.mrb[1].mxu1 }
 0x18d   : > { %v1497_v62 = vadd.f32 %v1496_v54, %v1495_v6  ;;  %v1498_v16 = vpop.f32.mrb[2].mxu1 }
 0x18e   : > { %v1499_v39 = vpop.f32.mrb[3].mxu1 }
 0x18f   : > { %v1500_v7 = vadd.f32 %v1499_v39, %v1498_v16  ;;  %v1483_v20 = vpop.f32.mrb[4].mxu0 }
 0x190   : > { %v1484_v33 = vpop.f32.mrb[5].mxu0 }
 0x191   : > { %v1485_v59 = vadd.f32 %v1484_v33, %v1483_v20  ;;  %v1486_v61 = vpop.f32.mrb[6].mxu0 }
 0x192   : > { %v1487_v30 = vpop.f32.mrb[7].mxu0 }
 0x193   : > { %v1488_v45 = vadd.f32 %v1487_v30, %v1486_v61  ;;  %v1513_v50 = vpop.f32.mrb[4].mxu1 }
 0x194   : > { %v940_v42 = vadd.f32 %v1513_v50, %v1485_v59  ;;  %v931_v27 = vpop.f32.mrb[5].mxu1 }
 0x195   : > { %v932_v2 = vadd.f32 %v1479_v40, %v931_v27  ;;  %v1514_v22 = vpop.f32.mrb[6].mxu1 }
 0x196   : > { %v943_v47 = vadd.f32 %v1514_v22, %v1488_v45  ;;  %v934_v53 = vpop.f32.mrb[7].mxu1  ;;  %v971_v36 = vmul.f32 %v1447_v43, %v940_v42 }
 0x197   : > { %v969_v4 = vmul.f32 %v1447_v43, %v932_v2  ;;  %v935_v41 = vadd.f32 %v1482_v57, %v934_v53 }
 0x198   : > { %v972_v58 = vmul.f32 %v1447_v43, %v943_v47  ;;  %v986_v25 = vadd.f32 %v1448_v46, %v971_v36 }
 0x199   : > { %v984_v49 = vadd.f32 %v1448_v46, %v969_v4  ;;  %v970_v55 = vmul.f32 %v1447_v43, %v935_v41 }
 0x19a   : > { %v987_v29 = vadd.f32 %v1448_v46, %v972_v58  ;;  %v2105_v31 = vmax.f32 %v986_v25, 0.0 }
 0x19b   : > { %v2095_v3 = vmax.f32 %v984_v49, 0.0  ;;  %v985_v63 = vadd.f32 %v1448_v46, %v970_v55  ;;  %v1517_v0 = vpop.f32.mrb[8].mxu1  ;;  %v1489_v5 = vpop.f32.mrb[8].mxu0 }
 0x19c   : > { %v956_v8 = vadd.f32 %v1517_v0, %v1497_v62  ;;  %v947_v12 = vpop.f32.mrb[9].mxu1  ;;  %v1490_v13 = vpop.f32.mrb[9].mxu0  ;;  %v2108_v23 = vmax.f32 %v987_v29, 0.0 }
 0x19d   : > { %v993_v28 = vmax.f32 %v985_v63, 0.0  ;;  %v1518_v21 = vpop.f32.mrb[10].mxu1  ;;  %1008 = vrot.lane.b32.xlu0 %v2095_v3, %s1621_s14  ;;  %v1491_v14 = vadd.f32 %v1490_v13, %v1489_v5  ;;  %v1492_v15 = vpop.f32.mrb[10].mxu0 }
 0x19e   : > { %v959_v17 = vadd.f32 %v1518_v21, %v1500_v7  ;;  %v1493_v11 = vpop.f32.mrb[11].mxu0  ;;  %v950_v18 = vpop.f32.mrb[11].mxu1  ;;  %v975_v44 = vmul.f32 %v1447_v43, %v956_v8 }
 0x19f   : > { %1010 = vrot.lane.b32.xlu1 %v993_v28, %s1621_s14  ;;  %v948_v19 = vadd.f32 %v1491_v14, %v947_v12  ;;  %v1494_v1 = vadd.f32 %v1493_v11, %v1492_v15 }
 0x1a0   : > { %v976_v24 = vmul.f32 %v1447_v43, %v959_v17  ;;  %v990_v34 = vadd.f32 %v1448_v46, %v975_v44 }
 0x1a1   : > { %1040 = vrot.lane.b32.xlu0 %v2095_v3, %s1622_s17  ;;  %v951_v9 = vadd.f32 %v1494_v1, %v950_v18  ;;  %v973_v37 = vmul.f32 %v1447_v43, %v948_v19 }
 0x1a2   : > { %v991_v32 = vadd.f32 %v1448_v46, %v976_v24  ;;  %v2120_v35 = vmax.f32 %v990_v34, 0.0 }
 0x1a3   : > { %1042 = vrot.lane.b32.xlu1 %v993_v28, %s1622_s17  ;;  %v974_v52 = vmul.f32 %v1447_v43, %v951_v9  ;;  %v988_v10 = vadd.f32 %v1448_v46, %v973_v37 }
 0x1a4   : > { %v2124_v26 = vmax.f32 %v991_v32, 0.0 }
 0x1a5   : > { %1072 = vrot.lane.b32.xlu0 %v2095_v3, %s1623_s18  ;;  %v989_v38 = vadd.f32 %v1448_v46, %v974_v52  ;;  %v2132_v56 = vmax.f32 %v988_v10, 0.0 }
 0x1a7   : > { %1074 = vrot.lane.b32.xlu1 %v993_v28, %s1623_s18  ;;  %v2136_v51 = vmax.f32 %v989_v38, 0.0 }
 0x1a9   : > { %1012 = vrot.lane.b32.xlu0 %v2105_v31, %s1621_s14 }
 0x1ab   : > { %1014 = vrot.lane.b32.xlu1 %v2108_v23, %s1621_s14 }
 0x1ad   : > { %1044 = vrot.lane.b32.xlu0 %v2105_v31, %s1622_s17 }
 0x1af   : > { %1046 = vrot.lane.b32.xlu1 %v2108_v23, %s1622_s17 }
 0x1b1   : > { %1076 = vrot.lane.b32.xlu0 %v2105_v31, %s1623_s18 }
 0x1b3   : > { %1078 = vrot.lane.b32.xlu1 %v2108_v23, %s1623_s18 }
 0x1b5   : > { %1020 = vrot.lane.b32.xlu0 %v2120_v35, %s1621_s14 }
 0x1b7   : > { %1022 = vrot.lane.b32.xlu1 %v2124_v26, %s1621_s14 }
 0x1b9   : > { %1052 = vrot.lane.b32.xlu0 %v2120_v35, %s1622_s17 }
 0x1bb   : > { %1054 = vrot.lane.b32.xlu1 %v2124_v26, %s1622_s17 }
 0x1bd   : > { %1016 = vrot.lane.b32.xlu0 %v2132_v56, %s1621_s14 }
 0x1bf   : > { %1018 = vrot.lane.b32.xlu1 %v2136_v51, %s1621_s14 }
 0x1c1   : > { %1048 = vrot.lane.b32.xlu0 %v2132_v56, %s1622_s17 }
 0x1c3   : > { %1050 = vrot.lane.b32.xlu1 %v2136_v51, %s1622_s17 }
 0x1c5   : > { %1080 = vrot.lane.b32.xlu0 %v2132_v56, %s1623_s18 }
 0x1c7   : > { %1082 = vrot.lane.b32.xlu1 %v2136_v51, %s1623_s18 }
 0x1c9   : > { %1084 = vrot.lane.b32.xlu0 %v2120_v35, %s1623_s18 }
 0x1cb   : > { %1086 = vrot.lane.b32.xlu1 %v2124_v26, %s1623_s18 }
 0x20f   : > { %v1009_v40 = vpop.permute.xlu0 %1008 }
 0x210   : > { %v1032_v48 = vadd.f32 %v1009_v40, %v2095_v3  ;;  %v1136_v57 = vsub.f32 %v2095_v3, %v1009_v40 }
 0x211   : > { %v1011_v60 = vpop.permute.xlu1 %1010 }
 0x212   : > { %v1033_v54 = vadd.f32 %v1011_v60, %v993_v28  ;;  %v1137_v62 = vsub.f32 %v993_v28, %v1011_v60 }
 0x213   : > { %v1041_v6 = vpop.permute.xlu0 %1040 }
 0x214   : > { %v1064_v16 = vadd.f32 %v1041_v6, %v1032_v48  ;;  %v2156_v39 = vadd.f32 %v1136_v57, %v1041_v6  ;;  %v1112_v20 = vsub.f32 %v1032_v48, %v1041_v6  ;;  %v1168_v43 = vsub.f32 %v1136_v57, %v1041_v6 }
 0x215   : > { %v1043_v7 = vpop.permute.xlu1 %1042 }
 0x216   : > { %v1065_v33 = vadd.f32 %v1043_v7, %v1033_v54  ;;  %v2158_v59 = vadd.f32 %v1137_v62, %v1043_v7  ;;  %v1113_v30 = vsub.f32 %v1033_v54, %v1043_v7  ;;  %v1169_v27 = vsub.f32 %v1137_v62, %v1043_v7 }
 0x217   : > { %v2160_v61 = vpop.permute.xlu0 %1072 }
 0x218   : > { %v2163_v45 = vadd.f32 %v2160_v61, %v1064_v16  ;;  %v1120_v50 = vsub.f32 %v1112_v20, %v2160_v61  ;;  %v1152_v42 = vsub.f32 %v2156_v39, %v2160_v61  ;;  %v1176_v47 = vadd.f32 %v1168_v43, %v2160_v61 }
 0x219   : > { %v2168_v2 = vpop.permute.xlu1 %1074 }
 0x21a   : > { %v2171_v22 = vadd.f32 %v2168_v2, %v1065_v33  ;;  %v1121_v46 = vsub.f32 %v1113_v30, %v2168_v2  ;;  %v1153_v53 = vsub.f32 %v2158_v59, %v2168_v2  ;;  %v1177_v4 = vadd.f32 %v1169_v27, %v2168_v2 }
 0x21b   : > { %v1013_v41 = vpop.permute.xlu0 %1012  ;;  %v1128_v49 = vmul.f32 0.5, %v1120_v50  ;;  %v1184_v13 = vmul.f32 0.5, %v1176_v47 }
 0x21c   : > { %v1129_v55 = vmul.f32 0.5, %v1121_v46  ;;  %v1034_v63 = vadd.f32 %v1013_v41, %v2105_v31  ;;  %v1138_v0 = vsub.f32 %v2105_v31, %v1013_v41  ;;  %v1185_v8 = vmul.f32 0.5, %v1177_v4 }
 0x21d   : > { %v1015_v3 = vpop.permute.xlu1 %1014 }
 0x21e   : > { %v1551_v5 = vpack.i.bf16 %v1129_v55, %v1128_v49  ;;  %v1035_v28 = vadd.f32 %v1015_v3, %v2108_v23  ;;  %v1139_v21 = vsub.f32 %v2108_v23, %v1015_v3  ;;  %v1556_v19 = vpack.i.bf16 %v1185_v8, %v1184_v13 }
 0x21f   : > { %v1045_v12 = vpop.permute.xlu0 %1044 }
 0x220   : > { %v1066_v14 = vadd.f32 %v1045_v12, %v1034_v63  ;;  %v2182_v15 = vadd.f32 %v1138_v0, %v1045_v12  ;;  %1552 = vrot.lane.b32.xlu0 %v1551_v5, %s1624_s19  ;;  %v1114_v11 = vsub.f32 %v1034_v63, %v1045_v12  ;;  %v1170_v31 = vsub.f32 %v1138_v0, %v1045_v12 }
 0x221   : > { %v1047_v17 = vpop.permute.xlu1 %1046 }
 0x222   : > { %v1067_v18 = vadd.f32 %v1047_v17, %v1035_v28  ;;  %v2185_v36 = vadd.f32 %v1139_v21, %v1047_v17  ;;  %v1115_v58 = vsub.f32 %v1035_v28, %v1047_v17  ;;  %v1171_v23 = vsub.f32 %v1139_v21, %v1047_v17 }
 0x223   : > { %v2187_v1 = vpop.permute.xlu0 %1076 }
 0x224   : > { %v2190_v9 = vadd.f32 %v2187_v1, %v1066_v14  ;;  %v1122_v25 = vsub.f32 %v1114_v11, %v2187_v1  ;;  %v1154_v29 = vsub.f32 %v2182_v15, %v2187_v1  ;;  %1557 = vrot.lane.b32.xlu0 %v1556_v19, %s1624_s19  ;;  %v1178_v32 = vadd.f32 %v1170_v31, %v2187_v1 }
 0x225   : > { %v2196_v44 = vpop.permute.xlu1 %1078 }
 0x226   : > { %v2199_v24 = vadd.f32 %v2196_v44, %v1067_v18  ;;  %v1123_v34 = vsub.f32 %v1115_v58, %v2196_v44  ;;  %v1155_v37 = vsub.f32 %v2185_v36, %v2196_v44  ;;  %v1179_v52 = vadd.f32 %v1171_v23, %v2196_v44 }
 0x227   : > { %v1021_v10 = vpop.permute.xlu0 %1020  ;;  %v1130_v38 = vmul.f32 0.5, %v1122_v25  ;;  %v1186_v16 = vmul.f32 0.5, %v1178_v32  ;;  %v1106_v59 = vmul.f32 0.5, %v2190_v9 }
 0x228   : > { %v1131_v40 = vmul.f32 0.5, %v1123_v34  ;;  %v1038_v48 = vadd.f32 %v1021_v10, %v2120_v35  ;;  %v1142_v57 = vsub.f32 %v2120_v35, %v1021_v10  ;;  %v1187_v54 = vmul.f32 0.5, %v1179_v52 }
 0x229   : > { %v1023_v60 = vpop.permute.xlu1 %1022  ;;  %v1107_v61 = vmul.f32 0.5, %v2199_v24  ;;  %v1163_v9 = vmul.f32 0.5, %v1155_v37 }
 0x22a   : > { %v1561_v6 = vpack.i.bf16 %v1131_v40, %v1130_v38  ;;  %v1039_v7 = vadd.f32 %v1023_v60, %v2124_v26  ;;  %v1143_v20 = vsub.f32 %v2124_v26, %v1023_v60  ;;  %v1566_v35 = vpack.i.bf16 %v1187_v54, %v1186_v16 }
 0x22b   : > { %v1053_v62 = vpop.permute.xlu0 %1052 }
 0x22c   : > { %v2210_v33 = vadd.f32 %v1053_v62, %v1038_v48  ;;  %v2212_v30 = vadd.f32 %v1142_v57, %v1053_v62  ;;  %1562 = vrot.lane.b32.xlu1 %v1561_v6, %s1624_s19  ;;  %v1118_v11 = vsub.f32 %v1038_v48, %v1053_v62  ;;  %v1174_v48 = vsub.f32 %v1142_v57, %v1053_v62 }
 0x22d   : > { %v1055_v50 = vpop.permute.xlu1 %1054 }
 0x22e   : > { %v2215_v43 = vadd.f32 %v1055_v50, %v1039_v7  ;;  %v2217_v27 = vadd.f32 %v1143_v20, %v1055_v50  ;;  %v1119_v34 = vsub.f32 %v1039_v7, %v1055_v50  ;;  %v1175_v52 = vsub.f32 %v1143_v20, %v1055_v50 }
 0x22f   : > { %v1017_v46 = vpop.permute.xlu0 %1016 }
 0x230   : > { %1567 = vrot.lane.b32.xlu1 %v1566_v35, %s1624_s19  ;;  %v1036_v4 = vadd.f32 %v1017_v46, %v2132_v56  ;;  %v1140_v26 = vsub.f32 %v2132_v56, %v1017_v46 }
 0x231   : > { %v1019_v47 = vpop.permute.xlu1 %1018 }
 0x232   : > { %v1037_v49 = vadd.f32 %v1019_v47, %v2136_v51  ;;  %v1141_v55 = vsub.f32 %v2136_v51, %v1019_v47 }
 0x233   : > { %v1049_v41 = vpop.permute.xlu0 %1048 }
 0x234   : > { %v1068_v3 = vadd.f32 %v1049_v41, %v1036_v4  ;;  %v2224_v63 = vadd.f32 %v1140_v26, %v1049_v41  ;;  %v1116_v12 = vsub.f32 %v1036_v4, %v1049_v41  ;;  %v1172_v58 = vsub.f32 %v1140_v26, %v1049_v41 }
 0x235   : > { %v1051_v0 = vpop.permute.xlu1 %1050 }
 0x236   : > { %v1069_v5 = vadd.f32 %v1051_v0, %v1037_v49  ;;  %v2226_v8 = vadd.f32 %v1141_v55, %v1051_v0  ;;  %v1117_v28 = vsub.f32 %v1037_v49, %v1051_v0  ;;  %v1173_v14 = vsub.f32 %v1141_v55, %v1051_v0 }
 0x237   : > { %v2228_v13 = vpop.permute.xlu0 %1080  ;;  %v1104_v49 = vmul.f32 0.5, %v2163_v45  ;;  %v1105_v55 = vmul.f32 0.5, %v2171_v22  ;;  %v1160_v22 = vmul.f32 0.5, %v1152_v42 }
 0x238   : > { %v2231_v21 = vadd.f32 %v2228_v13, %v1068_v3  ;;  %v1156_v56 = vsub.f32 %v2224_v63, %v2228_v13  ;;  %v1124_v51 = vsub.f32 %v1116_v12, %v2228_v13  ;;  %v1180_v10 = vadd.f32 %v1172_v58, %v2228_v13 }
 0x239   : > { %v2236_v17 = vpop.permute.xlu1 %1082 }
 0x23a   : > { %v2239_v18 = vadd.f32 %v2236_v17, %v1069_v5  ;;  %v1125_v19 = vsub.f32 %v1117_v28, %v2236_v17  ;;  %v1157_v25 = vsub.f32 %v2226_v8, %v2236_v17  ;;  %v1181_v31 = vadd.f32 %v1173_v14, %v2236_v17 }
 0x23b   : > { %v2245_v23 = vpop.permute.xlu0 %1084  ;;  %v1132_v40 = vmul.f32 0.5, %v1124_v51  ;;  %v1188_v20 = vmul.f32 0.5, %v1180_v10  ;;  %v1161_v51 = vmul.f32 0.5, %v1153_v53 }
 0x23c   : > { %v1126_v32 = vsub.f32 %v1118_v11, %v2245_v23  ;;  %v1133_v60 = vmul.f32 0.5, %v1125_v19  ;;  %v1189_v35 = vmul.f32 0.5, %v1181_v31  ;;  %v1182_v46 = vadd.f32 %v1174_v48, %v2245_v23 }
 0x23d   : > { %v2249_v38 = vpop.permute.xlu1 %1086  ;;  %v1162_v48 = vmul.f32 0.5, %v1154_v29  ;;  %v1102_v15 = vadd.f32 %v2245_v23, %v2210_v33  ;;  %v1108_v29 = vmul.f32 0.5, %v2231_v21  ;;  %v1109_v44 = vmul.f32 0.5, %v2239_v18 }
 0x23e   : > { %v1127_v6 = vsub.f32 %v1119_v34, %v2249_v38  ;;  %v1183_v54 = vadd.f32 %v1175_v52, %v2249_v38  ;;  %v1576_v16 = vpack.i.bf16 %v1133_v60, %v1132_v40  ;;  %v1134_v7 = vmul.f32 0.5, %v1126_v32 }
 0x23f   : > { %v1581_v26 = vpack.i.bf16 %v1189_v35, %v1188_v20  ;;  %v1190_v57 = vmul.f32 0.5, %v1182_v46  ;;  %v1103_v36 = vadd.f32 %v2249_v38, %v2215_v43  ;;  %v1159_v20 = vsub.f32 %v2217_v27, %v2249_v38 }
 0x240   : > { %v1135_v47 = vmul.f32 0.5, %v1127_v6  ;;  %1577 = vrot.lane.b32.xlu0 %v1576_v16, %s1624_s19  ;;  %v1191_v4 = vmul.f32 0.5, %v1183_v54  ;;  %v1165_v27 = vmul.f32 0.5, %v1157_v25 }
 0x242   : > { %v1571_v50 = vpack.i.bf16 %v1135_v47, %v1134_v7  ;;  %v1586_v62 = vpack.i.bf16 %v1191_v4, %v1190_v57  ;;  %v1158_v47 = vsub.f32 %v2212_v30, %v2245_v23  ;;  %v1111_v4 = vmul.f32 0.5, %v1103_v36 }
 0x243   : > { %v1164_v30 = vmul.f32 0.5, %v1156_v56 }
 0x244   : > { %1572 = vrot.lane.b32.xlu1 %v1571_v50, %s1624_s19  ;;  %1582 = vrot.lane.b32.xlu0 %v1581_v26, %s1624_s19  ;;  %v1110_v50 = vmul.f32 0.5, %v1102_v15 }
 0x248   : > { %1587 = vrot.lane.b32.xlu1 %v1586_v62, %s1624_s19 }
 0x292   : > { %v1553_v41 = vpop.permute.xlu0 %1552 }
 0x293   : > { %v1555_v3 = vunpack.i.h.bf16 %v1553_v41  ;;  %v1554_v0 = vunpack.i.l.bf16 %v1553_v41 }
 0x295   : > { %v1226_v5 = vsel %vm1224_vm15, %v1105_v55, %v1555_v3  ;;  %v1225_v12 = vsel %vm1224_vm15, %v1104_v49, %v1554_v0  ;;  %v1166_v49 = vmul.f32 0.5, %v1158_v47  ;;  %v1167_v55 = vmul.f32 0.5, %v1159_v20 }
 0x296   : > { %v1274_v28 = vpack.c.bf16 %v1226_v5, %v1226_v5  ;;  %v1273_v45 = vpack.c.bf16 %v1225_v12, %v1225_v12  ;;  %v1558_v14 = vpop.permute.xlu0 %1557 }
 0x297   : > { %v1560_v11 = vunpack.i.h.bf16 %v1558_v14  ;;  %v1559_v19 = vunpack.i.l.bf16 %v1558_v14 }
 0x298   : > { %1283 = vst.msk [vmem:[%s2264_s23 + $0x8] sm:$0xf] %vm1281_vm0, %v1274_v28  ;;  %1282 = vst.msk [vmem:[%s2264_s23] sm:$0xf] %vm1281_vm0, %v1273_v45 }
 0x299   : > { %v1266_v58 = vsel %vm1224_vm15, %v1161_v51, %v1560_v11  ;;  %v1265_v31 = vsel %vm1224_vm15, %v1160_v22, %v1559_v19 }
 0x29a   : > { %v1291_v34 = vpack.c.bf16 %v1266_v58, %v1266_v58  ;;  %v1290_v32 = vpack.c.bf16 %v1265_v31, %v1265_v31 }
 0x29c   : > { %1450 = vst.msk [vmem:[%s2264_s23 + $0xc] sm:$0xf] %vm1281_vm0, %v1291_v34  ;;  %1449 = vst.msk [vmem:[%s2264_s23 + $0x4] sm:$0xf] %vm1281_vm0, %v1290_v32 }
 0x29e   : > { %v1563_v39 = vpop.permute.xlu1 %1562 }
 0x29f   : > { %v1565_v42 = vunpack.i.h.bf16 %v1563_v39  ;;  %v1564_v2 = vunpack.i.l.bf16 %v1563_v39 }
 0x2a1   : > { %v1228_v53 = vsel %vm1224_vm15, %v1107_v61, %v1565_v42  ;;  %v1227_v52 = vsel %vm1224_vm15, %v1106_v59, %v1564_v2 }
 0x2a2   : > { %v1276_v10 = vpack.c.bf16 %v1228_v53, %v1228_v53  ;;  %v1275_v40 = vpack.c.bf16 %v1227_v52, %v1227_v52  ;;  %v1568_v60 = vpop.permute.xlu1 %1567 }
 0x2a3   : > { %v1570_v24 = vunpack.i.h.bf16 %v1568_v60  ;;  %v1569_v6 = vunpack.i.l.bf16 %v1568_v60 }
 0x2a4   : > { %1285 = vst.msk [vmem:[%s2264_s23 + $0x18] sm:$0xf] %vm1281_vm0, %v1276_v10  ;;  %1284 = vst.msk [vmem:[%s2264_s23 + $0x10] sm:$0xf] %vm1281_vm0, %v1275_v40 }
 0x2a5   : > { %v1268_v54 = vsel %vm1224_vm15, %v1163_v9, %v1570_v24  ;;  %v1267_v16 = vsel %vm1224_vm15, %v1162_v48, %v1569_v6 }
 0x2a6   : > { %v1293_v35 = vpack.c.bf16 %v1268_v54, %v1268_v54  ;;  %v1292_v46 = vpack.c.bf16 %v1267_v16, %v1267_v16 }
 0x2a8   : > { %1452 = vst.msk [vmem:[%s2264_s23 + $0x1c] sm:$0xf] %vm1281_vm0, %v1293_v35  ;;  %1451 = vst.msk [vmem:[%s2264_s23 + $0x14] sm:$0xf] %vm1281_vm0, %v1292_v46 }
 0x2b2   : > { %v1578_v1 = vpop.permute.xlu0 %1577 }
 0x2b3   : > { %v1580_v37 = vunpack.i.h.bf16 %v1578_v1  ;;  %v1579_v7 = vunpack.i.l.bf16 %v1578_v1 }
 0x2b5   : > { %v1230_v33 = vsel %vm1224_vm15, %v1109_v44, %v1580_v37  ;;  %v1229_v43 = vsel %vm1224_vm15, %v1108_v29, %v1579_v7 }
 0x2b6   : > { %v1573_v26 = vpop.permute.xlu1 %1572  ;;  %v1278_v21 = vpack.c.bf16 %v1230_v33, %v1230_v33  ;;  %v1277_v57 = vpack.c.bf16 %v1229_v43, %v1229_v43  ;;  %v1583_v41 = vpop.permute.xlu0 %1582 }
 0x2b7   : > { %v1575_v18 = vunpack.i.h.bf16 %v1573_v26  ;;  %v1574_v62 = vunpack.i.l.bf16 %v1573_v26  ;;  %v1585_v23 = vunpack.i.h.bf16 %v1583_v41  ;;  %v1584_v38 = vunpack.i.l.bf16 %v1583_v41 }
 0x2b8   : > { %1287 = vst.msk [vmem:[%s2264_s23 + $0x28] sm:$0xf] %vm1281_vm0, %v1278_v21  ;;  %1286 = vst.msk [vmem:[%s2264_s23 + $0x20] sm:$0xf] %vm1281_vm0, %v1277_v57 }
 0x2b9   : > { %v1232_v3 = vsel %vm1224_vm15, %v1111_v4, %v1575_v18  ;;  %v1231_v63 = vsel %vm1224_vm15, %v1110_v50, %v1574_v62  ;;  %v1270_v8 = vsel %vm1224_vm15, %v1165_v27, %v1585_v23  ;;  %v1269_v17 = vsel %vm1224_vm15, %v1164_v30, %v1584_v38 }
 0x2ba   : > { %v1280_v13 = vpack.c.bf16 %v1232_v3, %v1232_v3  ;;  %v1279_v56 = vpack.c.bf16 %v1231_v63, %v1231_v63  ;;  %v1588_v25 = vpop.permute.xlu1 %1587  ;;  %v1295_v0 = vpack.c.bf16 %v1270_v8, %v1270_v8  ;;  %v1294_v5 = vpack.c.bf16 %v1269_v17, %v1269_v17 }
 0x2bb   : > { %v1590_v12 = vunpack.i.h.bf16 %v1588_v25  ;;  %v1589_v28 = vunpack.i.l.bf16 %v1588_v25 }
 0x2bc   : > { %1289 = vst.msk [vmem:[%s2264_s23 + $0x38] sm:$0xf] %vm1281_vm0, %v1280_v13  ;;  %1288 = vst.msk [vmem:[%s2264_s23 + $0x30] sm:$0xf] %vm1281_vm0, %v1279_v56 }
 0x2bd   : > { %1454 = vst.msk [vmem:[%s2264_s23 + $0x2c] sm:$0xf] %vm1281_vm0, %v1295_v0  ;;  %1453 = vst.msk [vmem:[%s2264_s23 + $0x24] sm:$0xf] %vm1281_vm0, %v1294_v5  ;;  %v1272_v45 = vsel %vm1224_vm15, %v1167_v55, %v1590_v12  ;;  %v1271_v14 = vsel %vm1224_vm15, %v1166_v49, %v1589_v28 }
 0x2be   : > { %v1297_v22 = vpack.c.bf16 %v1272_v45, %v1272_v45  ;;  %v1296_v51 = vpack.c.bf16 %v1271_v14, %v1271_v14 }
 0x2c0   : > { %1456 = vst.msk [vmem:[%s2264_s23 + $0x3c] sm:$0xf] %vm1281_vm0, %v1297_v22  ;;  %1455 = vst.msk [vmem:[%s2264_s23 + $0x34] sm:$0xf] %vm1281_vm0, %v1296_v51 }
 0x2c1 PF: > { %s14_s15 = sadd.s32 1, %s1615_s15  }
 0x2c2   : > { %p11_p4 = scmp.ge.s32.totalorder %s14_s15, 4  }
 0x2c4   :  { %13 = sbr.rel (!%p11_p4) target bundleno = 1 (0x1), region = 67 }

// kernel: wave_attention.9
= control target key start
LH: loop header
LB: loop body
LE: loop exit
PB: predicated region body
PF: predicated region fallthrough
CT: control target
= control target key end

     0   :  { %s1353_s18 = smov 0   ;;  %s1557_s0 = inlined_call_operand.vmem [shape: bf16[512,32], index: 0, kind: input, shape index: {}]   ;;  %s1558_s1 = inlined_call_operand.vmem [shape: bf16[512,8], index: 1, kind: input, shape index: {}]   ;;  %s1559_s2 = inlined_call_operand.vmem [shape: bf16[32,32], index: 2, kind: input, shape index: {}]   ;;  %s1560_s3 = inlined_call_operand.vmem [shape: bf16[8,32], index: 3, kind: input, shape index: {}]   ;;  %s1561_s4 = inlined_call_operand.vmem [shape: f32[1,32], index: 4, kind: input, shape index: {}]   ;;  %s1562_s5 = inlined_call_operand.vmem [shape: f32[512,32], index: 5, kind: output, shape index: {}]  }
   0x1 LB: > { %s1055_s19 = sadd.s32 4294967295, %s1321_s18   ;;  %p1059_p0 = scmp.ge.s32.totalorder %s1321_s18, 1  ;;  %s1321_s18 = sphi %s1353_s18, %s15_s18  }
   0x2   : > { %p199_p1 = scmp.lt.s32.totalorder %s1321_s18, 3 }
   0x4   : > { %p200_p2 = pnand %p1059_p0, %p199_p1 }
   0x5   : > { %v1281_v0 = vld [vmem:[%s1559_s2] sm:$0xff] (!%p200_p2)   ;;  %vm449_vm0 = vcmask (!%p200_p2), 1043456   ;;  %v1282_v2 = vld [vmem:[%s1559_s2 + $0x8] sm:$0xff] (!%p200_p2)   ;;  %s1060_s26 = sshll.u32 (!%p200_p2), %s1055_s19, 5  ;;  %vm400_vm1 = vcmask (!%p200_p2), 64512   ;;  %vm706_vm2 = vcmask (!%p200_p2), 261120  }
   0x6   : > { %203 = sbr.rel (%p200_p2) target bundleno = 295 (0x127), region = 40  ;;  %v319_v1 = vld [vmem:[%s1560_s3] sm:$0xf] (!%p200_p2)  ;;  %1204 = vmatprep.subr.bf16.mxu0 (!%p200_p2), %v1281_v0  ;;  %p233_p3 = scmp.lt.s32.totalorder (!%p200_p2), %s1060_s26, 63 }
   0x7   : > { %1272 = vmatprep.subr.msk.bf16.mxu1 (!%p200_p2), %vm449_vm0, %v319_v1  ;;  %v451_v3 = vsel (!%p200_p2), %vm449_vm0, %v319_v1, 0  ;;  %1205 = vmatpush3.bf16.msra.mxu0 (!%p200_p2), %v1281_v0  ;;  %v1451_v38 = vld [vmem:[%s1561_s4] ss:$0 sm:$0xff] (!%p200_p2) }
   0x8   : > { %1171 = vmatpush3.bf16.msra.mxu1 (!%p200_p2), %v451_v3  ;;  %1206 = vmatprep.subr.bf16.mxu0 (!%p200_p2), %v1282_v2 }
   0xb   : > { %1207 = vmatpush3.bf16.msra.mxu0 (!%p200_p2), %v1282_v2 }
   0xd   : > { %s1564_s26 = smov (!%p233_p3, %s1060_s26), 63 }
   0xe   : > { %s1061_s27 = sshll.u32 %s1564_s26, 2  ;;  %s1065_s9 = sshll.u32 %s1564_s26, 3 }
   0xf   : > { %s1376_s30 = scalar_lea.vmem %s1558_s1, %s1061_s27  ;;  %s1381_s8 = scalar_lea.vmem %s1557_s0, %s1061_s27 }
  0x10   : > { %v1283_v4 = vld [vmem:[%s1376_s30] sm:$0xff]   ;;  %v1285_v6 = vld [vmem:[%s1376_s30 + $0x8] sm:$0xff]   ;;  %v1287_v8 = vld [vmem:[%s1376_s30 + $0x10] sm:$0xff]   ;;  %s1456_s14 = scalar_lea.vmem %s1562_s5, %s1065_s9 }
  0x11   : > { %v1284_v5 = vld [vmem:[%s1381_s8] sm:$0xff]   ;;  %1172 = vmatprep.mubr.msk.bf16.mxu1 %vm400_vm1, %v1283_v4  ;;  %v1286_v7 = vld [vmem:[%s1381_s8 + $0x8] sm:$0xff]   ;;  %v1288_v9 = vld [vmem:[%s1381_s8 + $0x10] sm:$0xff]  }
  0x12   : > { %1208 = vmatprep.mubr.msk.bf16.mxu0 %vm706_vm2, %v1284_v5  ;;  %1173 = vmatmul.mubr.msk.bf16.vlgmr.msra.gmra.mrb[0].mxu1 %vm400_vm1, %v1285_v6  ;;  %v1289_v10 = vld [vmem:[%s1376_s30 + $0x18] sm:$0xff]   ;;  %v1291_v12 = vld [vmem:[%s1376_s30 + $0x20] sm:$0xff]   ;;  %v1293_v14 = vld [vmem:[%s1376_s30 + $0x28] sm:$0xff]  }
  0x13   : > { %1209 = vmatmul.mubr.msk.bf16.vlgmr.msra.gmra.mrb[0].mxu0 %vm706_vm2, %v1286_v7  ;;  %1176 = vmatprep.mubr.msk.bf16.mxu1 %vm400_vm1, %v1287_v8  ;;  %v1290_v11 = vld [vmem:[%s1381_s8 + $0x18] sm:$0xff]   ;;  %v1292_v13 = vld [vmem:[%s1381_s8 + $0x20] sm:$0xff]   ;;  %v1294_v15 = vld [vmem:[%s1381_s8 + $0x28] sm:$0xff]  }
  0x14   : > { %1212 = vmatprep.mubr.msk.bf16.mxu0 %vm706_vm2, %v1288_v9  ;;  %v1295_v16 = vld [vmem:[%s1376_s30 + $0x30] sm:$0xff]   ;;  %v1297_v18 = vld [vmem:[%s1376_s30 + $0x38] sm:$0xff]   ;;  %v1299_v20 = vld [vmem:[%s1376_s30 + $0x40] sm:$0xff]  }
  0x15   : > { %v1296_v17 = vld [vmem:[%s1381_s8 + $0x30] sm:$0xff]   ;;  %v1298_v19 = vld [vmem:[%s1381_s8 + $0x38] sm:$0xff]   ;;  %v1300_v21 = vld [vmem:[%s1381_s8 + $0x40] sm:$0xff]  }
  0x16   : > { %v1301_v22 = vld [vmem:[%s1376_s30 + $0x48] sm:$0xff]   ;;  %v1303_v24 = vld [vmem:[%s1376_s30 + $0x50] sm:$0xff]   ;;  %v1305_v26 = vld [vmem:[%s1376_s30 + $0x58] sm:$0xff]  }
  0x17   : > { %v1302_v23 = vld [vmem:[%s1381_s8 + $0x48] sm:$0xff]   ;;  %v1304_v25 = vld [vmem:[%s1381_s8 + $0x50] sm:$0xff]   ;;  %v1306_v27 = vld [vmem:[%s1381_s8 + $0x58] sm:$0xff]  }
  0x18   : > { %v1307_v28 = vld [vmem:[%s1376_s30 + $0x60] sm:$0xff]   ;;  %v1309_v30 = vld [vmem:[%s1376_s30 + $0x68] sm:$0xff]   ;;  %v1311_v32 = vld [vmem:[%s1376_s30 + $0x70] sm:$0xff]  }
  0x19   : > { %v1308_v29 = vld [vmem:[%s1381_s8 + $0x60] sm:$0xff]   ;;  %v1310_v31 = vld [vmem:[%s1381_s8 + $0x68] sm:$0xff]   ;;  %v1312_v33 = vld [vmem:[%s1381_s8 + $0x70] sm:$0xff]  }
  0x1a   : > { %1177 = vmatmul.mubr.msk.bf16.gmra.mrb[4].mxu1 %vm400_vm1, %v1289_v10  ;;  %v1313_v34 = vld [vmem:[%s1376_s30 + $0x78] sm:$0xff]  }
  0x1b   : > { %1213 = vmatmul.mubr.msk.bf16.gmra.mrb[4].mxu0 %vm706_vm2, %v1290_v11  ;;  %1180 = vmatprep.mubr.msk.bf16.mxu1 %vm400_vm1, %v1291_v12  ;;  %v1314_v35 = vld [vmem:[%s1381_s8 + $0x78] sm:$0xff]  }
  0x1c   : > { %1216 = vmatprep.mubr.msk.bf16.mxu0 %vm706_vm2, %v1292_v13 }
  0x22   : > { %1181 = vmatmul.mubr.msk.bf16.gmra.mrb[8].mxu1 %vm400_vm1, %v1293_v14 }
  0x23   : > { %1217 = vmatmul.mubr.msk.bf16.gmra.mrb[8].mxu0 %vm706_vm2, %v1294_v15  ;;  %1184 = vmatprep.mubr.msk.bf16.mxu1 %vm400_vm1, %v1295_v16 }
  0x24   : > { %1220 = vmatprep.mubr.msk.bf16.mxu0 %vm706_vm2, %v1296_v17 }
  0x2a   : > { %1185 = vmatmul.mubr.msk.bf16.gmra.mrb[12].mxu1 %vm400_vm1, %v1297_v18 }
  0x2b   : > { %1221 = vmatmul.mubr.msk.bf16.gmra.mrb[12].mxu0 %vm706_vm2, %v1298_v19  ;;  %1188 = vmatprep.mubr.msk.bf16.mxu1 %vm400_vm1, %v1299_v20 }
  0x2c   : > { %1224 = vmatprep.mubr.msk.bf16.mxu0 %vm706_vm2, %v1300_v21 }
  0x32   : > { %1189 = vmatmul.mubr.msk.bf16.gmra.mrb[16].mxu1 %vm400_vm1, %v1301_v22 }
  0x33   : > { %1225 = vmatmul.mubr.msk.bf16.gmra.mrb[16].mxu0 %vm706_vm2, %v1302_v23  ;;  %1192 = vmatprep.mubr.msk.bf16.mxu1 %vm400_vm1, %v1303_v24 }
  0x34   : > { %1228 = vmatprep.mubr.msk.bf16.mxu0 %vm706_vm2, %v1304_v25 }
  0x3a   : > { %1193 = vmatmul.mubr.msk.bf16.gmra.mrb[20].mxu1 %vm400_vm1, %v1305_v26 }
  0x3b   : > { %1229 = vmatmul.mubr.msk.bf16.gmra.mrb[20].mxu0 %vm706_vm2, %v1306_v27  ;;  %1196 = vmatprep.mubr.msk.bf16.mxu1 %vm400_vm1, %v1307_v28 }
  0x3c   : > { %1232 = vmatprep.mubr.msk.bf16.mxu0 %vm706_vm2, %v1308_v29 }
  0x42   : > { %1197 = vmatmul.mubr.msk.bf16.gmra.mrb[24].mxu1 %vm400_vm1, %v1309_v30 }
  0x43   : > { %1233 = vmatmul.mubr.msk.bf16.gmra.mrb[24].mxu0 %vm706_vm2, %v1310_v31  ;;  %1200 = vmatprep.mubr.msk.bf16.mxu1 %vm400_vm1, %v1311_v32 }
  0x44   : > { %1236 = vmatprep.mubr.msk.bf16.mxu0 %vm706_vm2, %v1312_v33 }
  0x4a   : > { %1201 = vmatmul.mubr.msk.bf16.gmra.mrb[28].mxu1 %vm400_vm1, %v1313_v34 }
  0x4b   : > { %1237 = vmatmul.mubr.msk.bf16.gmra.mrb[28].mxu0 %vm706_vm2, %v1314_v35 }
  0xe5   : > { %v1174_v36 = vpop.f32.mrb[0].mxu1 }
  0xe6   : > { %v1210_v37 = vpop.f32.mrb[0].mxu0  ;;  %v487_v39 = vpop.f32.mrb[1].mxu1 }
  0xe7   : > { %v798_v40 = vadd.f32 %v1210_v37, %v1174_v36  ;;  %v789_v41 = vpop.f32.mrb[1].mxu0  ;;  %v1175_v42 = vpop.f32.mrb[2].mxu1 }
  0xe8   : > { %v790_v43 = vadd.f32 %v789_v41, %v487_v39  ;;  %v1211_v44 = vpop.f32.mrb[2].mxu0  ;;  %v490_v45 = vpop.f32.mrb[3].mxu1 }
  0xe9   : > { %v925_v46 = vadd.f32 %v1451_v38, %v798_v40  ;;  %v801_v47 = vadd.f32 %v1211_v44, %v1175_v42  ;;  %v792_v48 = vpop.f32.mrb[3].mxu0 }
  0xea   : > { %v923_v49 = vadd.f32 %v1451_v38, %v790_v43  ;;  %v793_v50 = vadd.f32 %v792_v48, %v490_v45 }
  0xeb   : > { %957 = vst.msk [vmem:[%s1456_s14 + $0x10] sm:$0xff] %vm706_vm2, %v925_v46  ;;  %v926_v51 = vadd.f32 %v1451_v38, %v801_v47 }
  0xec   : > { %955 = vst.msk [vmem:[%s1456_s14] sm:$0xff] %vm706_vm2, %v923_v49  ;;  %v924_v52 = vadd.f32 %v1451_v38, %v793_v50 }
  0xed   : > { %958 = vst.msk [vmem:[%s1456_s14 + $0x18] sm:$0xff] %vm706_vm2, %v926_v51  ;;  %v1178_v53 = vpop.f32.mrb[4].mxu1 }
  0xee   : > { %956 = vst.msk [vmem:[%s1456_s14 + $0x8] sm:$0xff] %vm706_vm2, %v924_v52  ;;  %v1214_v54 = vpop.f32.mrb[4].mxu0  ;;  %v503_v55 = vpop.f32.mrb[5].mxu1 }
  0xef   : > { %v814_v56 = vadd.f32 %v1214_v54, %v1178_v53  ;;  %v805_v57 = vpop.f32.mrb[5].mxu0  ;;  %v1179_v58 = vpop.f32.mrb[6].mxu1 }
  0xf0   : > { %v806_v59 = vadd.f32 %v805_v57, %v503_v55  ;;  %v1215_v60 = vpop.f32.mrb[6].mxu0  ;;  %v506_v61 = vpop.f32.mrb[7].mxu1 }
  0xf1   : > { %v929_v62 = vadd.f32 %v1451_v38, %v814_v56  ;;  %v817_v63 = vadd.f32 %v1215_v60, %v1179_v58  ;;  %v808_v0 = vpop.f32.mrb[7].mxu0 }
  0xf2   : > { %v927_v1 = vadd.f32 %v1451_v38, %v806_v59  ;;  %v809_v2 = vadd.f32 %v808_v0, %v506_v61 }
  0xf3   : > { %961 = vst.msk [vmem:[%s1456_s14 + $0x30] sm:$0xff] %vm706_vm2, %v929_v62  ;;  %v930_v3 = vadd.f32 %v1451_v38, %v817_v63 }
  0xf4   : > { %959 = vst.msk [vmem:[%s1456_s14 + $0x20] sm:$0xff] %vm706_vm2, %v927_v1  ;;  %v928_v4 = vadd.f32 %v1451_v38, %v809_v2 }
  0xf5   : > { %962 = vst.msk [vmem:[%s1456_s14 + $0x38] sm:$0xff] %vm706_vm2, %v930_v3  ;;  %v1182_v5 = vpop.f32.mrb[8].mxu1 }
  0xf6   : > { %960 = vst.msk [vmem:[%s1456_s14 + $0x28] sm:$0xff] %vm706_vm2, %v928_v4  ;;  %v1218_v6 = vpop.f32.mrb[8].mxu0  ;;  %v519_v7 = vpop.f32.mrb[9].mxu1 }
  0xf7   : > { %v830_v8 = vadd.f32 %v1218_v6, %v1182_v5  ;;  %v821_v9 = vpop.f32.mrb[9].mxu0  ;;  %v1183_v10 = vpop.f32.mrb[10].mxu1 }
  0xf8   : > { %v822_v11 = vadd.f32 %v821_v9, %v519_v7  ;;  %v1219_v12 = vpop.f32.mrb[10].mxu0  ;;  %v522_v13 = vpop.f32.mrb[11].mxu1 }
  0xf9   : > { %v933_v14 = vadd.f32 %v1451_v38, %v830_v8  ;;  %v833_v15 = vadd.f32 %v1219_v12, %v1183_v10  ;;  %v824_v16 = vpop.f32.mrb[11].mxu0 }
  0xfa   : > { %v931_v17 = vadd.f32 %v1451_v38, %v822_v11  ;;  %v825_v18 = vadd.f32 %v824_v16, %v522_v13 }
  0xfb   : > { %965 = vst.msk [vmem:[%s1456_s14 + $0x50] sm:$0xff] %vm706_vm2, %v933_v14  ;;  %v934_v19 = vadd.f32 %v1451_v38, %v833_v15 }
  0xfc   : > { %963 = vst.msk [vmem:[%s1456_s14 + $0x40] sm:$0xff] %vm706_vm2, %v931_v17  ;;  %v932_v20 = vadd.f32 %v1451_v38, %v825_v18 }
  0xfd   : > { %966 = vst.msk [vmem:[%s1456_s14 + $0x58] sm:$0xff] %vm706_vm2, %v934_v19  ;;  %v1186_v21 = vpop.f32.mrb[12].mxu1 }
  0xfe   : > { %964 = vst.msk [vmem:[%s1456_s14 + $0x48] sm:$0xff] %vm706_vm2, %v932_v20  ;;  %v1222_v22 = vpop.f32.mrb[12].mxu0  ;;  %v535_v23 = vpop.f32.mrb[13].mxu1 }
  0xff   : > { %v846_v24 = vadd.f32 %v1222_v22, %v1186_v21  ;;  %v837_v25 = vpop.f32.mrb[13].mxu0  ;;  %v1187_v26 = vpop.f32.mrb[14].mxu1 }
 0x100   : > { %v838_v27 = vadd.f32 %v837_v25, %v535_v23  ;;  %v1223_v28 = vpop.f32.mrb[14].mxu0  ;;  %v538_v29 = vpop.f32.mrb[15].mxu1 }
 0x101   : > { %v937_v30 = vadd.f32 %v1451_v38, %v846_v24  ;;  %v849_v31 = vadd.f32 %v1223_v28, %v1187_v26  ;;  %v840_v32 = vpop.f32.mrb[15].mxu0 }
 0x102   : > { %v935_v33 = vadd.f32 %v1451_v38, %v838_v27  ;;  %v841_v34 = vadd.f32 %v840_v32, %v538_v29 }
 0x103   : > { %969 = vst.msk [vmem:[%s1456_s14 + $0x70] sm:$0xff] %vm706_vm2, %v937_v30  ;;  %v938_v35 = vadd.f32 %v1451_v38, %v849_v31 }
 0x104   : > { %967 = vst.msk [vmem:[%s1456_s14 + $0x60] sm:$0xff] %vm706_vm2, %v935_v33  ;;  %v936_v36 = vadd.f32 %v1451_v38, %v841_v34 }
 0x105   : > { %970 = vst.msk [vmem:[%s1456_s14 + $0x78] sm:$0xff] %vm706_vm2, %v938_v35  ;;  %v1190_v37 = vpop.f32.mrb[16].mxu1 }
 0x106   : > { %968 = vst.msk [vmem:[%s1456_s14 + $0x68] sm:$0xff] %vm706_vm2, %v936_v36  ;;  %v1226_v39 = vpop.f32.mrb[16].mxu0  ;;  %v551_v40 = vpop.f32.mrb[17].mxu1 }
 0x107   : > { %v862_v41 = vadd.f32 %v1226_v39, %v1190_v37  ;;  %v853_v42 = vpop.f32.mrb[17].mxu0  ;;  %v1191_v43 = vpop.f32.mrb[18].mxu1 }
 0x108   : > { %v854_v44 = vadd.f32 %v853_v42, %v551_v40  ;;  %v1227_v45 = vpop.f32.mrb[18].mxu0  ;;  %v554_v46 = vpop.f32.mrb[19].mxu1 }
 0x109   : > { %v941_v47 = vadd.f32 %v1451_v38, %v862_v41  ;;  %v865_v48 = vadd.f32 %v1227_v45, %v1191_v43  ;;  %v856_v49 = vpop.f32.mrb[19].mxu0 }
 0x10a   : > { %v939_v50 = vadd.f32 %v1451_v38, %v854_v44  ;;  %v857_v51 = vadd.f32 %v856_v49, %v554_v46 }
 0x10b   : > { %973 = vst.msk [vmem:[%s1456_s14 + $0x90] sm:$0xff] %vm706_vm2, %v941_v47  ;;  %v942_v52 = vadd.f32 %v1451_v38, %v865_v48 }
 0x10c   : > { %971 = vst.msk [vmem:[%s1456_s14 + $0x80] sm:$0xff] %vm706_vm2, %v939_v50  ;;  %v940_v53 = vadd.f32 %v1451_v38, %v857_v51 }
 0x10d   : > { %974 = vst.msk [vmem:[%s1456_s14 + $0x98] sm:$0xff] %vm706_vm2, %v942_v52  ;;  %v1194_v54 = vpop.f32.mrb[20].mxu1 }
 0x10e   : > { %972 = vst.msk [vmem:[%s1456_s14 + $0x88] sm:$0xff] %vm706_vm2, %v940_v53  ;;  %v1230_v55 = vpop.f32.mrb[20].mxu0  ;;  %v567_v56 = vpop.f32.mrb[21].mxu1 }
 0x10f   : > { %v878_v57 = vadd.f32 %v1230_v55, %v1194_v54  ;;  %v869_v58 = vpop.f32.mrb[21].mxu0  ;;  %v1195_v59 = vpop.f32.mrb[22].mxu1 }
 0x110   : > { %v870_v60 = vadd.f32 %v869_v58, %v567_v56  ;;  %v1231_v61 = vpop.f32.mrb[22].mxu0  ;;  %v570_v62 = vpop.f32.mrb[23].mxu1 }
 0x111   : > { %v945_v63 = vadd.f32 %v1451_v38, %v878_v57  ;;  %v881_v0 = vadd.f32 %v1231_v61, %v1195_v59  ;;  %v872_v1 = vpop.f32.mrb[23].mxu0 }
 0x112   : > { %v943_v2 = vadd.f32 %v1451_v38, %v870_v60  ;;  %v873_v3 = vadd.f32 %v872_v1, %v570_v62 }
 0x113   : > { %977 = vst.msk [vmem:[%s1456_s14 + $0xb0] sm:$0xff] %vm706_vm2, %v945_v63  ;;  %v946_v4 = vadd.f32 %v1451_v38, %v881_v0 }
 0x114   : > { %975 = vst.msk [vmem:[%s1456_s14 + $0xa0] sm:$0xff] %vm706_vm2, %v943_v2  ;;  %v944_v5 = vadd.f32 %v1451_v38, %v873_v3 }
 0x115   : > { %978 = vst.msk [vmem:[%s1456_s14 + $0xb8] sm:$0xff] %vm706_vm2, %v946_v4  ;;  %v1198_v6 = vpop.f32.mrb[24].mxu1 }
 0x116   : > { %976 = vst.msk [vmem:[%s1456_s14 + $0xa8] sm:$0xff] %vm706_vm2, %v944_v5  ;;  %v1234_v7 = vpop.f32.mrb[24].mxu0  ;;  %v583_v8 = vpop.f32.mrb[25].mxu1 }
 0x117   : > { %v894_v9 = vadd.f32 %v1234_v7, %v1198_v6  ;;  %v885_v10 = vpop.f32.mrb[25].mxu0  ;;  %v1199_v11 = vpop.f32.mrb[26].mxu1 }
 0x118   : > { %v886_v12 = vadd.f32 %v885_v10, %v583_v8  ;;  %v1235_v13 = vpop.f32.mrb[26].mxu0  ;;  %v586_v14 = vpop.f32.mrb[27].mxu1 }
 0x119   : > { %v949_v15 = vadd.f32 %v1451_v38, %v894_v9  ;;  %v897_v16 = vadd.f32 %v1235_v13, %v1199_v11  ;;  %v888_v17 = vpop.f32.mrb[27].mxu0 }
 0x11a   : > { %v947_v18 = vadd.f32 %v1451_v38, %v886_v12  ;;  %v889_v19 = vadd.f32 %v888_v17, %v586_v14 }
 0x11b   : > { %981 = vst.msk [vmem:[%s1456_s14 + $0xd0] sm:$0xff] %vm706_vm2, %v949_v15  ;;  %v950_v20 = vadd.f32 %v1451_v38, %v897_v16 }
 0x11c   : > { %979 = vst.msk [vmem:[%s1456_s14 + $0xc0] sm:$0xff] %vm706_vm2, %v947_v18  ;;  %v948_v21 = vadd.f32 %v1451_v38, %v889_v19 }
 0x11d   : > { %982 = vst.msk [vmem:[%s1456_s14 + $0xd8] sm:$0xff] %vm706_vm2, %v950_v20  ;;  %v1202_v22 = vpop.f32.mrb[28].mxu1 }
 0x11e   : > { %980 = vst.msk [vmem:[%s1456_s14 + $0xc8] sm:$0xff] %vm706_vm2, %v948_v21  ;;  %v1238_v23 = vpop.f32.mrb[28].mxu0  ;;  %v599_v24 = vpop.f32.mrb[29].mxu1 }
 0x11f   : > { %v910_v25 = vadd.f32 %v1238_v23, %v1202_v22  ;;  %v901_v26 = vpop.f32.mrb[29].mxu0  ;;  %v1203_v27 = vpop.f32.mrb[30].mxu1 }
 0x120   : > { %v902_v28 = vadd.f32 %v901_v26, %v599_v24  ;;  %v1239_v29 = vpop.f32.mrb[30].mxu0  ;;  %v602_v30 = vpop.f32.mrb[31].mxu1 }
 0x121   : > { %v953_v31 = vadd.f32 %v1451_v38, %v910_v25  ;;  %v913_v32 = vadd.f32 %v1239_v29, %v1203_v27  ;;  %v904_v33 = vpop.f32.mrb[31].mxu0 }
 0x122   : > { %v951_v34 = vadd.f32 %v1451_v38, %v902_v28  ;;  %v905_v35 = vadd.f32 %v904_v33, %v602_v30 }
 0x123   : > { %985 = vst.msk [vmem:[%s1456_s14 + $0xf0] sm:$0xff] %vm706_vm2, %v953_v31  ;;  %v954_v36 = vadd.f32 %v1451_v38, %v913_v32 }
 0x124   : > { %983 = vst.msk [vmem:[%s1456_s14 + $0xe0] sm:$0xff] %vm706_vm2, %v951_v34  ;;  %v952_v37 = vadd.f32 %v1451_v38, %v905_v35 }
 0x125   : > { %986 = vst.msk [vmem:[%s1456_s14 + $0xf8] sm:$0xff] %vm706_vm2, %v954_v36 }
 0x126   : > { %984 = vst.msk [vmem:[%s1456_s14 + $0xe8] sm:$0xff] %vm706_vm2, %v952_v37 }
 0x127 PF: > { %s15_s18 = sadd.s32 1, %s1321_s18  }
 0x128   : > { %p12_p4 = scmp.ge.s32.totalorder %s15_s18, 4  }
 0x12a   :  { %14 = sbr.rel (!%p12_p4) target bundleno = 1 (0x1), region = 73 }

</bundles_post_ra>
